<compile_context>
chip_gen: v5e
topology: v5e:2x2
jax: 0.10.0
libtpu: 0.0.40
codegen_flags: <defaults>
</compile_context>

<pallas_src>
import math

import jax
import jax.numpy as jnp
from jax.experimental import pallas as pl
from jax.experimental.pallas import tpu as pltpu


def _make_deepfm_kernel(k, h1_dim):
    def kernel(x_ref, sel_ref, col_ref, table_ref, s1_ref, t1_ref,
               w2_ref, s2_ref, t2_ref, out_ref):
        xv = x_ref[...].astype(jnp.float32)                     # (TB, F) indices

        # ---- one-hot (TB, F*V): broadcast each field's index across its V
        #      columns with one tiny MXU matmul, then a single equality
        #      compare against the resident local-column constant. ----------
        xb = jnp.dot(xv, sel_ref[...], preferred_element_type=jnp.float32)
        oh = (xb == col_ref[...]).astype(jnp.float32)           # (TB, F*V)

        # ---- single fused matmul: gather + FM sums + first FC -------------
        #   col 0              : sum_f emb1[x]  (+ bias/F folded in)
        #   cols [1, 1+k)      : sum_f emb2[x]
        #   col  1+k           : sum_f sum_k emb2[x]^2
        #   cols [2+k, 2+k+H1) : nn_in @ W1 (per-field W1 folded in)
        #   cols [2+k+H1, 128) : zero padding (lane-tile alignment)
        z = jnp.dot(oh, table_ref[...], preferred_element_type=jnp.float32)

        fm1 = z[:, 0:1]                                         # (TB, 1)
        e2_sum = z[:, 1:1 + k]                                  # (TB, k)
        sq_sum = z[:, 1 + k:2 + k]                              # (TB, 1)
        h1_pre = z[:, 2 + k:2 + k + h1_dim]                     # (TB, H1)

        fm2 = 0.5 * (jnp.sum(e2_sum * e2_sum, axis=1, keepdims=True) - sq_sum)

        # ---- MLP: (FC bias + eval-mode BN folded into scale/shift), ReLU ---
        h1 = jnp.maximum(h1_pre * s1_ref[...] + t1_ref[...], 0.0)
        h2 = jnp.dot(h1, w2_ref[...], preferred_element_type=jnp.float32)
        h2 = jnp.maximum(h2 * s2_ref[...] + t2_ref[...], 0.0)

        total = fm1 + fm2 + jnp.sum(h2, axis=1, keepdims=True)  # (TB, 1)
        out_ref[...] = jnp.transpose(total, (1, 0))             # dense (1, TB)
    return kernel


def prepare_deepfm(params):
    """One-time host-side folding of the raw module params into kernel tables."""
    (emb1, emb2, w1, b1, s1, t1, w2, b2, s2, t2, bias) = params
    vocab, k = emb2.shape
    n_fields, _, h1_dim = w1.shape

    # column 0: emb1 with the global bias folded in (each sample hits exactly
    # F one-hot rows, so +bias/F per row sums back to +bias).
    c0 = emb1 + bias.reshape(()) / n_fields                       # (V, 1)
    sqcol = jnp.sum(emb2 * emb2, axis=1, keepdims=True)           # (V, 1)
    embcat = jnp.concatenate([c0, emb2, sqcol], axis=1)           # (V, 2+k)
    emb_tiled = jnp.tile(embcat, (n_fields, 1))                   # (F*V, 2+k)
    # G[f*V + v, :] = emb2[v, :] @ W1[f]  (folds the first FC into the gather)
    g = jnp.einsum('vk,fkh->fvh', emb2, w1).reshape(n_fields * vocab, h1_dim)
    table = jnp.concatenate([emb_tiled, g], axis=1)               # (F*V, 2+k+H1)

    # pad columns up to a multiple of 128 -> z is whole lane tiles, dense slices
    w_raw = table.shape[1]
    w_pad = ((w_raw + 127) // 128) * 128
    if w_pad != w_raw:
        table = jnp.pad(table, ((0, 0), (0, w_pad - w_raw)))

    # selection matrix: sel[f, j] = 1 iff column j belongs to field f
    field_of_col = jnp.arange(n_fields * vocab) // vocab
    sel = (field_of_col[None, :] == jnp.arange(n_fields)[:, None]).astype(jnp.float32)
    # per-column local index (field offset folded into the compare constant)
    col = (jnp.arange(n_fields * vocab) % vocab).astype(jnp.float32)[None, :]

    t1p = b1 * s1 + t1            # fold FC bias into BN shift
    t2p = b2 * s2 + t2
    return (sel, col, table, s1, t1p, w2, s2, t2p, int(k), int(h1_dim))


def _default_tb(batch):
    # Multiples of 256 (fills MXU M on v6e/v7x), capped at 1024, and sized so
    # >=2 grid tiles exist when the batch allows (v7x megacore split).
    per_core = -(-batch // 2)
    return int(max(256, min(1024, ((per_core + 255) // 256) * 256)))


def deepfm_forward(x, prepared, *, tb=None):
    sel, col, table, s1, t1p, w2, s2, t2p, k, h1_dim = prepared
    x_idx = x.astype(jnp.int32)                 # torch: x.long()
    batch, n_fields = x_idx.shape
    fv, w_cols = table.shape
    h2_dim = w2.shape[1]

    if tb is None:
        tb = _default_tb(batch)
    num_tiles = pl.cdiv(batch, tb)
    b_pad = num_tiles * tb
    if b_pad != batch:
        x_idx = jnp.pad(x_idx, ((0, b_pad - batch), (0, 0)))

    flops = 2 * b_pad * (n_fields * fv + fv * w_cols + h1_dim * h2_dim)
    bytes_accessed = 4 * (b_pad * n_fields + sel.size + col.size + table.size
                          + w2.size + 2 * (h1_dim + h2_dim) + b_pad)

    out = pl.pallas_call(
        _make_deepfm_kernel(k, h1_dim),
        out_shape=jax.ShapeDtypeStruct((1, b_pad), jnp.float32),
        grid=(num_tiles,),
        in_specs=[
            pl.BlockSpec((tb, n_fields), lambda i: (i, 0)),      # x tile
            pl.BlockSpec((n_fields, fv), lambda i: (0, 0)),      # sel (resident)
            pl.BlockSpec((1, fv), lambda i: (0, 0)),             # local-col const
            pl.BlockSpec((fv, w_cols), lambda i: (0, 0)),        # fused table
            pl.BlockSpec((1, h1_dim), lambda i: (0, 0)),         # s1
            pl.BlockSpec((1, h1_dim), lambda i: (0, 0)),         # t1'
            pl.BlockSpec((h1_dim, h2_dim), lambda i: (0, 0)),    # w2
            pl.BlockSpec((1, h2_dim), lambda i: (0, 0)),         # s2
            pl.BlockSpec((1, h2_dim), lambda i: (0, 0)),         # t2'
        ],
        out_specs=pl.BlockSpec((1, tb), lambda i: (0, i)),       # lane-dense row
        compiler_params=pltpu.CompilerParams(
            dimension_semantics=("parallel",),
            vmem_limit_bytes=32 * 1024 * 1024),
        cost_estimate=pl.CostEstimate(flops=flops, transcendentals=0,
                                      bytes_accessed=bytes_accessed),
    )(x_idx, sel, col, table, s1, t1p, w2, s2, t2p)
    return out.reshape(-1)[:batch]


def init_params(key, x_sizes, k=5, nn_size=(32, 32)):
    n_fields = len(x_sizes)
    n_features = sum(x_sizes)
    vocab = n_features + 1
    std = math.sqrt(1.0 / n_fields)
    h1_dim, h2_dim = nn_size
    ks = jax.random.split(key, 16)

    bias = jax.random.normal(ks[0], (1, 1), jnp.float32)
    emb1 = std * jax.random.normal(ks[1], (vocab, 1), jnp.float32)
    emb2 = std * jax.random.normal(ks[2], (vocab, k), jnp.float32)

    lim1 = 1.0 / math.sqrt(n_fields * k)
    w1 = jax.random.uniform(ks[3], (n_fields * k, h1_dim), jnp.float32, -lim1, lim1)
    w1 = w1.reshape(n_fields, k, h1_dim)            # grouped per field
    b1 = jax.random.uniform(ks[4], (1, h1_dim), jnp.float32, -lim1, lim1)
    lim2 = 1.0 / math.sqrt(h1_dim)
    w2 = jax.random.uniform(ks[5], (h1_dim, h2_dim), jnp.float32, -lim2, lim2)
    b2 = jax.random.uniform(ks[6], (1, h2_dim), jnp.float32, -lim2, lim2)

    # BatchNorm1d eval-mode params folded to scale/shift (deterministic random).
    eps = 1e-5
    g1 = 1.0 + 0.1 * jax.random.normal(ks[7], (1, h1_dim), jnp.float32)
    be1 = 0.1 * jax.random.normal(ks[8], (1, h1_dim), jnp.float32)
    m1 = 0.1 * jax.random.normal(ks[9], (1, h1_dim), jnp.float32)
    v1 = 1.0 + 0.1 * jnp.abs(jax.random.normal(ks[10], (1, h1_dim), jnp.float32))
    s1 = g1 / jnp.sqrt(v1 + eps)
    t1 = be1 - m1 * s1

    g2 = 1.0 + 0.1 * jax.random.normal(ks[11], (1, h2_dim), jnp.float32)
    be2 = 0.1 * jax.random.normal(ks[12], (1, h2_dim), jnp.float32)
    m2 = 0.1 * jax.random.normal(ks[13], (1, h2_dim), jnp.float32)
    v2 = 1.0 + 0.1 * jnp.abs(jax.random.normal(ks[14], (1, h2_dim), jnp.float32))
    s2 = g2 / jnp.sqrt(v2 + eps)
    t2 = be2 - m2 * s2

    return (emb1, emb2, w1, b1, s1, t1, w2, b2, s2, t2, bias)


def deepfm_reference(x, params):
    """Pure-JAX reference mirroring the PyTorch forward (eval mode)."""
    (emb1, emb2, w1, b1, s1, t1, w2, b2, s2, t2, bias) = params
    x_idx = x.astype(jnp.int32)
    batch, n_fields = x_idx.shape
    k = emb2.shape[1]
    f1 = emb1[x_idx.reshape(-1)].reshape(batch, n_fields, 1)
    fm_1st_sum = jnp.sum(f1, axis=1)[:, 0]
    f2 = emb2[x_idx.reshape(-1)].reshape(batch, n_fields, k)
    s = jnp.sum(f2, axis=1)
    fm_2nd_out = 0.5 * (s * s - jnp.sum(f2 * f2, axis=1))
    fm_2nd_sum = jnp.sum(fm_2nd_out, axis=1)
    nn_in = f2.reshape(batch, n_fields * k)
    w1_flat = w1.reshape(n_fields * k, -1)
    h1 = jnp.maximum((nn_in @ w1_flat + b1) * s1 + t1, 0.0)
    h2 = jnp.maximum((h1 @ w2 + b2) * s2 + t2, 0.0)
    nn_sum = jnp.sum(h2, axis=1)
    return fm_1st_sum + fm_2nd_sum + nn_sum + bias[0, 0]


if __name__ == "__main__":
    # Small DeepFM: 8 fields, 48 total encoded features, k=5, hidden [32, 32].
    x_sizes = [7, 5, 9, 6, 8, 4, 3, 6]
    k = 5
    nn_size = (32, 32)
    B = 8

    key = jax.random.PRNGKey(0)
    pkey, xkey = jax.random.split(key)
    params = init_params(pkey, x_sizes, k, nn_size)

    # Each field's value is an index into the global (offset) feature space.
    offsets = [0]
    for sz in x_sizes[:-1]:
        offsets.append(offsets[-1] + sz)
    xkeys = jax.random.split(xkey, len(x_sizes))
    cols = [jax.random.randint(xkeys[f], (B, 1), off, off + sz)
            for f, (off, sz) in enumerate(zip(offsets, x_sizes))]
    x = jnp.concatenate(cols, axis=1).astype(jnp.float32)   # float input, like torch

    prepared = prepare_deepfm(params)
    out = jax.block_until_ready(deepfm_forward(x, prepared))
    ref = deepfm_reference(x, params)
    assert out.shape == (B,)
    assert jnp.allclose(out, ref, rtol=1e-4, atol=1e-4), (out, ref)
    print("KERNEL_OK")
</pallas_src>

<mosaic_0001>
module attributes {stable_mosaic.version = 11 : i64} {
  func.func @kernel(%arg0: i32, %arg1: memref<256x8xi32, #tpu.memory_space<vmem>>, %arg2: memref<8x392xf32, #tpu.memory_space<vmem>>, %arg3: memref<1x392xf32, #tpu.memory_space<vmem>>, %arg4: memref<392x128xf32, #tpu.memory_space<vmem>>, %arg5: memref<1x32xf32, #tpu.memory_space<vmem>>, %arg6: memref<1x32xf32, #tpu.memory_space<vmem>>, %arg7: memref<32x32xf32, #tpu.memory_space<vmem>>, %arg8: memref<1x32xf32, #tpu.memory_space<vmem>>, %arg9: memref<1x32xf32, #tpu.memory_space<vmem>>, %arg10: memref<1x256xf32, #tpu.memory_space<vmem>>) attributes {dimension_semantics = [#tpu.dimension_semantics<parallel>], iteration_bounds = array<i64: 1>, scalar_prefetch = 0 : i64, scratch_operands = 0 : i64, tpu.core_type = #tpu.core_type<tc>, window_params = [{transform_indices = @transform_0, window_bounds = array<i64: 256, 8>}, {pipeline_mode = #tpu.pipeline_mode<synchronous>, transform_indices = @transform_1, window_bounds = array<i64: 8, 392>}, {pipeline_mode = #tpu.pipeline_mode<synchronous>, transform_indices = @transform_2, window_bounds = array<i64: 1, 392>}, {pipeline_mode = #tpu.pipeline_mode<synchronous>, transform_indices = @transform_3, window_bounds = array<i64: 392, 128>}, {pipeline_mode = #tpu.pipeline_mode<synchronous>, transform_indices = @transform_4, window_bounds = array<i64: 1, 32>}, {pipeline_mode = #tpu.pipeline_mode<synchronous>, transform_indices = @transform_5, window_bounds = array<i64: 1, 32>}, {pipeline_mode = #tpu.pipeline_mode<synchronous>, transform_indices = @transform_6, window_bounds = array<i64: 32, 32>}, {pipeline_mode = #tpu.pipeline_mode<synchronous>, transform_indices = @transform_7, window_bounds = array<i64: 1, 32>}, {pipeline_mode = #tpu.pipeline_mode<synchronous>, transform_indices = @transform_8, window_bounds = array<i64: 1, 32>}, {transform_indices = @transform_9, window_bounds = array<i64: 1, 256>}]} {
    %c0 = arith.constant 0 : index
    %c0_0 = arith.constant 0 : index
    %0 = vector.load %arg1[%c0, %c0_0] : memref<256x8xi32, #tpu.memory_space<vmem>>, vector<256x8xi32>
    %1 = arith.sitofp %0 : vector<256x8xi32> to vector<256x8xf32>
    %c0_1 = arith.constant 0 : index
    %c0_2 = arith.constant 0 : index
    %2 = vector.load %arg2[%c0_1, %c0_2] : memref<8x392xf32, #tpu.memory_space<vmem>>, vector<8x392xf32>
    %cst = arith.constant dense<0.000000e+00> : vector<256x392xf32>
    %3 = tpu.matmul %1, %2, %cst {dimension_numbers = #tpu.dot_dimension_numbers<[1], [0], [0], [1], [0, 0, 1, 1], [], []>} : vector<256x8xf32>, vector<8x392xf32>, vector<256x392xf32> -> vector<256x392xf32>
    %c0_3 = arith.constant 0 : index
    %c0_4 = arith.constant 0 : index
    %4 = vector.load %arg3[%c0_3, %c0_4] : memref<1x392xf32, #tpu.memory_space<vmem>>, vector<1x392xf32>
    %5 = vector.broadcast %4 : vector<1x392xf32> to vector<256x392xf32>
    %6 = arith.cmpf oeq, %3, %5 : vector<256x392xf32>
    %7 = arith.extui %6 : vector<256x392xi1> to vector<256x392xi32>
    %8 = arith.sitofp %7 : vector<256x392xi32> to vector<256x392xf32>
    %c0_5 = arith.constant 0 : index
    %c0_6 = arith.constant 0 : index
    %9 = vector.load %arg4[%c0_5, %c0_6] : memref<392x128xf32, #tpu.memory_space<vmem>>, vector<392x128xf32>
    %cst_7 = arith.constant dense<0.000000e+00> : vector<256x128xf32>
    %10 = tpu.matmul %8, %9, %cst_7 {dimension_numbers = #tpu.dot_dimension_numbers<[1], [0], [0], [1], [0, 0, 1, 1], [], []>} : vector<256x392xf32>, vector<392x128xf32>, vector<256x128xf32> -> vector<256x128xf32>
    %11 = vector.extract_strided_slice %10 {offsets = [0, 0], sizes = [256, 1], strides = [1, 1]} : vector<256x128xf32> to vector<256x1xf32>
    %12 = vector.extract_strided_slice %10 {offsets = [0, 1], sizes = [256, 5], strides = [1, 1]} : vector<256x128xf32> to vector<256x5xf32>
    %13 = vector.extract_strided_slice %10 {offsets = [0, 6], sizes = [256, 1], strides = [1, 1]} : vector<256x128xf32> to vector<256x1xf32>
    %14 = vector.extract_strided_slice %10 {offsets = [0, 7], sizes = [256, 32], strides = [1, 1]} : vector<256x128xf32> to vector<256x32xf32>
    %15 = arith.mulf %12, %12 : vector<256x5xf32>
    %cst_8 = arith.constant dense<0.000000e+00> : vector<256xf32>
    %16 = vector.multi_reduction <add>, %15, %cst_8 [1] : vector<256x5xf32> to vector<256xf32>
    %17 = vector.shape_cast %16 : vector<256xf32> to vector<256x1xf32>
    %18 = arith.subf %17, %13 : vector<256x1xf32>
    %cst_9 = arith.constant 5.000000e-01 : f32
    %19 = vector.broadcast %cst_9 : f32 to vector<256x1xf32>
    %20 = arith.mulf %19, %18 : vector<256x1xf32>
    %c0_10 = arith.constant 0 : index
    %c0_11 = arith.constant 0 : index
    %21 = vector.load %arg5[%c0_10, %c0_11] : memref<1x32xf32, #tpu.memory_space<vmem>>, vector<1x32xf32>
    %22 = vector.broadcast %21 : vector<1x32xf32> to vector<256x32xf32>
    %23 = arith.mulf %14, %22 : vector<256x32xf32>
    %c0_12 = arith.constant 0 : index
    %c0_13 = arith.constant 0 : index
    %24 = vector.load %arg6[%c0_12, %c0_13] : memref<1x32xf32, #tpu.memory_space<vmem>>, vector<1x32xf32>
    %25 = vector.broadcast %24 : vector<1x32xf32> to vector<256x32xf32>
    %26 = arith.addf %23, %25 : vector<256x32xf32>
    %cst_14 = arith.constant 0.000000e+00 : f32
    %27 = vector.broadcast %cst_14 : f32 to vector<256x32xf32>
    %28 = arith.maximumf %26, %27 : vector<256x32xf32>
    %c0_15 = arith.constant 0 : index
    %c0_16 = arith.constant 0 : index
    %29 = vector.load %arg7[%c0_15, %c0_16] : memref<32x32xf32, #tpu.memory_space<vmem>>, vector<32x32xf32>
    %cst_17 = arith.constant dense<0.000000e+00> : vector<256x32xf32>
    %30 = tpu.matmul %28, %29, %cst_17 {dimension_numbers = #tpu.dot_dimension_numbers<[1], [0], [0], [1], [0, 0, 1, 1], [], []>} : vector<256x32xf32>, vector<32x32xf32>, vector<256x32xf32> -> vector<256x32xf32>
    %c0_18 = arith.constant 0 : index
    %c0_19 = arith.constant 0 : index
    %31 = vector.load %arg8[%c0_18, %c0_19] : memref<1x32xf32, #tpu.memory_space<vmem>>, vector<1x32xf32>
    %32 = vector.broadcast %31 : vector<1x32xf32> to vector<256x32xf32>
    %33 = arith.mulf %30, %32 : vector<256x32xf32>
    %c0_20 = arith.constant 0 : index
    %c0_21 = arith.constant 0 : index
    %34 = vector.load %arg9[%c0_20, %c0_21] : memref<1x32xf32, #tpu.memory_space<vmem>>, vector<1x32xf32>
    %35 = vector.broadcast %34 : vector<1x32xf32> to vector<256x32xf32>
    %36 = arith.addf %33, %35 : vector<256x32xf32>
    %cst_22 = arith.constant 0.000000e+00 : f32
    %37 = vector.broadcast %cst_22 : f32 to vector<256x32xf32>
    %38 = arith.maximumf %36, %37 : vector<256x32xf32>
    %39 = arith.addf %11, %20 : vector<256x1xf32>
    %cst_23 = arith.constant dense<0.000000e+00> : vector<256xf32>
    %40 = vector.multi_reduction <add>, %38, %cst_23 [1] : vector<256x32xf32> to vector<256xf32>
    %41 = vector.shape_cast %40 : vector<256xf32> to vector<256x1xf32>
    %42 = arith.addf %39, %41 : vector<256x1xf32>
    %43 = tpu.transpose %42, [1, 0] : vector<256x1xf32> -> vector<1x256xf32>
    %c0_24 = arith.constant 0 : index
    %c0_25 = arith.constant 0 : index
    %44 = vector.load %arg10[%c0_24, %c0_25] : memref<1x256xf32, #tpu.memory_space<vmem>>, vector<1x256xf32>
    tpu.vector_store %arg10[%c0_24, %c0_25], %43 {strides = array<i32>} : memref<1x256xf32, #tpu.memory_space<vmem>>, vector<1x256xf32>,
    return
  }
  func.func @transform_0(%arg0: i32) -> (i32, i32) {
    %c0_i32 = arith.constant 0 : i32
    %c0_i32_0 = arith.constant 0 : i32
    return %arg0, %c0_i32 : i32, i32
  }
  func.func @transform_1(%arg0: i32) -> (i32, i32) {
    %c0_i32 = arith.constant 0 : i32
    %c0_i32_0 = arith.constant 0 : i32
    %c0_i32_1 = arith.constant 0 : i32
    return %c0_i32, %c0_i32_0 : i32, i32
  }
  func.func @transform_2(%arg0: i32) -> (i32, i32) {
    %c0_i32 = arith.constant 0 : i32
    %c0_i32_0 = arith.constant 0 : i32
    %c0_i32_1 = arith.constant 0 : i32
    return %c0_i32, %c0_i32_0 : i32, i32
  }
  func.func @transform_3(%arg0: i32) -> (i32, i32) {
    %c0_i32 = arith.constant 0 : i32
    %c0_i32_0 = arith.constant 0 : i32
    %c0_i32_1 = arith.constant 0 : i32
    return %c0_i32, %c0_i32_0 : i32, i32
  }
  func.func @transform_4(%arg0: i32) -> (i32, i32) {
    %c0_i32 = arith.constant 0 : i32
    %c0_i32_0 = arith.constant 0 : i32
    %c0_i32_1 = arith.constant 0 : i32
    return %c0_i32, %c0_i32_0 : i32, i32
  }
  func.func @transform_5(%arg0: i32) -> (i32, i32) {
    %c0_i32 = arith.constant 0 : i32
    %c0_i32_0 = arith.constant 0 : i32
    %c0_i32_1 = arith.constant 0 : i32
    return %c0_i32, %c0_i32_0 : i32, i32
  }
  func.func @transform_6(%arg0: i32) -> (i32, i32) {
    %c0_i32 = arith.constant 0 : i32
    %c0_i32_0 = arith.constant 0 : i32
    %c0_i32_1 = arith.constant 0 : i32
    return %c0_i32, %c0_i32_0 : i32, i32
  }
  func.func @transform_7(%arg0: i32) -> (i32, i32) {
    %c0_i32 = arith.constant 0 : i32
    %c0_i32_0 = arith.constant 0 : i32
    %c0_i32_1 = arith.constant 0 : i32
    return %c0_i32, %c0_i32_0 : i32, i32
  }
  func.func @transform_8(%arg0: i32) -> (i32, i32) {
    %c0_i32 = arith.constant 0 : i32
    %c0_i32_0 = arith.constant 0 : i32
    %c0_i32_1 = arith.constant 0 : i32
    return %c0_i32, %c0_i32_0 : i32, i32
  }
  func.func @transform_9(%arg0: i32) -> (i32, i32) {
    %c0_i32 = arith.constant 0 : i32
    %c0_i32_0 = arith.constant 0 : i32
    return %c0_i32, %arg0 : i32, i32
  }
}

</mosaic_0001>

<bundles_post_ra>
// kernel: tpu_custom_call.1
= control target key start
LH: loop header
LB: loop body
LE: loop exit
PB: predicated region body
PF: predicated region fallthrough
CT: control target
= control target key end

     0   :  { %14 = vsyncpa [#allocation3], 0  ;;  %s5424_s0 = inlined_call_operand.vmem [shape: s32[256,8], index: 0, kind: input, shape index: {}]   ;;  %s5425_s1 = inlined_call_operand.vmem [shape: f32[8,392], index: 1, kind: input, shape index: {}]   ;;  %s5426_s2 = inlined_call_operand.vmem [shape: f32[1,392], index: 2, kind: input, shape index: {}]   ;;  %s5427_s3 = inlined_call_operand.hbm [shape: f32[392,128], index: 3, kind: input, shape index: {}]   ;;  %s5428_s4 = inlined_call_operand.vmem [shape: f32[1,32], index: 4, kind: input, shape index: {}]   ;;  %s5429_s5 = inlined_call_operand.vmem [shape: f32[1,32], index: 5, kind: input, shape index: {}]   ;;  %s5430_s6 = inlined_call_operand.vmem [shape: f32[32,32], index: 6, kind: input, shape index: {}]   ;;  %s5431_s7 = inlined_call_operand.vmem [shape: f32[1,32], index: 7, kind: input, shape index: {}]   ;;  %s5432_s8 = inlined_call_operand.vmem [shape: f32[1,32], index: 8, kind: input, shape index: {}]   ;;  %s5433_s9 = inlined_call_operand.hbm [shape: f32[1,256], index: 9, kind: output, shape index: {}]  }
   0x1   :  { %15 = vsyncpa [#allocation4], 0  ;;  %s26_s11 = sshll.u32 %s5427_s3, 4  ;;  %s3333_s12 = smov [#allocation2]   ;;  %s27_s11 = int_to_ptr.hbm [resolvable:$true] %s26_s11 }
   0x2   :  { %s28_s13 = sshll.u32 %s3333_s12, 4  ;;  %s3334_s14 = smov 128   ;;  %s29_s13 = int_to_ptr.vmem [resolvable:$true] %s28_s13 }
   0x3   :  { %s3335_s15 = smov 8  }
   0x4   :  { %34 = dma.hbm_to_vmem [thread:$0]  %s27_s11, 6272, %s29_s13, [#allocation3], %s3334_s14, %s3334_s14, %s3335_s15  }
   0x5   :  { %3329 = dma.done.wait [#allocation3], 6272  }
   0x6   :  { %3330 = vsyncadd [#allocation3], 4294961024  ;;  %v113_v0 = vld [vmem:[%s5425_s1] sm:$0xff]  ;;  %vm117_vm0 = vcmask 64512   ;;  %v115_v9 = vld [vmem:[%s5425_s1 + $0x10] sm:$0xff]  ;;  %s3337_s3 = smov 7  }
   0x7   :  { %v49_v1 = vld [vmem:[%s5424_s0] sm:$0xff]  ;;  %229 = vmatpush.msra.mxu0 %v113_v0  ;;  %3264 = vmatpush.msra.mxu1 %v113_v0  ;;  %v116_v10 = vld [vmem:[%s5425_s1 + $0x18] sm:$0xff]  ;;  %v114_v11 = vld [vmem:[%s5425_s1 + $0x8] sm:$0xff]  ;;  %s3340_s22 = smov 121   ;;  %s2838_s1 = sshll.u32 %s5433_s9, 4  ;;  %s2839_s1 = int_to_ptr.hbm [resolvable:$true] %s2838_s1 }
   0x8   :  { %v57_v2 = vld [vmem:[%s5424_s0 + $0x40] sm:$0xff]  ;;  %v3405_v3 = vcvt.s32.f32 %v49_v1  ;;  %3265 = vmatpush.msra.mxu2 %v113_v0  ;;  %3266 = vmatpush.msra.mxu3 %v113_v0  ;;  %v50_v12 = vld [vmem:[%s5424_s0 + $0x8] sm:$0xff]  ;;  %v51_v20 = vld [vmem:[%s5424_s0 + $0x10] sm:$0xff] }
   0x9   :  { %v3407_v4 = vcvt.s32.f32 %v57_v2  ;;  %v65_v5 = vld [vmem:[%s5424_s0 + $0x80] sm:$0xff]  ;;  %v58_v13 = vld [vmem:[%s5424_s0 + $0x48] sm:$0xff]  ;;  %342 = vmatpush.msrb.mxu1 %v114_v11  ;;  %v3448_v16 = vcvt.s32.f32 %v50_v12  ;;  %v59_v21 = vld [vmem:[%s5424_s0 + $0x50] sm:$0xff]  ;;  %v3476_v24 = vcvt.s32.f32 %v51_v20 }
   0xa   :  { %v73_v6 = vld [vmem:[%s5424_s0 + $0xc0] sm:$0xff]  ;;  %v3415_v7 = vcvt.s32.f32 %v65_v5  ;;  %2848 = vmatmul.msk.f32.vlgmr.msra.gmra.mxu0 %vm117_vm0, %v3405_v3  ;;  %455 = vmatpush.msrb.mxu2 %v115_v9  ;;  %v66_v14 = vld [vmem:[%s5424_s0 + $0x88] sm:$0xff]  ;;  %v3450_v17 = vcvt.s32.f32 %v58_v13  ;;  %v67_v22 = vld [vmem:[%s5424_s0 + $0x90] sm:$0xff]  ;;  %v3478_v25 = vcvt.s32.f32 %v59_v21 }
   0xb   :  { %v3417_v8 = vcvt.s32.f32 %v73_v6  ;;  %2856 = vmatmul.msk.f32.vlgmr.msra.gmra.mxu1 %vm117_vm0, %v3407_v4  ;;  %568 = vmatpush.msrb.mxu3 %v116_v10  ;;  %v74_v15 = vld [vmem:[%s5424_s0 + $0xc8] sm:$0xff]  ;;  %v3452_v18 = vcvt.s32.f32 %v66_v14  ;;  %v75_v23 = vld [vmem:[%s5424_s0 + $0xd0] sm:$0xff]  ;;  %v3480_v26 = vcvt.s32.f32 %v67_v22  ;;  %v52_v28 = vld [vmem:[%s5424_s0 + $0x18] sm:$0xff] }
   0xc   :  { %2864 = vmatmul.msk.f32.vlgmr.msra.gmra.mxu2 %vm117_vm0, %v3415_v7  ;;  %v3454_v19 = vcvt.s32.f32 %v74_v15  ;;  %v3482_v27 = vcvt.s32.f32 %v75_v23  ;;  %v60_v29 = vld [vmem:[%s5424_s0 + $0x58] sm:$0xff]  ;;  %v3504_v32 = vcvt.s32.f32 %v52_v28  ;;  %v53_v36 = vld [vmem:[%s5424_s0 + $0x20] sm:$0xff]  ;;  %v54_v44 = vld [vmem:[%s5424_s0 + $0x28] sm:$0xff] }
   0xd   :  { %2872 = vmatmul.msk.f32.vlgmr.msra.gmra.mxu3 %vm117_vm0, %v3417_v8  ;;  %v68_v30 = vld [vmem:[%s5424_s0 + $0x98] sm:$0xff]  ;;  %v3506_v33 = vcvt.s32.f32 %v60_v29  ;;  %v61_v37 = vld [vmem:[%s5424_s0 + $0x60] sm:$0xff]  ;;  %v3532_v40 = vcvt.s32.f32 %v53_v36  ;;  %v62_v45 = vld [vmem:[%s5424_s0 + $0x68] sm:$0xff]  ;;  %v3560_v51 = vcvt.s32.f32 %v54_v44 }
   0xe   :  { %v76_v31 = vld [vmem:[%s5424_s0 + $0xd8] sm:$0xff]  ;;  %v3508_v34 = vcvt.s32.f32 %v68_v30  ;;  %v69_v38 = vld [vmem:[%s5424_s0 + $0xa0] sm:$0xff]  ;;  %v3534_v41 = vcvt.s32.f32 %v61_v37  ;;  %v70_v49 = vld [vmem:[%s5424_s0 + $0xa8] sm:$0xff]  ;;  %v3562_v52 = vcvt.s32.f32 %v62_v45 }
   0xf   :  { %v3510_v35 = vcvt.s32.f32 %v76_v31  ;;  %v77_v39 = vld [vmem:[%s5424_s0 + $0xe0] sm:$0xff]  ;;  %v3536_v42 = vcvt.s32.f32 %v69_v38  ;;  %v1107_v46 = vld [vmem:[#allocation2 + $0x178] sm:$0xff]  ;;  %v78_v50 = vld [vmem:[%s5424_s0 + $0xe8] sm:$0xff]  ;;  %v3564_v53 = vcvt.s32.f32 %v70_v49 }
  0x10   :  { %v3538_v43 = vcvt.s32.f32 %v77_v39  ;;  %v1108_v47 = vld [vmem:[#allocation2 + $0x180] sm:$0xff]  ;;  %v1091_v48 = vld [vmem:[#allocation2 + $0xf8] sm:$0xff]  ;;  %1431 = vmatpush.msra.mxu2 %v1107_v46  ;;  %v3566_v54 = vcvt.s32.f32 %v78_v50  ;;  %v55_v55 = vld [vmem:[%s5424_s0 + $0x30] sm:$0xff] }
  0x11   :  { %1559 = vmatpush.msra.mxu3 %v1108_v47  ;;  %1318 = vmatpush.msra.mxu1 %v1091_v48  ;;  %v63_v56 = vld [vmem:[%s5424_s0 + $0x70] sm:$0xff]  ;;  %v3588_v59 = vcvt.s32.f32 %v55_v55  ;;  %v56_v63 = vld [vmem:[%s5424_s0 + $0x38] sm:$0xff]  ;;  %v1105_v14 = vld [vmem:[#allocation2 + $0x168] sm:$0xff]  ;;  %v5434_v55 = vmov 1.0  }
  0x12   :  { %2849 = vmatmul.msk.f32.gmra.mxu0 %vm117_vm0, %v3448_v16  ;;  %v71_v57 = vld [vmem:[%s5424_s0 + $0xb0] sm:$0xff]  ;;  %v3590_v60 = vcvt.s32.f32 %v63_v56  ;;  %v64_v0 = vld [vmem:[%s5424_s0 + $0x78] sm:$0xff]  ;;  %v3616_v9 = vcvt.s32.f32 %v56_v63  ;;  %v1089_v20 = vld [vmem:[#allocation2 + $0xe8] sm:$0xff] }
  0x13   :  { %2857 = vmatmul.msk.f32.gmra.mxu1 %vm117_vm0, %v3450_v17  ;;  %v79_v58 = vld [vmem:[%s5424_s0 + $0xf0] sm:$0xff]  ;;  %v3592_v61 = vcvt.s32.f32 %v71_v57  ;;  %v72_v5 = vld [vmem:[%s5424_s0 + $0xb8] sm:$0xff]  ;;  %v3618_v10 = vcvt.s32.f32 %v64_v0  ;;  %v1073_v21 = vld [vmem:[#allocation2 + $0x68] sm:$0xff] }
  0x14   :  { %2865 = vmatmul.msk.f32.gmra.mxu2 %vm117_vm0, %v3452_v18  ;;  %v3594_v62 = vcvt.s32.f32 %v79_v58  ;;  %v1106_v1 = vld [vmem:[#allocation2 + $0x170] sm:$0xff]  ;;  %v80_v6 = vld [vmem:[%s5424_s0 + $0xf8] sm:$0xff]  ;;  %v3620_v11 = vcvt.s32.f32 %v72_v5  ;;  %v1072_v22 = vld [vmem:[#allocation2 + $0x60] sm:$0xff] }
  0x15   :  { %2873 = vmatmul.msk.f32.gmra.mxu3 %vm117_vm0, %v3454_v19  ;;  %v1090_v2 = vld [vmem:[#allocation2 + $0xf0] sm:$0xff]  ;;  %1432 = vmatpush.msra.mxu2 %v1106_v1  ;;  %v3622_v12 = vcvt.s32.f32 %v80_v6  ;;  %v1075_v13 = vld [vmem:[#allocation2 + $0x78] sm:$0xff]  ;;  %v1069_v28 = vld [vmem:[#allocation2 + $0x48] sm:$0xff] }
  0x16   :  { %1319 = vmatpush.msra.mxu1 %v1090_v2  ;;  %v1074_v15 = vld [vmem:[#allocation2 + $0x70] sm:$0xff]  ;;  %1205 = vmatpush.msrb.mxu0 %v1075_v13  ;;  %v1071_v23 = vld [vmem:[#allocation2 + $0x58] sm:$0xff]  ;;  %v1068_v29 = vld [vmem:[#allocation2 + $0x40] sm:$0xff] }
  0x17   :  { %1433 = vmatpush.msra.mxu2 %v1105_v14  ;;  %v1067_v30 = vld [vmem:[#allocation2 + $0x38] sm:$0xff]  ;;  %v1104_v31 = vld [vmem:[#allocation2 + $0x160] sm:$0xff]  ;;  %v1066_v36 = vld [vmem:[#allocation2 + $0x30] sm:$0xff] }
  0x18   :  { %1320 = vmatpush.msra.mxu1 %v1089_v20  ;;  %1206 = vmatpush.msrb.mxu0 %v1074_v15  ;;  %v1065_v37 = vld [vmem:[#allocation2 + $0x28] sm:$0xff]  ;;  %v1064_v38 = vld [vmem:[#allocation2 + $0x20] sm:$0xff]  ;;  %v1063_v39 = vld [vmem:[#allocation2 + $0x18] sm:$0xff] }
  0x19   :  { %1434 = vmatpush.msra.mxu2 %v1104_v31  ;;  %v1061_v44 = vld [vmem:[#allocation2 + $0x8] sm:$0xff]  ;;  %v1060_v45 = vld [vmem:[#allocation2] sm:$0xff]  ;;  %v1103_v46 = vld [vmem:[#allocation2 + $0x158] sm:$0xff] }
  0x1a   :  { %2850 = vmatmul.msk.f32.gmra.mxu0 %vm117_vm0, %v3476_v24  ;;  %v1087_v47 = vld [vmem:[#allocation2 + $0xd8] sm:$0xff]  ;;  %v3677_v48 = vld [vmem:[%s5426_s2] sm:$0xf]  ;;  %v1101_v56 = vld [vmem:[#allocation2 + $0x148] sm:$0xff] }
  0x1b   :  { %2858 = vmatmul.msk.f32.gmra.mxu1 %vm117_vm0, %v3478_v25  ;;  %1207 = vmatpush.msrb.mxu0 %v1073_v21  ;;  %v3686_v49 = vperm.slane %v3677_v48, 0  ;;  %v1085_v0 = vld [vmem:[#allocation2 + $0xc8] sm:$0xff]  ;;  %v1084_v15 = vld [vmem:[#allocation2 + $0xc0] sm:$0xff] }
  0x1c   :  { %2866 = vmatmul.msk.f32.gmra.mxu2 %vm117_vm0, %v3480_v26 }
  0x1d   :  { %2874 = vmatmul.msk.f32.gmra.mxu3 %vm117_vm0, %v3482_v27  ;;  %1208 = vmatpush.msrb.mxu0 %v1072_v22 }
  0x1e   :  { %1435 = vmatpush.msra.mxu2 %v1103_v46 }
  0x1f   :  { %1209 = vmatpush.msrb.mxu0 %v1071_v23 }
  0x22   :  { %2851 = vmatmul.msk.f32.gmra.mxu0 %vm117_vm0, %v3504_v32 }
  0x23   :  { %2859 = vmatmul.msk.f32.gmra.mxu1 %vm117_vm0, %v3506_v33 }
  0x24   :  { %2867 = vmatmul.msk.f32.gmra.mxu2 %vm117_vm0, %v3508_v34 }
  0x25   :  { %2875 = vmatmul.msk.f32.gmra.mxu3 %vm117_vm0, %v3510_v35 }
  0x2a   :  { %2852 = vmatmul.msk.f32.gmra.mxu0 %vm117_vm0, %v3532_v40 }
  0x2b   :  { %2860 = vmatmul.msk.f32.gmra.mxu1 %vm117_vm0, %v3534_v41 }
  0x2c   :  { %2868 = vmatmul.msk.f32.gmra.mxu2 %vm117_vm0, %v3536_v42 }
  0x2d   :  { %2876 = vmatmul.msk.f32.gmra.mxu3 %vm117_vm0, %v3538_v43 }
  0x32   :  { %2853 = vmatmul.msk.f32.gmra.mxu0 %vm117_vm0, %v3560_v51 }
  0x33   :  { %2861 = vmatmul.msk.f32.gmra.mxu1 %vm117_vm0, %v3562_v52 }
  0x34   :  { %2869 = vmatmul.msk.f32.gmra.mxu2 %vm117_vm0, %v3564_v53 }
  0x35   :  { %2877 = vmatmul.msk.f32.gmra.mxu3 %vm117_vm0, %v3566_v54 }
  0x3a   :  { %2854 = vmatmul.msk.f32.gmra.mxu0 %vm117_vm0, %v3588_v59 }
  0x3b   :  { %2862 = vmatmul.msk.f32.gmra.mxu1 %vm117_vm0, %v3590_v60 }
  0x3c   :  { %2870 = vmatmul.msk.f32.gmra.mxu2 %vm117_vm0, %v3592_v61 }
  0x3d   :  { %2878 = vmatmul.msk.f32.gmra.mxu3 %vm117_vm0, %v3594_v62 }
  0x42   :  { %2855 = vmatmul.msk.f32.gmra.mxu0 %vm117_vm0, %v3616_v9 }
  0x43   :  { %2863 = vmatmul.msk.f32.gmra.mxu1 %vm117_vm0, %v3618_v10 }
  0x44   :  { %2871 = vmatmul.msk.f32.gmra.mxu2 %vm117_vm0, %v3620_v11 }
  0x45   :  { %2879 = vmatmul.msk.f32.gmra.mxu3 %vm117_vm0, %v3622_v12 }
  0x4b   :  { %2880 = vmatmul.msk.f32.vlgmr.msrb.gmra.mxu1 %vm117_vm0, %v3405_v3 }
  0x4c   :  { %2912 = vmatmul.msk.f32.vlgmr.msrb.gmra.mxu2 %vm117_vm0, %v3405_v3 }
  0x4d   :  { %2944 = vmatmul.msk.f32.vlgmr.msrb.gmra.mxu3 %vm117_vm0, %v3405_v3  ;;  %v1070_v3 = vld [vmem:[#allocation2 + $0x50] sm:$0xff] }
  0x4e   :  { %1210 = vmatpush.msrb.mxu0 %v1070_v3 }
  0x50   :  { %1211 = vmatpush.msrb.mxu0 %v1069_v28 }
  0x52   :  { %1212 = vmatpush.msrb.mxu0 %v1068_v29 }
  0x53   :  { %2881 = vmatmul.msk.f32.gmra.mxu1 %vm117_vm0, %v3448_v16 }
  0x54   :  { %2913 = vmatmul.msk.f32.gmra.mxu2 %vm117_vm0, %v3448_v16  ;;  %1213 = vmatpush.msrb.mxu0 %v1067_v30  ;;  %v1083_v30 = vld [vmem:[#allocation2 + $0xb8] sm:$0xff] }
  0x55   :  { %2945 = vmatmul.msk.f32.gmra.mxu3 %vm117_vm0, %v3448_v16  ;;  %v1088_v16 = vld [vmem:[#allocation2 + $0xe0] sm:$0xff] }
  0x56   :  { %1321 = vmatpush.msra.mxu1 %v1088_v16  ;;  %1214 = vmatpush.msrb.mxu0 %v1066_v36 }
  0x58   :  { %1215 = vmatpush.msrb.mxu0 %v1065_v37  ;;  %1322 = vmatpush.msra.mxu1 %v1087_v47 }
  0x5a   :  { %1216 = vmatpush.msrb.mxu0 %v1064_v38 }
  0x5b   :  { %2882 = vmatmul.msk.f32.gmra.mxu1 %vm117_vm0, %v3476_v24 }
  0x5c   :  { %2914 = vmatmul.msk.f32.gmra.mxu2 %vm117_vm0, %v3476_v24  ;;  %1217 = vmatpush.msrb.mxu0 %v1063_v39 }
  0x5d   :  { %2946 = vmatmul.msk.f32.gmra.mxu3 %vm117_vm0, %v3476_v24  ;;  %v1062_v24 = vld [vmem:[#allocation2 + $0x10] sm:$0xff] }
  0x5e   :  { %1218 = vmatpush.msrb.mxu0 %v1062_v24 }
  0x60   :  { %1219 = vmatpush.msrb.mxu0 %v1061_v44  ;;  %v1082_v44 = vld [vmem:[#allocation2 + $0xb0] sm:$0xff] }
  0x62   :  { %1220 = vmatpush.msrb.mxu0 %v1060_v45 }
  0x63   :  { %2883 = vmatmul.msk.f32.gmra.mxu1 %vm117_vm0, %v3504_v32 }
  0x64   :  { %2915 = vmatmul.msk.f32.gmra.mxu2 %vm117_vm0, %v3504_v32 }
  0x65   :  { %2947 = vmatmul.msk.f32.gmra.mxu3 %vm117_vm0, %v3504_v32  ;;  %v1102_v32 = vld [vmem:[#allocation2 + $0x150] sm:$0xff] }
  0x66   :  { %1436 = vmatpush.msra.mxu2 %v1102_v32 }
  0x68   :  { %1437 = vmatpush.msra.mxu2 %v1101_v56 }
  0x6b   :  { %2884 = vmatmul.msk.f32.gmra.mxu1 %vm117_vm0, %v3532_v40 }
  0x6c   :  { %2916 = vmatmul.msk.f32.gmra.mxu2 %vm117_vm0, %v3532_v40 }
  0x6d   :  { %2948 = vmatmul.msk.f32.gmra.mxu3 %vm117_vm0, %v3532_v40  ;;  %v1086_v40 = vld [vmem:[#allocation2 + $0xd0] sm:$0xff] }
  0x6e   :  { %1323 = vmatpush.msra.mxu1 %v1086_v40 }
  0x70   :  { %1324 = vmatpush.msra.mxu1 %v1085_v0 }
  0x72   :  { %1325 = vmatpush.msra.mxu1 %v1084_v15 }
  0x73   :  { %2885 = vmatmul.msk.f32.gmra.mxu1 %vm117_vm0, %v3560_v51 }
  0x74   :  { %2917 = vmatmul.msk.f32.gmra.mxu2 %vm117_vm0, %v3560_v51  ;;  %1326 = vmatpush.msra.mxu1 %v1083_v30 }
  0x75   :  { %2949 = vmatmul.msk.f32.gmra.mxu3 %vm117_vm0, %v3560_v51 }
  0x76   :  { %1327 = vmatpush.msra.mxu1 %v1082_v44 }
  0x7b   :  { %2886 = vmatmul.msk.f32.gmra.mxu1 %vm117_vm0, %v3588_v59 }
  0x7c   :  { %2918 = vmatmul.msk.f32.gmra.mxu2 %vm117_vm0, %v3588_v59 }
  0x7d   :  { %2950 = vmatmul.msk.f32.gmra.mxu3 %vm117_vm0, %v3588_v59 }
  0x83   :  { %2887 = vmatmul.msk.f32.gmra.mxu1 %vm117_vm0, %v3616_v9 }
  0x84   :  { %2919 = vmatmul.msk.f32.gmra.mxu2 %vm117_vm0, %v3616_v9 }
  0x85   :  { %2951 = vmatmul.msk.f32.gmra.mxu3 %vm117_vm0, %v3616_v9 }
  0x87   :  { %v231_v50 = vpop.f32.mrf.mxu0 }
  0x88   :  { %v3688_v51 = vpop.f32.mrf.mxu1  ;;  %vm676_vm1 = vcmp.eq.f32.partialorder %v231_v50, %v3686_v49  ;;  %v1081_v50 = vld [vmem:[#allocation2 + $0xa8] sm:$0xff] }
  0x89   :  { %3104 = vmatmul.msk.f32.vlgmr.msrb.gmra.mxu0 %vm676_vm1, %v5434_v55  ;;  %1328 = vmatpush.msra.mxu1 %v1081_v50 }
  0x8b   :  { %2888 = vmatmul.msk.f32.gmra.mxu1 %vm117_vm0, %v3407_v4 }
  0x8c   :  { %2920 = vmatmul.msk.f32.gmra.mxu2 %vm117_vm0, %v3407_v4 }
  0x8d   :  { %2952 = vmatmul.msk.f32.gmra.mxu3 %vm117_vm0, %v3407_v4 }
  0x8f   :  { %v3698_v57 = vpop.f32.mrf.mxu2  ;;  %v234_v59 = vpop.f32.mrf.mxu0 }
  0x90   :  { %v3700_v58 = vpop.f32.mrf.mxu3  ;;  %vm740_vm2 = vcmp.eq.f32.partialorder %v3698_v57, %v3686_v49  ;;  %v3706_v63 = vpop.f32.mrf.mxu1  ;;  %vm680_vm4 = vcmp.eq.f32.partialorder %v234_v59, %v3686_v49 }
  0x91   :  { %vm772_vm3 = vcmp.eq.f32.partialorder %v3700_v58, %v3686_v49  ;;  %3105 = vmatmul.msk.f32.gmra.mxu0 %vm680_vm4, %v5434_v55 }
  0x93   :  { %2889 = vmatmul.msk.f32.gmra.mxu1 %vm117_vm0, %v3450_v17 }
  0x94   :  { %2921 = vmatmul.msk.f32.gmra.mxu2 %vm117_vm0, %v3450_v17 }
  0x95   :  { %2953 = vmatmul.msk.f32.gmra.mxu3 %vm117_vm0, %v3450_v17  ;;  %v1100_v17 = vld [vmem:[#allocation2 + $0x140] sm:$0xff] }
  0x96   :  { %1438 = vmatpush.msra.mxu2 %v1100_v17 }
  0x97   :  { %v3716_v4 = vpop.f32.mrf.mxu2  ;;  %v237_v2 = vpop.f32.mrf.mxu0 }
  0x98   :  { %v3718_v1 = vpop.f32.mrf.mxu3  ;;  %vm744_vm5 = vcmp.eq.f32.partialorder %v3716_v4, %v3686_v49  ;;  %v3724_v5 = vpop.f32.mrf.mxu1  ;;  %vm684_vm7 = vcmp.eq.f32.partialorder %v237_v2, %v3686_v49  ;;  %v1080_v2 = vld [vmem:[#allocation2 + $0xa0] sm:$0xff] }
  0x99   :  { %vm776_vm6 = vcmp.eq.f32.partialorder %v3718_v1, %v3686_v49  ;;  %3106 = vmatmul.msk.f32.gmra.mxu0 %vm684_vm7, %v5434_v55  ;;  %vm708_vm7 = vcmp.eq.f32.partialorder %v3688_v51, %v3686_v49  ;;  %1329 = vmatpush.msra.mxu1 %v1080_v2 }
  0x9b   :  { %2890 = vmatmul.msk.f32.gmra.mxu1 %vm117_vm0, %v3478_v25 }
  0x9c   :  { %2922 = vmatmul.msk.f32.gmra.mxu2 %vm117_vm0, %v3478_v25 }
  0x9d   :  { %2954 = vmatmul.msk.f32.gmra.mxu3 %vm117_vm0, %v3478_v25 }
  0x9f   :  { %v3734_v6 = vpop.f32.mrf.mxu2  ;;  %v240_v13 = vpop.f32.mrf.mxu0 }
  0xa0   :  { %v3736_v9 = vpop.f32.mrf.mxu3  ;;  %vm748_vm8 = vcmp.eq.f32.partialorder %v3734_v6, %v3686_v49  ;;  %v3742_v14 = vpop.f32.mrf.mxu1  ;;  %vm688_vm10 = vcmp.eq.f32.partialorder %v240_v13, %v3686_v49 }
  0xa1   :  { %vm780_vm9 = vcmp.eq.f32.partialorder %v3736_v9, %v3686_v49  ;;  %3107 = vmatmul.msk.f32.gmra.mxu0 %vm688_vm10, %v5434_v55 }
  0xa3   :  { %2891 = vmatmul.msk.f32.gmra.mxu1 %vm117_vm0, %v3506_v33 }
  0xa4   :  { %2923 = vmatmul.msk.f32.gmra.mxu2 %vm117_vm0, %v3506_v33 }
  0xa5   :  { %2955 = vmatmul.msk.f32.gmra.mxu3 %vm117_vm0, %v3506_v33  ;;  %v1099_v33 = vld [vmem:[#allocation2 + $0x138] sm:$0xff] }
  0xa6   :  { %1439 = vmatpush.msra.mxu2 %v1099_v33 }
  0xa7   :  { %v3752_v25 = vpop.f32.mrf.mxu2  ;;  %v243_v21 = vpop.f32.mrf.mxu0 }
  0xa8   :  { %v3754_v20 = vpop.f32.mrf.mxu3  ;;  %vm752_vm11 = vcmp.eq.f32.partialorder %v3752_v25, %v3686_v49  ;;  %v3760_v22 = vpop.f32.mrf.mxu1  ;;  %vm692_vm13 = vcmp.eq.f32.partialorder %v243_v21, %v3686_v49  ;;  %v1079_v21 = vld [vmem:[#allocation2 + $0x98] sm:$0xff] }
  0xa9   :  { %vm784_vm12 = vcmp.eq.f32.partialorder %v3754_v20, %v3686_v49  ;;  %3108 = vmatmul.msk.f32.gmra.mxu0 %vm692_vm13, %v5434_v55  ;;  %1330 = vmatpush.msra.mxu1 %v1079_v21 }
  0xab   :  { %2892 = vmatmul.msk.f32.gmra.mxu1 %vm117_vm0, %v3534_v41 }
  0xac   :  { %2924 = vmatmul.msk.f32.gmra.mxu2 %vm117_vm0, %v3534_v41 }
  0xad   :  { %2956 = vmatmul.msk.f32.gmra.mxu3 %vm117_vm0, %v3534_v41 }
  0xaf   :  { %v3770_v23 = vpop.f32.mrf.mxu2  ;;  %v246_v28 = vpop.f32.mrf.mxu0 }
  0xb0   :  { %v3772_v3 = vpop.f32.mrf.mxu3  ;;  %vm756_vm14 = vcmp.eq.f32.partialorder %v3770_v23, %v3686_v49  ;;  %v3778_v29 = vpop.f32.mrf.mxu1  ;;  %vm696_vm1 = vcmp.eq.f32.partialorder %v246_v28, %v3686_v49 }
  0xb1   :  { %vm788_vm15 = vcmp.eq.f32.partialorder %v3772_v3, %v3686_v49  ;;  %3109 = vmatmul.msk.f32.gmra.mxu0 %vm696_vm1, %v5434_v55 }
  0xb3   :  { %2893 = vmatmul.msk.f32.gmra.mxu1 %vm117_vm0, %v3562_v52 }
  0xb4   :  { %2925 = vmatmul.msk.f32.gmra.mxu2 %vm117_vm0, %v3562_v52 }
  0xb5   :  { %2957 = vmatmul.msk.f32.gmra.mxu3 %vm117_vm0, %v3562_v52  ;;  %v1098_v52 = vld [vmem:[#allocation2 + $0x130] sm:$0xff] }
  0xb6   :  { %1440 = vmatpush.msra.mxu2 %v1098_v52 }
  0xb7   :  { %v3788_v41 = vpop.f32.mrf.mxu2  ;;  %v249_v36 = vpop.f32.mrf.mxu0 }
  0xb8   :  { %v3790_v31 = vpop.f32.mrf.mxu3  ;;  %vm760_vm4 = vcmp.eq.f32.partialorder %v3788_v41, %v3686_v49  ;;  %v3796_v16 = vpop.f32.mrf.mxu1  ;;  %vm700_vm10 = vcmp.eq.f32.partialorder %v249_v36, %v3686_v49  ;;  %v1078_v36 = vld [vmem:[#allocation2 + $0x90] sm:$0xff] }
  0xb9   :  { %3110 = vmatmul.msk.f32.gmra.mxu0 %vm700_vm10, %v5434_v55  ;;  %1331 = vmatpush.msra.mxu1 %v1078_v36 }
  0xbb   :  { %2894 = vmatmul.msk.f32.gmra.mxu1 %vm117_vm0, %v3590_v60 }
  0xbc   :  { %2926 = vmatmul.msk.f32.gmra.mxu2 %vm117_vm0, %v3590_v60 }
  0xbd   :  { %2958 = vmatmul.msk.f32.gmra.mxu3 %vm117_vm0, %v3590_v60 }
  0xbf   :  { %v3806_v37 = vpop.f32.mrf.mxu2  ;;  %v252_v39 = vpop.f32.mrf.mxu0 }
  0xc0   :  { %v3808_v38 = vpop.f32.mrf.mxu3  ;;  %vm764_vm13 = vcmp.eq.f32.partialorder %v3806_v37, %v3686_v49  ;;  %v3814_v24 = vpop.f32.mrf.mxu1  ;;  %vm704_vm10 = vcmp.eq.f32.partialorder %v252_v39, %v3686_v49  ;;  %v3277_v37 = vld [vmem:[%s5428_s4] ss:$0 sm:$0xff] }
  0xc1   :  { %3111 = vmatmul.msk.f32.gmra.mxu0 %vm704_vm10, %v5434_v55  ;;  %vm716_vm10 = vcmp.eq.f32.partialorder %v3724_v5, %v3686_v49  ;;  %1981 = vrot.lane.b32.xlu1 %v3277_v37, %s3337_s3 }
  0xc3   :  { %2895 = vmatmul.msk.f32.gmra.mxu1 %vm117_vm0, %v3618_v10 }
  0xc4   :  { %2927 = vmatmul.msk.f32.gmra.mxu2 %vm117_vm0, %v3618_v10 }
  0xc5   :  { %2959 = vmatmul.msk.f32.gmra.mxu3 %vm117_vm0, %v3618_v10  ;;  %v1097_v10 = vld [vmem:[#allocation2 + $0x128] sm:$0xff] }
  0xc6   :  { %1441 = vmatpush.msra.mxu2 %v1097_v10  ;;  %v1077_v10 = vld [vmem:[#allocation2 + $0x88] sm:$0xff] }
  0xc7   :  { %v3824_v60 = vpop.f32.mrf.mxu2  ;;  %1332 = vmatpush.msra.mxu1 %v1077_v10 }
  0xc8   :  { %v3826_v45 = vpop.f32.mrf.mxu3  ;;  %vm768_vm1 = vcmp.eq.f32.partialorder %v3824_v60, %v3686_v49  ;;  %v3832_v46 = vpop.f32.mrf.mxu1  ;;  %v4091_v60 = vperm.slane %v3677_v48, 2 }
  0xc9   :  { %3112 = vmatmul.msk.f32.gmra.mxu0 %vm708_vm7, %v5434_v55  ;;  %vm712_vm7 = vcmp.eq.f32.partialorder %v3706_v63, %v3686_v49 }
  0xcb   :  { %2896 = vmatmul.msk.f32.gmra.mxu1 %vm117_vm0, %v3415_v7 }
  0xcc   :  { %2928 = vmatmul.msk.f32.gmra.mxu2 %vm117_vm0, %v3415_v7 }
  0xcd   :  { %2960 = vmatmul.msk.f32.gmra.mxu3 %vm117_vm0, %v3415_v7 }
  0xcf   :  { %v3843_v47 = vpop.f32.mrf.mxu2 }
  0xd0   :  { %v3845_v32 = vpop.f32.mrf.mxu3  ;;  %v3847_v40 = vpop.f32.mrf.mxu1 }
  0xd1   :  { %3113 = vmatmul.msk.f32.gmra.mxu0 %vm712_vm7, %v5434_v55  ;;  %vm724_vm7 = vcmp.eq.f32.partialorder %v3760_v22, %v3686_v49 }
  0xd3   :  { %2897 = vmatmul.msk.f32.gmra.mxu1 %vm117_vm0, %v3452_v18 }
  0xd4   :  { %2929 = vmatmul.msk.f32.gmra.mxu2 %vm117_vm0, %v3452_v18 }
  0xd5   :  { %2961 = vmatmul.msk.f32.gmra.mxu3 %vm117_vm0, %v3452_v18  ;;  %v1096_v18 = vld [vmem:[#allocation2 + $0x120] sm:$0xff] }
  0xd6   :  { %1442 = vmatpush.msra.mxu2 %v1096_v18 }
  0xd7   :  { %v3858_v7 = vpop.f32.mrf.mxu2 }
  0xd8   :  { %v3860_v51 = vpop.f32.mrf.mxu3  ;;  %v3862_v56 = vpop.f32.mrf.mxu1 }
  0xd9   :  { %3114 = vmatmul.msk.f32.gmra.mxu0 %vm716_vm10, %v5434_v55  ;;  %vm720_vm10 = vcmp.eq.f32.partialorder %v3742_v14, %v3686_v49 }
  0xdb   :  { %2898 = vmatmul.msk.f32.gmra.mxu1 %vm117_vm0, %v3480_v26 }
  0xdc   :  { %2930 = vmatmul.msk.f32.gmra.mxu2 %vm117_vm0, %v3480_v26 }
  0xdd   :  { %2962 = vmatmul.msk.f32.gmra.mxu3 %vm117_vm0, %v3480_v26 }
  0xdf   :  { %v3873_v59 = vpop.f32.mrf.mxu2 }
  0xe0   :  { %v3875_v63 = vpop.f32.mrf.mxu3  ;;  %v3877_v0 = vpop.f32.mrf.mxu1 }
  0xe1   :  { %3115 = vmatmul.msk.f32.gmra.mxu0 %vm720_vm10, %v5434_v55  ;;  %vm728_vm10 = vcmp.eq.f32.partialorder %v3778_v29, %v3686_v49 }
  0xe3   :  { %2899 = vmatmul.msk.f32.gmra.mxu1 %vm117_vm0, %v3508_v34 }
  0xe4   :  { %2931 = vmatmul.msk.f32.gmra.mxu2 %vm117_vm0, %v3508_v34 }
  0xe5   :  { %2963 = vmatmul.msk.f32.gmra.mxu3 %vm117_vm0, %v3508_v34  ;;  %v1095_v34 = vld [vmem:[#allocation2 + $0x118] sm:$0xff] }
  0xe6   :  { %1443 = vmatpush.msra.mxu2 %v1095_v34  ;;  %v1076_v34 = vld [vmem:[#allocation2 + $0x80] sm:$0xff] }
  0xe7   :  { %v3888_v26 = vpop.f32.mrf.mxu2  ;;  %1333 = vmatpush.msra.mxu1 %v1076_v34 }
  0xe8   :  { %v3890_v5 = vpop.f32.mrf.mxu3  ;;  %v3892_v17 = vpop.f32.mrf.mxu1 }
  0xe9   :  { %3116 = vmatmul.msk.f32.gmra.mxu0 %vm724_vm7, %v5434_v55  ;;  %vm732_vm7 = vcmp.eq.f32.partialorder %v3796_v16, %v3686_v49 }
  0xeb   :  { %2900 = vmatmul.msk.f32.gmra.mxu1 %vm117_vm0, %v3536_v42 }
  0xec   :  { %2932 = vmatmul.msk.f32.gmra.mxu2 %vm117_vm0, %v3536_v42 }
  0xed   :  { %2964 = vmatmul.msk.f32.gmra.mxu3 %vm117_vm0, %v3536_v42 }
  0xef   :  { %v3903_v13 = vpop.f32.mrf.mxu2 }
  0xf0   :  { %v3905_v14 = vpop.f32.mrf.mxu3  ;;  %v3907_v15 = vpop.f32.mrf.mxu1 }
  0xf1   :  { %3117 = vmatmul.msk.f32.gmra.mxu0 %vm728_vm10, %v5434_v55  ;;  %vm736_vm10 = vcmp.eq.f32.partialorder %v3814_v24, %v3686_v49 }
  0xf3   :  { %2901 = vmatmul.msk.f32.gmra.mxu1 %vm117_vm0, %v3564_v53 }
  0xf4   :  { %2933 = vmatmul.msk.f32.gmra.mxu2 %vm117_vm0, %v3564_v53 }
  0xf5   :  { %2965 = vmatmul.msk.f32.gmra.mxu3 %vm117_vm0, %v3564_v53  ;;  %v1094_v53 = vld [vmem:[#allocation2 + $0x110] sm:$0xff] }
  0xf6   :  { %1444 = vmatpush.msra.mxu2 %v1094_v53 }
  0xf7   :  { %v3918_v42 = vpop.f32.mrf.mxu2 }
  0xf8   :  { %v3920_v22 = vpop.f32.mrf.mxu3  ;;  %v3922_v33 = vpop.f32.mrf.mxu1 }
  0xf9   :  { %3118 = vmatmul.msk.f32.gmra.mxu0 %vm732_vm7, %v5434_v55  ;;  %vm690_vm7 = vcmp.eq.f32.partialorder %v3888_v26, %v4091_v60 }
  0xfb   :  { %2902 = vmatmul.msk.f32.gmra.mxu1 %vm117_vm0, %v3592_v61 }
  0xfc   :  { %2934 = vmatmul.msk.f32.gmra.mxu2 %vm117_vm0, %v3592_v61 }
  0xfd   :  { %2966 = vmatmul.msk.f32.gmra.mxu3 %vm117_vm0, %v3592_v61 }
  0xff   :  { %v3933_v28 = vpop.f32.mrf.mxu2 }
 0x100   :  { %v3935_v29 = vpop.f32.mrf.mxu3  ;;  %v3937_v30 = vpop.f32.mrf.mxu1 }
 0x101   :  { %3119 = vmatmul.msk.f32.gmra.mxu0 %vm736_vm10, %v5434_v55 }
 0x103   :  { %2903 = vmatmul.msk.f32.gmra.mxu1 %vm117_vm0, %v3620_v11 }
 0x104   :  { %2935 = vmatmul.msk.f32.gmra.mxu2 %vm117_vm0, %v3620_v11 }
 0x105   :  { %2967 = vmatmul.msk.f32.gmra.mxu3 %vm117_vm0, %v3620_v11  ;;  %v1093_v11 = vld [vmem:[#allocation2 + $0x108] sm:$0xff] }
 0x106   :  { %1445 = vmatpush.msra.mxu2 %v1093_v11  ;;  %v4056_v41 = vpop.f32.mrf.mxu0 }
 0x107   :  { %v3948_v61 = vpop.f32.mrf.mxu2  ;;  %5449 = vst [vmem:[#allocation8_spill] sm:$0xff] %v4056_v41 }
 0x108   :  { %v3950_v16 = vpop.f32.mrf.mxu3  ;;  %v3952_v52 = vpop.f32.mrf.mxu1 }
 0x109   :  { %3120 = vmatmul.msk.f32.gmra.mxu0 %vm740_vm2, %v5434_v55 }
 0x10b   :  { %2904 = vmatmul.msk.f32.gmra.mxu1 %vm117_vm0, %v3417_v8 }
 0x10c   :  { %2936 = vmatmul.msk.f32.gmra.mxu2 %vm117_vm0, %v3417_v8 }
 0x10d   :  { %2968 = vmatmul.msk.f32.gmra.mxu3 %vm117_vm0, %v3417_v8 }
 0x10e   :  { %v4088_v34 = vpop.f32.mrf.mxu0 }
 0x10f   :  { %v3964_v39 = vpop.f32.mrf.mxu2  ;;  %5450 = vst [vmem:[#allocation9_spill] sm:$0xff] %v4088_v34 }
 0x110   :  { %v3966_v24 = vpop.f32.mrf.mxu3  ;;  %v3968_v44 = vpop.f32.mrf.mxu1 }
 0x111   :  { %3121 = vmatmul.msk.f32.gmra.mxu0 %vm744_vm5, %v5434_v55 }
 0x113   :  { %2905 = vmatmul.msk.f32.gmra.mxu1 %vm117_vm0, %v3454_v19 }
 0x114   :  { %2937 = vmatmul.msk.f32.gmra.mxu2 %vm117_vm0, %v3454_v19 }
 0x115   :  { %2969 = vmatmul.msk.f32.gmra.mxu3 %vm117_vm0, %v3454_v19  ;;  %v1092_v19 = vld [vmem:[#allocation2 + $0x100] sm:$0xff] }
 0x116   :  { %1446 = vmatpush.msra.mxu2 %v1092_v19  ;;  %v4086_v19 = vperm.slane %v3677_v48, 1  ;;  %v4119_v58 = vpop.f32.mrf.mxu0 }
 0x117   :  { %v3980_v8 = vpop.f32.mrf.mxu2 }
 0x118   :  { %v3982_v57 = vpop.f32.mrf.mxu3  ;;  %v3984_v50 = vpop.f32.mrf.mxu1  ;;  %vm677_vm5 = vcmp.eq.f32.partialorder %v3832_v46, %v4086_v19  ;;  %vm693_vm10 = vcmp.eq.f32.partialorder %v3892_v17, %v4086_v19 }
 0x119   :  { %3122 = vmatmul.msk.f32.gmra.mxu0 %vm748_vm8, %v5434_v55  ;;  %vm678_vm8 = vcmp.eq.f32.partialorder %v3843_v47, %v4091_v60 }
 0x11b   :  { %2906 = vmatmul.msk.f32.gmra.mxu1 %vm117_vm0, %v3482_v27 }
 0x11c   :  { %2938 = vmatmul.msk.f32.gmra.mxu2 %vm117_vm0, %v3482_v27 }
 0x11d   :  { %2970 = vmatmul.msk.f32.gmra.mxu3 %vm117_vm0, %v3482_v27 }
 0x11f   :  { %v3996_v4 = vpop.f32.mrf.mxu2 }
 0x120   :  { %v3998_v18 = vpop.f32.mrf.mxu3  ;;  %v4000_v2 = vpop.f32.mrf.mxu1 }
 0x121   :  { %3123 = vmatmul.msk.f32.gmra.mxu0 %vm752_vm11, %v5434_v55 }
 0x123   :  { %2907 = vmatmul.msk.f32.gmra.mxu1 %vm117_vm0, %v3510_v35 }
 0x124   :  { %2939 = vmatmul.msk.f32.gmra.mxu2 %vm117_vm0, %v3510_v35 }
 0x125   :  { %2971 = vmatmul.msk.f32.gmra.mxu3 %vm117_vm0, %v3510_v35 }
 0x127   :  { %v4012_v27 = vpop.f32.mrf.mxu2 }
 0x128   :  { %v4014_v6 = vpop.f32.mrf.mxu3  ;;  %v4016_v21 = vpop.f32.mrf.mxu1 }
 0x129   :  { %3124 = vmatmul.msk.f32.gmra.mxu0 %vm756_vm14, %v5434_v55  ;;  %vm682_vm14 = vcmp.eq.f32.partialorder %v3858_v7, %v4091_v60  ;;  %v4148_v7 = vpop.f32.mrf.mxu0 }
 0x12b   :  { %2908 = vmatmul.msk.f32.gmra.mxu1 %vm117_vm0, %v3538_v43 }
 0x12c   :  { %2940 = vmatmul.msk.f32.gmra.mxu2 %vm117_vm0, %v3538_v43 }
 0x12d   :  { %2972 = vmatmul.msk.f32.gmra.mxu3 %vm117_vm0, %v3538_v43 }
 0x12f   :  { %v4028_v35 = vpop.f32.mrf.mxu2 }
 0x130   :  { %v4030_v25 = vpop.f32.mrf.mxu3  ;;  %v4032_v53 = vpop.f32.mrf.mxu1 }
 0x131   :  { %3125 = vmatmul.msk.f32.gmra.mxu0 %vm760_vm4, %v5434_v55 }
 0x133   :  { %2909 = vmatmul.msk.f32.gmra.mxu1 %vm117_vm0, %v3566_v54 }
 0x134   :  { %2941 = vmatmul.msk.f32.gmra.mxu2 %vm117_vm0, %v3566_v54 }
 0x135   :  { %2973 = vmatmul.msk.f32.gmra.mxu3 %vm117_vm0, %v3566_v54 }
 0x137   :  { %v4044_v43 = vpop.f32.mrf.mxu2 }
 0x138   :  { %v4046_v23 = vpop.f32.mrf.mxu3  ;;  %v4048_v36 = vpop.f32.mrf.mxu1 }
 0x139   :  { %3126 = vmatmul.msk.f32.gmra.mxu0 %vm764_vm13, %v5434_v55  ;;  %vm686_vm13 = vcmp.eq.f32.partialorder %v3873_v59, %v4091_v60 }
 0x13b   :  { %2910 = vmatmul.msk.f32.gmra.mxu1 %vm117_vm0, %v3594_v62 }
 0x13c   :  { %2942 = vmatmul.msk.f32.gmra.mxu2 %vm117_vm0, %v3594_v62 }
 0x13d   :  { %2974 = vmatmul.msk.f32.gmra.mxu3 %vm117_vm0, %v3594_v62  ;;  %v4079_v62 = vperm.slane %v3677_v48, 3  ;;  %v5436_v48 = vmov 0.0  }
 0x13f   :  { %v4062_v54 = vpop.f32.mrf.mxu2  ;;  %vm679_vm2 = vcmp.eq.f32.partialorder %v3845_v32, %v4079_v62  ;;  %vm683_vm11 = vcmp.eq.f32.partialorder %v3860_v51, %v4079_v62  ;;  %vm687_vm4 = vcmp.eq.f32.partialorder %v3875_v63, %v4079_v62 }
 0x140   :  { %v4064_v11 = vpop.f32.mrf.mxu3  ;;  %v4069_v10 = vpop.f32.mrf.mxu1  ;;  %v2979_v34 = vsel %vm679_vm2, 1.0, %v5436_v48  ;;  %v2983_v47 = vsel %vm683_vm11, 1.0, %v5436_v48  ;;  %v2987_v63 = vsel %vm687_vm4, 1.0, %v5436_v48  ;;  %vm694_vm2 = vcmp.eq.f32.partialorder %v3903_v13, %v4091_v60 }
 0x141   :  { %3127 = vmatmul.msk.f32.gmra.mxu0 %vm768_vm1, %v5434_v55  ;;  %vm689_vm1 = vcmp.eq.f32.partialorder %v3877_v0, %v4086_v19  ;;  %vm698_vm11 = vcmp.eq.f32.partialorder %v3918_v42, %v4091_v60  ;;  %vm5454_vm4 = vcmp.eq.f32.partialorder %v3808_v38, %v3686_v49 }
 0x143   :  { %2911 = vmatmul.msk.f32.gmra.mxu1 %vm117_vm0, %v3622_v12 }
 0x144   :  { %2943 = vmatmul.msk.f32.gmra.mxu2 %vm117_vm0, %v3622_v12 }
 0x145   :  { %2975 = vmatmul.msk.f32.gmra.mxu3 %vm117_vm0, %v3622_v12  ;;  %v5452_v12 = vmov 1.0  }
 0x147   :  { %v4093_v37 = vpop.f32.mrf.mxu2 }
 0x148   :  { %v4095_v55 = vpop.f32.mrf.mxu3  ;;  %v4099_v41 = vpop.f32.mrf.mxu1 }
 0x149   :  { %5451 = vst [vmem:[#allocation10_spill] sm:$0xff] %v4099_v41  ;;  %3128 = vmatmul.msk.f32.gmra.mxu0 %vm772_vm3, %v5452_v12  ;;  %vm681_vm3 = vcmp.eq.f32.partialorder %v3847_v40, %v4086_v19  ;;  %v3278_v40 = vld [vmem:[%s5429_s5] ss:$0 sm:$0xff]  ;;  %s3339_s5 = smov 127  }
 0x14a   :  { %2019 = vrot.lane.b32.xlu2 %v3278_v40, %s3337_s3  ;;  %v4179_v40 = vpop.f32.mrf.mxu0 }
 0x14b   :  { %3136 = vmatmul.msk.f32.vlgmr.msra.gmra.mxu1 %vm677_vm5, %v5452_v12  ;;  %vm697_vm5 = vcmp.eq.f32.partialorder %v3907_v15, %v4086_v19 }
 0x14c   :  { %3168 = vmatmul.msk.f32.vlgmr.msra.gmra.mxu2 %vm678_vm8, %v5452_v12  ;;  %vm5453_vm8 = vcmp.eq.f32.partialorder %v3790_v31, %v3686_v49 }
 0x14d   :  { %3200 = vmatmul.msk.f32.vlgmr.msra.gmra.mxu3 %vm117_vm0, %v2979_v34 }
 0x14f   :  { %v4113_v32 = vpop.f32.mrf.mxu2 }
 0x150   :  { %v4115_v46 = vpop.f32.mrf.mxu3  ;;  %v4121_v41 = vpop.f32.mrf.mxu1 }
 0x151   :  { %3129 = vmatmul.msk.f32.gmra.mxu0 %vm776_vm6, %v5452_v12  ;;  %vm685_vm6 = vcmp.eq.f32.partialorder %v3862_v56, %v4086_v19 }
 0x153   :  { %3137 = vmatmul.msk.f32.gmra.mxu1 %vm681_vm3, %v5452_v12  ;;  %vm703_vm3 = vcmp.eq.f32.partialorder %v3935_v29, %v4079_v62 }
 0x154   :  { %3169 = vmatmul.msk.f32.gmra.mxu2 %vm682_vm14, %v5452_v12  ;;  %vm701_vm14 = vcmp.eq.f32.partialorder %v3922_v33, %v4086_v19  ;;  %v3003_v42 = vsel %vm703_vm3, 1.0, %v5436_v48  ;;  %vm717_vm3 = vcmp.eq.f32.partialorder %v3984_v50, %v4086_v19 }
 0x155   :  { %3201 = vmatmul.msk.f32.gmra.mxu3 %vm117_vm0, %v2983_v47 }
 0x157   :  { %v4135_v51 = vpop.f32.mrf.mxu2 }
 0x158   :  { %v4137_v34 = vpop.f32.mrf.mxu3  ;;  %v4141_v1 = vpop.f32.mrf.mxu1 }
 0x159   :  { %3130 = vmatmul.msk.f32.gmra.mxu0 %vm780_vm9, %v5452_v12  ;;  %vm691_vm9 = vcmp.eq.f32.partialorder %v3890_v5, %v4079_v62 }
 0x15a   :  { %v2991_v59 = vsel %vm691_vm9, 1.0, %v5436_v48  ;;  %vm705_vm9 = vcmp.eq.f32.partialorder %v3937_v30, %v4086_v19 }
 0x15b   :  { %3138 = vmatmul.msk.f32.gmra.mxu1 %vm685_vm6, %v5452_v12  ;;  %vm702_vm6 = vcmp.eq.f32.partialorder %v3933_v28, %v4091_v60 }
 0x15c   :  { %3170 = vmatmul.msk.f32.gmra.mxu2 %vm686_vm13, %v5452_v12  ;;  %vm707_vm13 = vcmp.eq.f32.partialorder %v3950_v16, %v4079_v62 }
 0x15d   :  { %3202 = vmatmul.msk.f32.gmra.mxu3 %vm117_vm0, %v2987_v63  ;;  %v3007_v28 = vsel %vm707_vm13, 1.0, %v5436_v48  ;;  %vm722_vm13 = vcmp.eq.f32.partialorder %v4012_v27, %v4091_v60 }
 0x15f   :  { %v4161_v56 = vpop.f32.mrf.mxu2 }
 0x160   :  { %v4163_v47 = vpop.f32.mrf.mxu3  ;;  %v4167_v9 = vpop.f32.mrf.mxu1 }
 0x161   :  { %3131 = vmatmul.msk.f32.gmra.mxu0 %vm784_vm12, %v5452_v12  ;;  %vm695_vm12 = vcmp.eq.f32.partialorder %v3905_v14, %v4079_v62  ;;  %v4203_v14 = vpop.f32.mrf.mxu0 }
 0x162   :  { %v2995_v26 = vsel %vm695_vm12, 1.0, %v5436_v48  ;;  %vm711_vm12 = vcmp.eq.f32.partialorder %v3966_v24, %v4079_v62 }
 0x163   :  { %3139 = vmatmul.msk.f32.gmra.mxu1 %vm689_vm1, %v5452_v12  ;;  %vm5455_vm1 = vcmp.eq.f32.partialorder %v3826_v45, %v3686_v49  ;;  %v3011_v45 = vsel %vm711_vm12, 1.0, %v5436_v48  ;;  %vm731_vm12 = vcmp.eq.f32.partialorder %v4046_v23, %v4079_v62 }
 0x164   :  { %3171 = vmatmul.msk.f32.gmra.mxu2 %vm690_vm7, %v5452_v12  ;;  %vm706_vm7 = vcmp.eq.f32.partialorder %v3948_v61, %v4091_v60 }
 0x165   :  { %3203 = vmatmul.msk.f32.gmra.mxu3 %vm117_vm0, %v2991_v59 }
 0x167   :  { %v4183_v5 = vpop.f32.mrf.mxu2 }
 0x168   :  { %v4185_v0 = vpop.f32.mrf.mxu3  ;;  %v4189_v20 = vpop.f32.mrf.mxu1 }
 0x169   :  { %3132 = vmatmul.msk.f32.gmra.mxu0 %vm788_vm15, %v5452_v12  ;;  %vm699_vm15 = vcmp.eq.f32.partialorder %v3920_v22, %v4079_v62  ;;  %v4231_v31 = vpop.f32.mrf.mxu0 }
 0x16a   :  { %v2999_v13 = vsel %vm699_vm15, 1.0, %v5436_v48  ;;  %vm715_vm15 = vcmp.eq.f32.partialorder %v3982_v57, %v4079_v62 }
 0x16b   :  { %3140 = vmatmul.msk.f32.gmra.mxu1 %vm693_vm10, %v5452_v12  ;;  %vm709_vm10 = vcmp.eq.f32.partialorder %v3952_v52, %v4086_v19  ;;  %v3015_v52 = vsel %vm715_vm15, 1.0, %v5436_v48  ;;  %vm735_vm15 = vcmp.eq.f32.partialorder %v4064_v11, %v4079_v62 }
 0x16c   :  { %3172 = vmatmul.msk.f32.gmra.mxu2 %vm694_vm2, %v5452_v12  ;;  %vm710_vm2 = vcmp.eq.f32.partialorder %v3964_v39, %v4091_v60 }
 0x16d   :  { %3204 = vmatmul.msk.f32.gmra.mxu3 %vm117_vm0, %v2995_v26 }
 0x16f   :  { %v4205_v63 = vpop.f32.mrf.mxu2 }
 0x170   :  { %v4207_v17 = vpop.f32.mrf.mxu3  ;;  %v4211_v3 = vpop.f32.mrf.mxu1 }
 0x171   :  { %3133 = vmatmul.msk.f32.gmra.mxu0 %vm5453_vm8, %v5452_v12  ;;  %v4257_v33 = vpop.f32.mrf.mxu0  ;;  %vm714_vm8 = vcmp.eq.f32.partialorder %v3980_v8, %v4091_v60 }
 0x173   :  { %3141 = vmatmul.msk.f32.gmra.mxu1 %vm697_vm5, %v5452_v12  ;;  %vm713_vm5 = vcmp.eq.f32.partialorder %v3968_v44, %v4086_v19 }
 0x174   :  { %3173 = vmatmul.msk.f32.gmra.mxu2 %vm698_vm11, %v5452_v12  ;;  %vm719_vm11 = vcmp.eq.f32.partialorder %v3998_v18, %v4079_v62 }
 0x175   :  { %3205 = vmatmul.msk.f32.gmra.mxu3 %vm117_vm0, %v2999_v13  ;;  %v3019_v44 = vsel %vm719_vm11, 1.0, %v5436_v48  ;;  %vm739_vm11 = vcmp.eq.f32.partialorder %v4095_v55, %v4079_v62 }
 0x177   :  { %v4225_v22 = vpop.f32.mrf.mxu2 }
 0x178   :  { %v4227_v59 = vpop.f32.mrf.mxu3  ;;  %v4233_v15 = vpop.f32.mrf.mxu1 }
 0x179   :  { %3134 = vmatmul.msk.f32.gmra.mxu0 %vm5454_vm4, %v5452_v12  ;;  %vm723_vm4 = vcmp.eq.f32.partialorder %v4014_v6, %v4079_v62 }
 0x17a   :  { %v3023_v50 = vsel %vm723_vm4, 1.0, %v5436_v48  ;;  %vm743_vm4 = vcmp.eq.f32.partialorder %v4115_v46, %v4079_v62 }
 0x17b   :  { %3142 = vmatmul.msk.f32.gmra.mxu1 %vm701_vm14, %v5452_v12  ;;  %vm718_vm14 = vcmp.eq.f32.partialorder %v3996_v4, %v4091_v60 }
 0x17c   :  { %3174 = vmatmul.msk.f32.gmra.mxu2 %vm702_vm6, %v5452_v12  ;;  %vm721_vm6 = vcmp.eq.f32.partialorder %v4000_v2, %v4086_v19 }
 0x17d   :  { %3206 = vmatmul.msk.f32.gmra.mxu3 %vm117_vm0, %v3003_v42 }
 0x17f   :  { %v4247_v29 = vpop.f32.mrf.mxu2 }
 0x180   :  { %v4249_v26 = vpop.f32.mrf.mxu3  ;;  %v4253_v38 = vpop.f32.mrf.mxu1 }
 0x181   :  { %3135 = vmatmul.msk.f32.gmra.mxu0 %vm5455_vm1, %v5452_v12  ;;  %vm725_vm1 = vcmp.eq.f32.partialorder %v4016_v21, %v4086_v19  ;;  %v3031_v21 = vsel %vm731_vm12, 1.0, %v5436_v48  ;;  %vm751_vm12 = vcmp.eq.f32.partialorder %v4163_v47, %v4079_v62 }
 0x183   :  { %3143 = vmatmul.msk.f32.gmra.mxu1 %vm705_vm9, %v5452_v12  ;;  %vm727_vm9 = vcmp.eq.f32.partialorder %v4030_v25, %v4079_v62 }
 0x184   :  { %3175 = vmatmul.msk.f32.gmra.mxu2 %vm706_vm7, %v5452_v12  ;;  %vm726_vm7 = vcmp.eq.f32.partialorder %v4028_v35, %v4091_v60  ;;  %v3027_v2 = vsel %vm727_vm9, 1.0, %v5436_v48  ;;  %vm747_vm9 = vcmp.eq.f32.partialorder %v4137_v34, %v4079_v62 }
 0x185   :  { %3207 = vmatmul.msk.f32.gmra.mxu3 %vm117_vm0, %v3007_v28 }
 0x187   :  { %v4269_v16 = vpop.f32.mrf.mxu2 }
 0x188   :  { %v4271_v30 = vpop.f32.mrf.mxu3  ;;  %v4275_v49 = vpop.f32.mrf.mxu1 }
 0x18b   :  { %3144 = vmatmul.msk.f32.gmra.mxu1 %vm709_vm10, %v5452_v12  ;;  %vm729_vm10 = vcmp.eq.f32.partialorder %v4032_v53, %v4086_v19  ;;  %v3035_v53 = vsel %vm735_vm15, 1.0, %v5436_v48  ;;  %vm755_vm15 = vcmp.eq.f32.partialorder %v4185_v0, %v4079_v62 }
 0x18c   :  { %3176 = vmatmul.msk.f32.gmra.mxu2 %vm710_vm2, %v5452_v12  ;;  %vm730_vm2 = vcmp.eq.f32.partialorder %v4044_v43, %v4091_v60 }
 0x18d   :  { %3208 = vmatmul.msk.f32.gmra.mxu3 %vm117_vm0, %v3011_v45 }
 0x18f   :  { %v4285_v61 = vpop.f32.mrf.mxu2 }
 0x190   :  { %v4287_v13 = vpop.f32.mrf.mxu3  ;;  %v4291_v24 = vpop.f32.mrf.mxu1 }
 0x193   :  { %3145 = vmatmul.msk.f32.gmra.mxu1 %vm713_vm5, %v5452_v12  ;;  %vm733_vm5 = vcmp.eq.f32.partialorder %v4048_v36, %v4086_v19  ;;  %v3039_v36 = vsel %vm739_vm11, 1.0, %v5436_v48  ;;  %vm759_vm11 = vcmp.eq.f32.partialorder %v4207_v17, %v4079_v62 }
 0x194   :  { %3177 = vmatmul.msk.f32.gmra.mxu2 %vm714_vm8, %v5452_v12  ;;  %vm734_vm8 = vcmp.eq.f32.partialorder %v4062_v54, %v4091_v60 }
 0x195   :  { %3209 = vmatmul.msk.f32.gmra.mxu3 %vm117_vm0, %v3015_v52 }
 0x197   :  { %v4301_v39 = vpop.f32.mrf.mxu2 }
 0x198   :  { %v4303_v42 = vpop.f32.mrf.mxu3  ;;  %v4307_v57 = vpop.f32.mrf.mxu1 }
 0x19b   :  { %3146 = vmatmul.msk.f32.gmra.mxu1 %vm717_vm3, %v5452_v12  ;;  %vm737_vm3 = vcmp.eq.f32.partialorder %v4069_v10, %v4086_v19  ;;  %v5459_v10 = vld [vmem:[#allocation10_spill] sm:$0xff] }
 0x19c   :  { %3178 = vmatmul.msk.f32.gmra.mxu2 %vm718_vm14, %v5452_v12  ;;  %vm738_vm14 = vcmp.eq.f32.partialorder %v4093_v37, %v4091_v60  ;;  %v3043_v37 = vsel %vm743_vm4, 1.0, %v5436_v48  ;;  %vm763_vm4 = vcmp.eq.f32.partialorder %v4227_v59, %v4079_v62  ;;  %v4506_v59 = vpop.f32.mrf.mxu0 }
 0x19d   :  { %3210 = vmatmul.msk.f32.gmra.mxu3 %vm117_vm0, %v3019_v44 }
 0x19f   :  { %v4317_v8 = vpop.f32.mrf.mxu2 }
 0x1a0   :  { %v4319_v28 = vpop.f32.mrf.mxu3  ;;  %v4323_v18 = vpop.f32.mrf.mxu1 }
 0x1a3   :  { %3147 = vmatmul.msk.f32.gmra.mxu1 %vm721_vm6, %v5452_v12  ;;  %vm741_vm6 = vcmp.eq.f32.partialorder %v5459_v10, %v4086_v19 }
 0x1a4   :  { %3179 = vmatmul.msk.f32.gmra.mxu2 %vm722_vm13, %v5452_v12  ;;  %vm742_vm13 = vcmp.eq.f32.partialorder %v4113_v32, %v4091_v60 }
 0x1a5   :  { %3211 = vmatmul.msk.f32.gmra.mxu3 %vm117_vm0, %v3023_v50 }
 0x1a7   :  { %v4333_v4 = vpop.f32.mrf.mxu2 }
 0x1a8   :  { %v4335_v45 = vpop.f32.mrf.mxu3  ;;  %v4339_v6 = vpop.f32.mrf.mxu1 }
 0x1ab   :  { %3148 = vmatmul.msk.f32.gmra.mxu1 %vm725_vm1, %v5452_v12  ;;  %vm745_vm1 = vcmp.eq.f32.partialorder %v4121_v41, %v4086_v19 }
 0x1ac   :  { %3180 = vmatmul.msk.f32.gmra.mxu2 %vm726_vm7, %v5452_v12  ;;  %vm746_vm7 = vcmp.eq.f32.partialorder %v4135_v51, %v4091_v60 }
 0x1ad   :  { %3212 = vmatmul.msk.f32.gmra.mxu3 %vm117_vm0, %v3027_v2 }
 0x1af   :  { %v4349_v27 = vpop.f32.mrf.mxu2 }
 0x1b0   :  { %v4351_v52 = vpop.f32.mrf.mxu3  ;;  %v4355_v25 = vpop.f32.mrf.mxu1 }
 0x1b3   :  { %3149 = vmatmul.msk.f32.gmra.mxu1 %vm729_vm10, %v5452_v12  ;;  %vm749_vm10 = vcmp.eq.f32.partialorder %v4141_v1, %v4086_v19 }
 0x1b4   :  { %3181 = vmatmul.msk.f32.gmra.mxu2 %vm730_vm2, %v5452_v12  ;;  %vm750_vm2 = vcmp.eq.f32.partialorder %v4161_v56, %v4091_v60 }
 0x1b5   :  { %3213 = vmatmul.msk.f32.gmra.mxu3 %vm117_vm0, %v3031_v21  ;;  %v5460_v21 = vld [vmem:[#allocation8_spill] sm:$0xff] }
 0x1b7   :  { %v4365_v35 = vpop.f32.mrf.mxu2 }
 0x1b8   :  { %v4367_v44 = vpop.f32.mrf.mxu3  ;;  %v4371_v23 = vpop.f32.mrf.mxu1 }
 0x1bb   :  { %3150 = vmatmul.msk.f32.gmra.mxu1 %vm733_vm5, %v5452_v12  ;;  %vm753_vm5 = vcmp.eq.f32.partialorder %v4167_v9, %v4086_v19 }
 0x1bc   :  { %3182 = vmatmul.msk.f32.gmra.mxu2 %vm734_vm8, %v5452_v12  ;;  %vm754_vm8 = vcmp.eq.f32.partialorder %v4183_v5, %v4091_v60 }
 0x1bd   :  { %3214 = vmatmul.msk.f32.gmra.mxu3 %vm117_vm0, %v3035_v53 }
 0x1bf   :  { %v4381_v43 = vpop.f32.mrf.mxu2 }
 0x1c0   :  { %v4383_v50 = vpop.f32.mrf.mxu3  ;;  %v4387_v11 = vpop.f32.mrf.mxu1 }
 0x1c1   :  { %5456 = vst [vmem:[#allocation11_spill] sm:$0xff] %v4387_v11  ;;  %v4414_v11 = vpop.permute.xlu1 %1981 }
 0x1c3   :  { %3151 = vmatmul.msk.f32.gmra.mxu1 %vm737_vm3, %v5452_v12  ;;  %vm757_vm3 = vcmp.eq.f32.partialorder %v4189_v20, %v4086_v19 }
 0x1c4   :  { %3183 = vmatmul.msk.f32.gmra.mxu2 %vm738_vm14, %v5452_v12  ;;  %vm758_vm14 = vcmp.eq.f32.partialorder %v4205_v63, %v4091_v60 }
 0x1c5   :  { %3215 = vmatmul.msk.f32.gmra.mxu3 %vm117_vm0, %v3039_v36 }
 0x1c7   :  { %v4397_v54 = vpop.f32.mrf.mxu2 }
 0x1c8   :  { %5457 = vst [vmem:[#allocation12_spill] sm:$0xff] %v4397_v54  ;;  %v4399_v2 = vpop.f32.mrf.mxu3  ;;  %v1335_v55 = vpop.f32.mrf.mxu1 }
 0x1c9   :  { %5458 = vst [vmem:[#allocation13_spill] sm:$0xff] %v4399_v2  ;;  %v1336_v53 = vadd.f32 %v1335_v55, %v5460_v21  ;;  %v4424_v55 = vpop.permute.xlu2 %2019 }
 0x1cb   :  { %3152 = vmatmul.msk.f32.gmra.mxu1 %vm741_vm6, %v5452_v12  ;;  %vm761_vm6 = vcmp.eq.f32.partialorder %v4211_v3, %v4086_v19 }
 0x1cc   :  { %3184 = vmatmul.msk.f32.gmra.mxu2 %vm742_vm13, %v5452_v12  ;;  %vm762_vm13 = vcmp.eq.f32.partialorder %v4225_v22, %v4091_v60 }
 0x1cd   :  { %3216 = vmatmul.msk.f32.gmra.mxu3 %vm117_vm0, %v3043_v37  ;;  %v3047_v37 = vsel %vm747_vm9, 1.0, %v5436_v48  ;;  %vm767_vm9 = vcmp.eq.f32.partialorder %v4249_v26, %v4079_v62 }
 0x1cf   :  { %v1448_v36 = vpop.f32.mrf.mxu2 }
 0x1d0   :  { %v1561_v54 = vpop.f32.mrf.mxu3  ;;  %v1449_v46 = vadd.f32 %v1448_v36, %v1336_v53  ;;  %v1338_v10 = vpop.f32.mrf.mxu1 }
 0x1d2   :  { %v4418_v32 = vadd.f32 %v1561_v54, %v1449_v46  ;;  %v5461_v54 = vld [vmem:[#allocation9_spill] sm:$0xff] }
 0x1d3   :  { %3153 = vmatmul.msk.f32.gmra.mxu1 %vm745_vm1, %v5452_v12  ;;  %v1339_v21 = vadd.f32 %v1338_v10, %v5461_v54  ;;  %v5462_v10 = vmov 0.0   ;;  %vm765_vm1 = vcmp.eq.f32.partialorder %v4233_v15, %v4086_v19 }
 0x1d4   :  { %3185 = vmatmul.msk.f32.gmra.mxu2 %vm746_vm7, %v5452_v12  ;;  %v1657_v34 = vmul.f32 %v4418_v32, %v4418_v32  ;;  %v1984_v41 = vmul.f32 %v4414_v11, %v4418_v32  ;;  %vm766_vm7 = vcmp.eq.f32.partialorder %v4247_v29, %v4091_v60 }
 0x1d5   :  { %3217 = vmatmul.msk.f32.gmra.mxu3 %vm117_vm0, %v3047_v37 }
 0x1d6   :  { %1721 = vrot.lane.b32.xlu0 %v1657_v34, %s3339_s5  ;;  %v2022_v51 = vadd.f32 %v4424_v55, %v1984_v41  ;;  %v3051_v34 = vsel %vm751_vm12, 1.0, %v5462_v10  ;;  %vm771_vm12 = vcmp.eq.f32.partialorder %v4271_v30, %v4079_v62 }
 0x1d7   :  { %v1451_v53 = vpop.f32.mrf.mxu2 }
 0x1d8   :  { %v1564_v36 = vpop.f32.mrf.mxu3  ;;  %v1452_v46 = vadd.f32 %v1451_v53, %v1339_v21  ;;  %v1341_v37 = vpop.f32.mrf.mxu1  ;;  %v2054_v48 = vmax.f32 %v2022_v51, 0.0 }
 0x1d9   :  { %v1342_v41 = vadd.f32 %v1341_v37, %v4119_v58  ;;  %v3055_v58 = vsel %vm755_vm15, 1.0, %v5462_v10  ;;  %vm775_vm15 = vcmp.eq.f32.partialorder %v4287_v13, %v4079_v62  ;;  %v2089_v13 = vld [vmem:[%s5430_s6 + $0x18] sm:$0xff] }
 0x1da   :  { %v4439_v2 = vadd.f32 %v1564_v36, %v1452_v46  ;;  %2122 = vrot.lane.b32.xlu2 %v2054_v48, %s3340_s22  ;;  %2263 = vmatpush.msra.mxu0 %v2089_v13 }
 0x1db   :  { %3154 = vmatmul.msk.f32.gmra.mxu1 %vm749_vm10, %v5452_v12  ;;  %vm769_vm10 = vcmp.eq.f32.partialorder %v4253_v38, %v4086_v19 }
 0x1dc   :  { %3186 = vmatmul.msk.f32.gmra.mxu2 %vm750_vm2, %v5452_v12  ;;  %v1658_v47 = vmul.f32 %v4439_v2, %v4439_v2  ;;  %v1985_v1 = vmul.f32 %v4414_v11, %v4439_v2  ;;  %vm770_vm2 = vcmp.eq.f32.partialorder %v4269_v16, %v4091_v60 }
 0x1dd   :  { %3218 = vmatmul.msk.f32.gmra.mxu3 %vm117_vm0, %v3051_v34 }
 0x1de   :  { %1723 = vrot.lane.b32.xlu0 %v1658_v47, %s3339_s5  ;;  %v2023_v48 = vadd.f32 %v4424_v55, %v1985_v1 }
 0x1df   :  { %v1454_v56 = vpop.f32.mrf.mxu2 }
 0x1e0   :  { %v1567_v54 = vpop.f32.mrf.mxu3  ;;  %v1455_v21 = vadd.f32 %v1454_v56, %v1342_v41  ;;  %v1344_v51 = vpop.f32.mrf.mxu1  ;;  %v2055_v53 = vmax.f32 %v2023_v48, 0.0 }
 0x1e1   :  { %v1345_v9 = vadd.f32 %v1344_v51, %v4148_v7  ;;  %v3059_v7 = vsel %vm759_vm11, 1.0, %v5462_v10  ;;  %vm779_vm11 = vcmp.eq.f32.partialorder %v4303_v42, %v4079_v62 }
 0x1e2   :  { %v4459_v36 = vadd.f32 %v1567_v54, %v1455_v21  ;;  %2124 = vrot.lane.b32.xlu1 %v2055_v53, %s3340_s22  ;;  %v3079_v42 = vsel %vm779_vm11, 1.0, %v5462_v10  ;;  %vm794_vm11 = vcmp.eq.f32.partialorder %v4365_v35, %v4091_v60 }
 0x1e3   :  { %3155 = vmatmul.msk.f32.gmra.mxu1 %vm753_vm5, %v5452_v12  ;;  %vm773_vm5 = vcmp.eq.f32.partialorder %v4275_v49, %v4086_v19 }
 0x1e4   :  { %3187 = vmatmul.msk.f32.gmra.mxu2 %vm754_vm8, %v5452_v12  ;;  %v1986_v0 = vmul.f32 %v4414_v11, %v4459_v36  ;;  %v1659_v41 = vmul.f32 %v4459_v36, %v4459_v36  ;;  %vm774_vm8 = vcmp.eq.f32.partialorder %v4285_v61, %v4091_v60 }
 0x1e5   :  { %3219 = vmatmul.msk.f32.gmra.mxu3 %vm117_vm0, %v3055_v58 }
 0x1e6   :  { %v2024_v46 = vadd.f32 %v4424_v55, %v1986_v0 }
 0x1e7   :  { %v1457_v37 = vpop.f32.mrf.mxu2 }
 0x1e8   :  { %v1570_v34 = vpop.f32.mrf.mxu3  ;;  %v1458_v5 = vadd.f32 %v1457_v37, %v1345_v9  ;;  %v1347_v47 = vpop.f32.mrf.mxu1  ;;  %v2056_v1 = vmax.f32 %v2024_v46, 0.0 }
 0x1e9   :  { %v1348_v17 = vadd.f32 %v1347_v47, %v4179_v40  ;;  %v3063_v40 = vsel %vm763_vm4, 1.0, %v5462_v10  ;;  %vm783_vm4 = vcmp.eq.f32.partialorder %v4319_v28, %v4079_v62 }
 0x1ea   :  { %v4478_v48 = vadd.f32 %v1570_v34, %v1458_v5  ;;  %2126 = vrot.lane.b32.xlu0 %v2056_v1, %s3340_s22  ;;  %1725 = vrot.lane.b32.xlu1 %v1659_v41, %s3339_s5  ;;  %v4530_v41 = vpop.f32.mrf.mxu0  ;;  %v3083_v28 = vsel %vm783_vm4, 1.0, %v5462_v10  ;;  %vm798_vm4 = vcmp.eq.f32.partialorder %v4381_v43, %v4091_v60  ;;  %v5463_v43 = vld [vmem:[#allocation13_spill] sm:$0xff] }
 0x1eb   :  { %3156 = vmatmul.msk.f32.gmra.mxu1 %vm757_vm3, %v5452_v12  ;;  %vm777_vm3 = vcmp.eq.f32.partialorder %v4291_v24, %v4086_v19 }
 0x1ec   :  { %3188 = vmatmul.msk.f32.gmra.mxu2 %vm758_vm14, %v5452_v12  ;;  %v1987_v20 = vmul.f32 %v4414_v11, %v4478_v48  ;;  %v1660_v58 = vmul.f32 %v4478_v48, %v4478_v48  ;;  %vm778_vm14 = vcmp.eq.f32.partialorder %v4301_v39, %v4091_v60 }
 0x1ed   :  { %3220 = vmatmul.msk.f32.gmra.mxu3 %vm117_vm0, %v3059_v7 }
 0x1ee   :  { %v2025_v56 = vadd.f32 %v4424_v55, %v1987_v20 }
 0x1ef   :  { %v1460_v54 = vpop.f32.mrf.mxu2 }
 0x1f0   :  { %v1573_v21 = vpop.f32.mrf.mxu3  ;;  %v1461_v63 = vadd.f32 %v1460_v54, %v1348_v17  ;;  %v1350_v51 = vpop.f32.mrf.mxu1  ;;  %v2057_v53 = vmax.f32 %v2025_v56, 0.0 }
 0x1f1   :  { %v1351_v9 = vadd.f32 %v1350_v51, %v4203_v14  ;;  %v3067_v14 = vsel %vm767_vm9, 1.0, %v5462_v10  ;;  %vm787_vm9 = vcmp.eq.f32.partialorder %v4335_v45, %v4079_v62 }
 0x1f2   :  { %v4498_v0 = vadd.f32 %v1573_v21, %v1461_v63  ;;  %2128 = vrot.lane.b32.xlu2 %v2057_v53, %s3340_s22  ;;  %1727 = vrot.lane.b32.xlu1 %v1660_v58, %s3339_s5 }
 0x1f3   :  { %3157 = vmatmul.msk.f32.gmra.mxu1 %vm761_vm6, %v5452_v12  ;;  %vm781_vm6 = vcmp.eq.f32.partialorder %v4307_v57, %v4086_v19 }
 0x1f4   :  { %3189 = vmatmul.msk.f32.gmra.mxu2 %vm762_vm13, %v5452_v12  ;;  %v1988_v3 = vmul.f32 %v4414_v11, %v4498_v0  ;;  %v1661_v1 = vmul.f32 %v4498_v0, %v4498_v0  ;;  %vm782_vm13 = vcmp.eq.f32.partialorder %v4317_v8, %v4091_v60 }
 0x1f5   :  { %3221 = vmatmul.msk.f32.gmra.mxu3 %vm117_vm0, %v3063_v40  ;;  %v4558_v40 = vpop.f32.mrf.mxu0 }
 0x1f6   :  { %v2026_v46 = vadd.f32 %v4424_v55, %v1988_v3 }
 0x1f7   :  { %v1463_v37 = vpop.f32.mrf.mxu2 }
 0x1f8   :  { %v1576_v34 = vpop.f32.mrf.mxu3  ;;  %v1464_v22 = vadd.f32 %v1463_v37, %v1351_v9  ;;  %v1353_v5 = vpop.f32.mrf.mxu1  ;;  %v2058_v47 = vmax.f32 %v2026_v46, 0.0 }
 0x1f9   :  { %v1354_v15 = vadd.f32 %v1353_v5, %v4231_v31  ;;  %v3071_v31 = vsel %vm771_vm12, 1.0, %v5462_v10  ;;  %vm791_vm12 = vcmp.eq.f32.partialorder %v4351_v52, %v4079_v62 }
 0x1fa   :  { %2130 = vrot.lane.b32.xlu1 %v2058_v47, %s3340_s22  ;;  %1729 = vrot.lane.b32.xlu2 %v1661_v1, %s3339_s5  ;;  %v4526_v26 = vadd.f32 %v1576_v34, %v1464_v22  ;;  %v2088_v1 = vld [vmem:[%s5430_s6 + $0x10] sm:$0xff]  ;;  %v3091_v52 = vsel %vm791_vm12, 1.0, %v5462_v10 }
 0x1fb   :  { %3158 = vmatmul.msk.f32.gmra.mxu1 %vm765_vm1, %v5452_v12  ;;  %2264 = vmatpush.msra.mxu0 %v2088_v1  ;;  %vm785_vm1 = vcmp.eq.f32.partialorder %v4323_v18, %v4086_v19 }
 0x1fc   :  { %3190 = vmatmul.msk.f32.gmra.mxu2 %vm766_vm7, %v5452_v12  ;;  %v1662_v56 = vmul.f32 %v4526_v26, %v4526_v26  ;;  %v1989_v54 = vmul.f32 %v4414_v11, %v4526_v26  ;;  %vm786_vm7 = vcmp.eq.f32.partialorder %v4333_v4, %v4091_v60 }
 0x1fd   :  { %3222 = vmatmul.msk.f32.gmra.mxu3 %vm117_vm0, %v3067_v14 }
 0x1fe   :  { %v2027_v38 = vadd.f32 %v4424_v55, %v1989_v54 }
 0x1ff   :  { %v1466_v7 = vpop.f32.mrf.mxu2 }
 0x200   :  { %v1579_v20 = vpop.f32.mrf.mxu3  ;;  %v1467_v29 = vadd.f32 %v1466_v7, %v1354_v15  ;;  %v1356_v17 = vpop.f32.mrf.mxu1  ;;  %v2059_v46 = vmax.f32 %v2027_v38, 0.0 }
 0x201   :  { %v1357_v51 = vadd.f32 %v1356_v17, %v4257_v33  ;;  %v3075_v33 = vsel %vm775_vm15, 1.0, %v5462_v10  ;;  %vm795_vm15 = vcmp.eq.f32.partialorder %v4367_v44, %v4079_v62 }
 0x202   :  { %v4541_v21 = vadd.f32 %v1579_v20, %v1467_v29  ;;  %1731 = vrot.lane.b32.xlu2 %v1662_v56, %s3339_s5  ;;  %v1255_v29 = vpop.f32.mrf.mxu0  ;;  %v2086_v56 = vld [vmem:[%s5430_s6] sm:$0xff] }
 0x203   :  { %3159 = vmatmul.msk.f32.gmra.mxu1 %vm769_vm10, %v5452_v12  ;;  %vm789_vm10 = vcmp.eq.f32.partialorder %v4339_v6, %v4086_v19 }
 0x204   :  { %3191 = vmatmul.msk.f32.gmra.mxu2 %vm770_vm2, %v5452_v12  ;;  %v1663_v30 = vmul.f32 %v4541_v21, %v4541_v21  ;;  %v1990_v63 = vmul.f32 %v4414_v11, %v4541_v21  ;;  %vm790_vm2 = vcmp.eq.f32.partialorder %v4349_v27, %v4091_v60 }
 0x205   :  { %3223 = vmatmul.msk.f32.gmra.mxu3 %vm117_vm0, %v3071_v31 }
 0x206   :  { %1733 = vrot.lane.b32.xlu0 %v1663_v30, %s3339_s5  ;;  %v2028_v16 = vadd.f32 %v4424_v55, %v1990_v63 }
 0x207   :  { %v1469_v53 = vpop.f32.mrf.mxu2 }
 0x208   :  { %v1582_v58 = vpop.f32.mrf.mxu3  ;;  %v1470_v3 = vadd.f32 %v1469_v53, %v1357_v51  ;;  %v1359_v9 = vpop.f32.mrf.mxu1  ;;  %v2060_v37 = vmax.f32 %v2028_v16, 0.0 }
 0x209   :  { %v1360_v22 = vadd.f32 %v1359_v9, %v4506_v59  ;;  %v2087_v59 = vld [vmem:[%s5430_s6 + $0x8] sm:$0xff]  ;;  %s3341_s6 = smov 122  }
 0x20a   :  { %v4564_v34 = vadd.f32 %v1582_v58, %v1470_v3  ;;  %2132 = vrot.lane.b32.xlu2 %v2059_v46, %s3340_s22  ;;  %2134 = vrot.lane.b32.xlu1 %v2060_v37, %s3340_s22 }
 0x20b   :  { %3160 = vmatmul.msk.f32.gmra.mxu1 %vm773_vm5, %v5452_v12  ;;  %2265 = vmatpush.msra.mxu0 %v2087_v59  ;;  %vm793_vm5 = vcmp.eq.f32.partialorder %v4355_v25, %v4086_v19 }
 0x20c   :  { %3192 = vmatmul.msk.f32.gmra.mxu2 %vm774_vm8, %v5452_v12  ;;  %v1991_v49 = vmul.f32 %v4414_v11, %v4564_v34  ;;  %v1664_v20 = vmul.f32 %v4564_v34, %v4564_v34  ;;  %vm2186_vm8 = vcmask 261120  }
 0x20d   :  { %3224 = vmatmul.msk.f32.gmra.mxu3 %vm117_vm0, %v3075_v33  ;;  %2266 = vmatpush.msra.mxu0 %v2086_v56 }
 0x20e   :  { %v2029_v61 = vadd.f32 %v4424_v55, %v1991_v49 }
 0x20f   :  { %v1472_v5 = vpop.f32.mrf.mxu2 }
 0x210   :  { %v1585_v47 = vpop.f32.mrf.mxu3  ;;  %v1473_v14 = vadd.f32 %v1472_v5, %v1360_v22  ;;  %v1362_v15 = vpop.f32.mrf.mxu1  ;;  %v2061_v7 = vmax.f32 %v2029_v61, 0.0 }
 0x211   :  { %v1363_v54 = vadd.f32 %v1362_v15, %v4530_v41  ;;  %v1258_v41 = vpop.f32.mrf.mxu0 }
 0x212   :  { %v4593_v17 = vadd.f32 %v1585_v47, %v1473_v14  ;;  %2136 = vrot.lane.b32.xlu2 %v2061_v7, %s3340_s22  ;;  %1735 = vrot.lane.b32.xlu1 %v1664_v20, %s3339_s5 }
 0x213   :  { %3161 = vmatmul.msk.f32.gmra.mxu1 %vm777_vm3, %v5452_v12  ;;  %vm799_vm3 = vcmp.eq.f32.partialorder %v4383_v50, %v4079_v62 }
 0x214   :  { %3193 = vmatmul.msk.f32.gmra.mxu2 %vm778_vm14, %v5452_v12  ;;  %v1992_v24 = vmul.f32 %v4414_v11, %v4593_v17  ;;  %v1665_v16 = vmul.f32 %v4593_v17, %v4593_v17  ;;  %vm797_vm14 = vcmp.eq.f32.partialorder %v4371_v23, %v4086_v19 }
 0x215   :  { %3225 = vmatmul.msk.f32.gmra.mxu3 %vm117_vm0, %v3079_v42 }
 0x216   :  { %v2030_v39 = vadd.f32 %v4424_v55, %v1992_v24 }
 0x217   :  { %v1475_v31 = vpop.f32.mrf.mxu2 }
 0x218   :  { %v1588_v30 = vpop.f32.mrf.mxu3  ;;  %v1476_v38 = vadd.f32 %v1475_v31, %v1363_v54  ;;  %v1365_v63 = vpop.f32.mrf.mxu1  ;;  %v2062_v51 = vmax.f32 %v2030_v39, 0.0  ;;  %v3095_v39 = vsel %vm795_vm15, 1.0, %v5462_v10 }
 0x219   :  { %v1366_v3 = vadd.f32 %v1365_v63, %v4558_v40  ;;  %v3087_v40 = vsel %vm787_vm9, 1.0, %v5462_v10  ;;  %v1261_v45 = vpop.f32.mrf.mxu0 }
 0x21a   :  { %v4616_v53 = vadd.f32 %v1588_v30, %v1476_v38  ;;  %2138 = vrot.lane.b32.xlu1 %v2062_v51, %s3340_s22  ;;  %1737 = vrot.lane.b32.xlu2 %v1665_v16, %s3339_s5 }
 0x21b   :  { %3162 = vmatmul.msk.f32.gmra.mxu1 %vm781_vm6, %v5452_v12  ;;  %vm803_vm6 = vcmp.eq.f32.partialorder %v5463_v43, %v4079_v62 }
 0x21c   :  { %3194 = vmatmul.msk.f32.gmra.mxu2 %vm782_vm13, %v5452_v12  ;;  %v1666_v57 = vmul.f32 %v4616_v53, %v4616_v53  ;;  %v1993_v58 = vmul.f32 %v4414_v11, %v4616_v53 }
 0x21d   :  { %3226 = vmatmul.msk.f32.gmra.mxu3 %vm117_vm0, %v3083_v28 }
 0x21e   :  { %1739 = vrot.lane.b32.xlu0 %v1666_v57, %s3339_s5  ;;  %v2031_v8 = vadd.f32 %v4424_v55, %v1993_v58  ;;  %v3099_v58 = vsel %vm799_vm3, 1.0, %v5462_v10 }
 0x21f   :  { %v1478_v9 = vpop.f32.mrf.mxu2 }
 0x220   :  { %v1591_v46 = vpop.f32.mrf.mxu3  ;;  %v1479_v37 = vadd.f32 %v1478_v9, %v1366_v3  ;;  %v1368_v33 = vpop.f32.mrf.mxu1  ;;  %v2063_v49 = vmax.f32 %v2031_v8, 0.0 }
 0x221   :  { %v1369_v22 = vadd.f32 %v1368_v33, %v1255_v29  ;;  %v1264_v29 = vpop.f32.mrf.mxu0 }
 0x222   :  { %2140 = vrot.lane.b32.xlu1 %v2063_v49, %s3340_s22  ;;  %v4642_v13 = vadd.f32 %v1591_v46, %v1479_v37 }
 0x223   :  { %3163 = vmatmul.msk.f32.gmra.mxu1 %vm785_vm1, %v5452_v12  ;;  %vm2823_vm1 = vcmask 1040384  }
 0x224   :  { %3195 = vmatmul.msk.f32.gmra.mxu2 %vm786_vm7, %v5452_v12  ;;  %v1667_v4 = vmul.f32 %v4642_v13, %v4642_v13  ;;  %v1994_v1 = vmul.f32 %v4414_v11, %v4642_v13 }
 0x225   :  { %3227 = vmatmul.msk.f32.gmra.mxu3 %vm117_vm0, %v3087_v40 }
 0x226   :  { %v2032_v6 = vadd.f32 %v4424_v55, %v1994_v1 }
 0x227   :  { %v1481_v61 = vpop.f32.mrf.mxu2 }
 0x228   :  { %v1594_v5 = vpop.f32.mrf.mxu3  ;;  %v1482_v18 = vadd.f32 %v1481_v61, %v1369_v22  ;;  %v1371_v47 = vpop.f32.mrf.mxu1  ;;  %v2064_v56 = vmax.f32 %v2032_v6, 0.0  ;;  %v5465_v61 = vld [vmem:[#allocation12_spill] sm:$0xff] }
 0x229   :  { %v1372_v7 = vadd.f32 %v1371_v47, %v1258_v41  ;;  %v1267_v41 = vpop.f32.mrf.mxu0  ;;  %vm802_vm9 = vcmp.eq.f32.partialorder %v5465_v61, %v4091_v60 }
 0x22a   :  { %v4654_v14 = vadd.f32 %v1594_v5, %v1482_v18  ;;  %1741 = vrot.lane.b32.xlu1 %v1667_v4, %s3339_s5  ;;  %v3103_v5 = vsel %vm803_vm6, 1.0, %v5462_v10 }
 0x22b   :  { %3164 = vmatmul.msk.f32.gmra.mxu1 %vm789_vm10, %v5452_v12 }
 0x22c   :  { %3196 = vmatmul.msk.f32.gmra.mxu2 %vm790_vm2, %v5452_v12  ;;  %v1668_v15 = vmul.f32 %v4654_v14, %v4654_v14  ;;  %v1995_v24 = vmul.f32 %v4414_v11, %v4654_v14 }
 0x22d   :  { %3228 = vmatmul.msk.f32.gmra.mxu3 %vm117_vm0, %v3091_v52 }
 0x22e   :  { %1743 = vrot.lane.b32.xlu2 %v1668_v15, %s3339_s5  ;;  %v2033_v31 = vadd.f32 %v4424_v55, %v1995_v24 }
 0x22f   :  { %v1484_v20 = vpop.f32.mrf.mxu2 }
 0x230   :  { %v1597_v59 = vpop.f32.mrf.mxu3  ;;  %v1485_v27 = vadd.f32 %v1484_v20, %v1372_v7  ;;  %v1374_v42 = vpop.f32.mrf.mxu1  ;;  %v2065_v16 = vmax.f32 %v2033_v31, 0.0 }
 0x231   :  { %v1375_v30 = vadd.f32 %v1374_v42, %v1261_v45  ;;  %v5464_v45 = vld [vmem:[#allocation11_spill] sm:$0xff]  ;;  %v1270_v62 = vpop.f32.mrf.mxu0 }
 0x232   :  { %v4673_v54 = vadd.f32 %v1597_v59, %v1485_v27  ;;  %2142 = vrot.lane.b32.xlu1 %v2064_v56, %s3340_s22  ;;  %vm801_vm13 = vcmp.eq.f32.partialorder %v5464_v45, %v4086_v19 }
 0x233   :  { %3165 = vmatmul.msk.f32.gmra.mxu1 %vm793_vm5, %v5452_v12 }
 0x234   :  { %3197 = vmatmul.msk.f32.gmra.mxu2 %vm794_vm11, %v5452_v12  ;;  %v2123_v44 = vpop.permute.xlu2 %2122  ;;  %v1669_v25 = vmul.f32 %v4673_v54, %v4673_v54  ;;  %v1996_v28 = vmul.f32 %v4414_v11, %v4673_v54 }
 0x235   :  { %3229 = vmatmul.msk.f32.gmra.mxu3 %vm117_vm0, %v3095_v39  ;;  %3232 = vmatmul.msk.f32.vlgmr.msra.gmra.mxu0 %vm2186_vm8, %v2123_v44 }
 0x236   :  { %1745 = vrot.lane.b32.xlu0 %v1669_v25, %s3339_s5  ;;  %v2034_v50 = vadd.f32 %v4424_v55, %v1996_v28 }
 0x237   :  { %v1487_v35 = vpop.f32.mrf.mxu2 }
 0x238   :  { %v1600_v38 = vpop.f32.mrf.mxu3  ;;  %v1488_v63 = vadd.f32 %v1487_v35, %v1375_v30  ;;  %v1377_v51 = vpop.f32.mrf.mxu1  ;;  %v2066_v49 = vmax.f32 %v2034_v50, 0.0 }
 0x239   :  { %v1378_v3 = vadd.f32 %v1377_v51, %v1264_v29  ;;  %v1273_v6 = vpop.f32.mrf.mxu0 }
 0x23a   :  { %v4693_v57 = vadd.f32 %v1600_v38, %v1488_v63  ;;  %2144 = vrot.lane.b32.xlu1 %v2065_v16, %s3340_s22 }
 0x23b   :  { %3166 = vmatmul.msk.f32.gmra.mxu1 %vm797_vm14, %v5452_v12 }
 0x23c   :  { %3198 = vmatmul.msk.f32.gmra.mxu2 %vm798_vm4, %v5452_v12  ;;  %v1997_v23 = vmul.f32 %v4414_v11, %v4693_v57  ;;  %v1670_v60 = vmul.f32 %v4693_v57, %v4693_v57 }
 0x23d   :  { %3230 = vmatmul.msk.f32.gmra.mxu3 %vm117_vm0, %v3099_v58 }
 0x23e   :  { %v2035_v8 = vadd.f32 %v4424_v55, %v1997_v23 }
 0x23f   :  { %v1490_v9 = vpop.f32.mrf.mxu2 }
 0x240   :  { %v1603_v46 = vpop.f32.mrf.mxu3  ;;  %v1491_v37 = vadd.f32 %v1490_v9, %v1378_v3  ;;  %v1380_v33 = vpop.f32.mrf.mxu1  ;;  %v2067_v40 = vmax.f32 %v2035_v8, 0.0 }
 0x241   :  { %v1381_v18 = vadd.f32 %v1380_v33, %v1267_v41  ;;  %v1276_v44 = vpop.f32.mrf.mxu0 }
 0x242   :  { %v4710_v22 = vadd.f32 %v1603_v46, %v1491_v37  ;;  %2146 = vrot.lane.b32.xlu1 %v2066_v49, %s3340_s22  ;;  %2148 = vrot.lane.b32.xlu0 %v2067_v40, %s3340_s22 }
 0x243   :  { %3167 = vmatmul.msk.f32.gmra.mxu1 %vm801_vm13, %v5452_v12 }
 0x244   :  { %3199 = vmatmul.msk.f32.gmra.mxu2 %vm802_vm9, %v5452_v12  ;;  %v1671_v19 = vmul.f32 %v4710_v22, %v4710_v22 }
 0x245   :  { %3231 = vmatmul.msk.f32.gmra.mxu3 %vm117_vm0, %v3103_v5  ;;  %vm1817_vm0 = vcmask 39936  }
 0x246   :  { %1749 = vrot.lane.b32.xlu2 %v1671_v19, %s3339_s5 }
 0x247   :  { %v1493_v47 = vpop.f32.mrf.mxu2 }
 0x248   :  { %v1606_v4 = vpop.f32.mrf.mxu3  ;;  %v1494_v1 = vadd.f32 %v1493_v47, %v1381_v18  ;;  %v1383_v52 = vpop.f32.mrf.mxu1 }
 0x249   :  { %v1722_v15 = vpop.permute.xlu0 %1721  ;;  %v4739_v51 = vpop.f32.mrf.mxu0  ;;  %v1384_v61 = vadd.f32 %v1383_v52, %v1270_v62  ;;  %v1998_v62 = vmul.f32 %v4414_v11, %v4710_v22 }
 0x24a   :  { %v4725_v10 = vadd.f32 %v1606_v4, %v1494_v1  ;;  %1747 = vrot.lane.b32.xlu1 %v1670_v60, %s3339_s5  ;;  %v1818_v49 = vsel %vm1817_vm0, %v1722_v15, 0.0 }
 0x24c   :  { %5466 = vst [vmem:[#allocation10_spill] sm:$0xff] %v4725_v10  ;;  %v1672_v12 = vmul.f32 %v4725_v10, %v4725_v10  ;;  %v2129_v42 = vpop.permute.xlu2 %2128  ;;  %v1999_v18 = vmul.f32 %v4414_v11, %v4725_v10 }
 0x24e   :  { %1751 = vrot.lane.b32.xlu0 %v1672_v12, %s3339_s5  ;;  %v2037_v1 = vadd.f32 %v4424_v55, %v1999_v18 }
 0x24f   :  { %v1496_v7 = vpop.f32.mrf.mxu2 }
 0x250   :  { %v1609_v20 = vpop.f32.mrf.mxu3  ;;  %v1386_v59 = vpop.f32.mrf.mxu1  ;;  %v1497_v5 = vadd.f32 %v1496_v7, %v1384_v61  ;;  %v2069_v7 = vmax.f32 %v2037_v1, 0.0 }
 0x251   :  { %v1724_v29 = vpop.permute.xlu0 %1723  ;;  %v1282_v3 = vpop.f32.mrf.mxu0  ;;  %v1387_v4 = vadd.f32 %v1386_v59, %v1273_v6  ;;  %v2036_v6 = vadd.f32 %v4424_v55, %v1998_v62 }
 0x252   :  { %v1821_v9 = vsel %vm1817_vm0, %v1724_v29, 0.0  ;;  %v4760_v47 = vadd.f32 %v1609_v20, %v1497_v5 }
 0x254   :  { %v2125_v27 = vpop.permute.xlu1 %2124  ;;  %v4735_v38 = vpop.permute.xlu2 %1729  ;;  %v2000_v15 = vmul.f32 %v4414_v11, %v4760_v47 }
 0x255   :  { %3233 = vmatmul.msk.f32.gmra.mxu0 %vm2186_vm8, %v2125_v27  ;;  %v1830_v5 = vsel %vm1817_vm0, %v4735_v38, 0.0 }
 0x256   :  { %v2038_v20 = vadd.f32 %v4424_v55, %v2000_v15 }
 0x257   :  { %v1499_v56 = vpop.f32.mrf.mxu2 }
 0x258   :  { %v1612_v24 = vpop.f32.mrf.mxu3  ;;  %v1389_v39 = vpop.f32.mrf.mxu1  ;;  %v1500_v60 = vadd.f32 %v1499_v56, %v1387_v4  ;;  %v2070_v59 = vmax.f32 %v2038_v20, 0.0 }
 0x259   :  { %v1285_v61 = vpop.f32.mrf.mxu0 }
 0x25a   :  { %v4770_v29 = vadd.f32 %v1612_v24, %v1500_v60 }
 0x25c   :  { %v2127_v25 = vpop.permute.xlu0 %2126  ;;  %v1726_v31 = vpop.permute.xlu1 %1725  ;;  %v2001_v27 = vmul.f32 %v4414_v11, %v4770_v29  ;;  %v1674_v24 = vmul.f32 %v4770_v29, %v4770_v29 }
 0x25d   :  { %3234 = vmatmul.msk.f32.gmra.mxu0 %vm2186_vm8, %v2127_v25  ;;  %v4748_v58 = vpop.permute.xlu2 %1731  ;;  %v1824_v45 = vsel %vm1817_vm0, %v1726_v31, 0.0  ;;  %v1390_v31 = vadd.f32 %v1389_v39, %v1276_v44 }
 0x25e   :  { %v2039_v25 = vadd.f32 %v4424_v55, %v2001_v27 }
 0x25f   :  { %v1502_v30 = vpop.f32.mrf.mxu2 }
 0x260   :  { %v4733_v35 = vpop.f32.mrf.mxu3  ;;  %v4737_v63 = vpop.f32.mrf.mxu1 }
 0x264   :  { %v4741_v16 = vpop.permute.xlu1 %1727 }
 0x265   :  { %3235 = vmatmul.msk.f32.gmra.mxu0 %vm2186_vm8, %v2129_v42  ;;  %v2133_v40 = vpop.permute.xlu2 %2132  ;;  %v2068_v42 = vmax.f32 %v2036_v6, 0.0 }
 0x267   :  { %v4744_v28 = vpop.f32.mrf.mxu2 }
 0x268   :  { %v4746_v41 = vpop.f32.mrf.mxu3  ;;  %v1395_v50 = vpop.f32.mrf.mxu1 }
 0x269   :  { %v1396_v8 = vadd.f32 %v1395_v50, %v1282_v3  ;;  %v1503_v50 = vadd.f32 %v1502_v30, %v1390_v31  ;;  %v1673_v3 = vmul.f32 %v4760_v47, %v4760_v47 }
 0x26c   :  { %v2131_v23 = vpop.permute.xlu1 %2130 }
 0x26d   :  { %3236 = vmatmul.msk.f32.gmra.mxu0 %vm2186_vm8, %v2131_v23  ;;  %v2137_v52 = vpop.permute.xlu2 %2136  ;;  %v2071_v23 = vmax.f32 %v2039_v25, 0.0 }
 0x26f   :  { %v1508_v46 = vpop.f32.mrf.mxu2  ;;  %1822 = vadd.xlane.f32.xlu2 %v1821_v9  ;;  %v4790_v9 = vadd.f32 %v4733_v35, %v1503_v50  ;;  %v1827_v35 = vsel %vm1817_vm0, %v4741_v16, 0.0  ;;  %v1393_v16 = vadd.f32 %v4737_v63, %v4739_v51 }
 0x270   :  { %v1509_v43 = vadd.f32 %v1508_v46, %v1396_v8  ;;  %v1621_v37 = vpop.f32.mrf.mxu3  ;;  %v1398_v1 = vpop.f32.mrf.mxu1 }
 0x271   :  { %v1675_v46 = vmul.f32 %v4790_v9, %v4790_v9  ;;  %v2002_v18 = vmul.f32 %v4414_v11, %v4790_v9  ;;  %v1506_v15 = vadd.f32 %v4744_v28, %v1393_v16  ;;  %v1399_v62 = vadd.f32 %v1398_v1, %v1285_v61 }
 0x272   :  { %v4752_v33 = vadd.f32 %v1621_v37, %v1509_v43 }
 0x273   :  { %v2040_v4 = vadd.f32 %v4424_v55, %v2002_v18  ;;  %v4816_v38 = vadd.f32 %v4746_v41, %v1506_v15 }
 0x274   :  { %1819 = vadd.xlane.f32.xlu1 %v1818_v49 }
 0x275   :  { %3237 = vmatmul.msk.f32.gmra.mxu0 %vm2186_vm8, %v2133_v40  ;;  %v1738_v51 = vpop.permute.xlu2 %1737 }
 0x277   :  { %v1511_v60 = vpop.f32.mrf.mxu2 }
 0x278   :  { %1825 = vadd.xlane.f32.xlu0 %v1824_v45  ;;  %v1734_v39 = vpop.permute.xlu0 %1733  ;;  %v1624_v20 = vpop.f32.mrf.mxu3 }
 0x279   :  { %v1401_v50 = vpop.f32.mrf.mxu1 }
 0x27c   :  { %v2135_v19 = vpop.permute.xlu1 %2134 }
 0x27d   :  { %3238 = vmatmul.msk.f32.gmra.mxu0 %vm2186_vm8, %v2135_v19  ;;  %v1836_v19 = vsel %vm1817_vm0, %v1734_v39, 0.0 }
 0x284   :  { %v4767_v12 = vpop.permute.xlu1 %1735 }
 0x285   :  { %3239 = vmatmul.msk.f32.gmra.mxu0 %vm2186_vm8, %v2137_v52  ;;  %v2072_v52 = vmax.f32 %v2040_v4, 0.0 }
 0x287   :  { %2152 = vrot.lane.b32.xlu2 %v2069_v7, %s3340_s22  ;;  %v1512_v7 = vadd.f32 %v1511_v60, %v1399_v62 }
 0x288   :  { %v4826_v28 = vpop.permute.xlu2 %1743 }
 0x289   :  { %v4818_v6 = vadd.f32 %v1624_v20, %v1512_v7 }
 0x28b   :  { %v1678_v63 = vmul.f32 %v4818_v6, %v4818_v6  ;;  %v2005_v60 = vmul.f32 %v4414_v11, %v4818_v6 }
 0x28c   :  { %v2139_v56 = vpop.permute.xlu1 %2138  ;;  %2154 = vrot.lane.b32.xlu0 %v2070_v59, %s3340_s22  ;;  %v1676_v59 = vmul.f32 %v4816_v38, %v4816_v38 }
 0x28d   :  { %2150 = vrot.lane.b32.xlu1 %v2068_v42, %s3340_s22  ;;  %3240 = vmatmul.msk.f32.gmra.mxu0 %vm2186_vm8, %v2139_v56  ;;  %v1833_v56 = vsel %vm1817_vm0, %v4748_v58, 0.0 }
 0x28f   :  { %1755 = vrot.lane.b32.xlu2 %v1674_v24, %s3339_s5  ;;  %v1288_v24 = vpop.f32.mrf.mxu0 }
 0x290   :  { %v1740_v30 = vpop.permute.xlu0 %1739 }
 0x291   :  { %v1845_v61 = vsel %vm1817_vm0, %v1740_v30, 0.0  ;;  %v1402_v30 = vadd.f32 %v1401_v50, %v1288_v24 }
 0x294   :  { %v2141_v8 = vpop.permute.xlu1 %2140  ;;  %2156 = vrot.lane.b32.xlu0 %v2071_v23, %s3340_s22 }
 0x295   :  { %1753 = vrot.lane.b32.xlu1 %v1673_v3, %s3339_s5  ;;  %3241 = vmatmul.msk.f32.gmra.mxu0 %vm2186_vm8, %v2141_v8  ;;  %v1514_v3 = vpop.f32.mrf.mxu2  ;;  %v1839_v8 = vsel %vm1817_vm0, %v4767_v12, 0.0 }
 0x297   :  { %v1291_v39 = vpop.f32.mrf.mxu0 }
 0x29c   :  { %v4794_v43 = vpop.permute.xlu1 %1741  ;;  %1757 = vrot.lane.b32.xlu0 %v1675_v46, %s3339_s5  ;;  %v1842_v46 = vsel %vm1817_vm0, %v1738_v51, 0.0 }
 0x29f   :  { %v1294_v18 = vpop.f32.mrf.mxu0 }
 0x2a0   :  { %v4830_v41 = vpop.permute.xlu2 %1749 }
 0x2a4   :  { %v2143_v44 = vpop.permute.xlu1 %2142 }
 0x2a5   :  { %3242 = vmatmul.msk.f32.gmra.mxu0 %vm2186_vm8, %v2143_v44  ;;  %v1627_v44 = vpop.f32.mrf.mxu3 }
 0x2a8   :  { %v4799_v49 = vpop.permute.xlu0 %1745 }
 0x2ac   :  { %v2145_v37 = vpop.permute.xlu1 %2144 }
 0x2ad   :  { %3243 = vmatmul.msk.f32.gmra.mxu0 %vm2186_vm8, %v2145_v37  ;;  %v1630_v16 = vpop.f32.mrf.mxu3 }
 0x2b4   :  { %v2147_v40 = vpop.permute.xlu1 %2146  ;;  %v2149_v45 = vpop.permute.xlu0 %2148 }
 0x2b5   :  { %3244 = vmatmul.msk.f32.gmra.mxu0 %vm2186_vm8, %v2147_v40  ;;  %v2003_v40 = vmul.f32 %v4414_v11, %v4816_v38 }
 0x2b7   :  { %v2041_v12 = vadd.f32 %v4424_v55, %v2003_v40 }
 0x2b8   :  { %1828 = vadd.xlane.f32.xlu2 %v1827_v35  ;;  %v1404_v35 = vpop.f32.mrf.mxu1 }
 0x2b9   :  { %v2073_v1 = vmax.f32 %v2041_v12, 0.0 }
 0x2bc   :  { %v4828_v27 = vpop.permute.xlu1 %1747 }
 0x2bd   :  { %3245 = vmatmul.msk.f32.gmra.mxu0 %vm2186_vm8, %v2149_v45  ;;  %v1517_v45 = vpop.f32.mrf.mxu2 }
 0x2bf   :  { %1831 = vadd.xlane.f32.xlu1 %v1830_v5  ;;  %v1405_v5 = vadd.f32 %v1404_v35, %v1291_v39 }
 0x2c0   :  { %v4836_v25 = vpop.permute.xlu0 %1751  ;;  %v1407_v62 = vpop.f32.mrf.mxu1 }
 0x2c1   :  { %v1518_v4 = vadd.f32 %v1517_v45, %v1405_v5 }
 0x2c3   :  { %v4855_v15 = vadd.f32 %v1630_v16, %v1518_v4 }
 0x2c5   :  { %v1520_v7 = vpop.f32.mrf.mxu2  ;;  %v2007_v20 = vmul.f32 %v4414_v11, %v4855_v15 }
 0x2c6   :  { %1837 = vadd.xlane.f32.xlu0 %v1836_v19 }
 0x2c7   :  { %v2045_v50 = vadd.f32 %v4424_v55, %v2007_v20 }
 0x2c9   :  { %v2077_v35 = vmax.f32 %v2045_v50, 0.0 }
 0x2d0   :  { %2158 = vrot.lane.b32.xlu2 %v2072_v52, %s3340_s22  ;;  %v2043_v52 = vadd.f32 %v4424_v55, %v2005_v60 }
 0x2d2   :  { %v2075_v24 = vmax.f32 %v2043_v52, 0.0 }
 0x2d8   :  { %1759 = vrot.lane.b32.xlu1 %v1676_v59, %s3339_s5  ;;  %v1515_v59 = vadd.f32 %v1514_v3, %v1402_v30 }
 0x2da   :  { %1763 = vrot.lane.b32.xlu0 %v1678_v63, %s3339_s5  ;;  %v1408_v63 = vadd.f32 %v1407_v62, %v1294_v18  ;;  %v4867_v39 = vadd.f32 %v1627_v44, %v1515_v59  ;;  %v1410_v18 = vpop.f32.mrf.mxu1 }
 0x2dc   :  { %v1679_v44 = vmul.f32 %v4867_v39, %v4867_v39 }
 0x2e2   :  { %v4838_v31 = vpop.xlane.xlu2 %1822  ;;  %v1413_v50 = vpop.f32.mrf.mxu1 }
 0x2e7   :  { %v4832_v42 = vpop.xlane.xlu1 %1819 }
 0x2ea   :  { %v2153_v37 = vpop.permute.xlu2 %2152 }
 0x2eb   :  { %v4844_v58 = vpop.xlane.xlu0 %1825 }
 0x2f2   :  { %v4881_v5 = vpop.permute.xlu2 %1755 }
 0x2f9   :  { %1834 = vadd.xlane.f32.xlu2 %v1833_v56  ;;  %v1677_v56 = vmul.f32 %v4752_v33, %v4752_v33 }
 0x2fe   :  { %v2155_v19 = vpop.permute.xlu0 %2154 }
 0x2ff   :  { %v2151_v23 = vpop.permute.xlu1 %2150 }
 0x300   :  { %3246 = vmatmul.msk.f32.gmra.mxu0 %vm2186_vm8, %v2151_v23  ;;  %v2004_v23 = vmul.f32 %v4414_v11, %v4752_v33 }
 0x302   :  { %1840 = vadd.xlane.f32.xlu1 %v1839_v8  ;;  %v1297_v8 = vpop.f32.mrf.mxu0  ;;  %v2042_v3 = vadd.f32 %v4424_v55, %v2004_v23 }
 0x303   :  { %v1411_v60 = vadd.f32 %v1410_v18, %v1297_v8 }
 0x304   :  { %1843 = vadd.xlane.f32.xlu0 %v1842_v46  ;;  %v1521_v46 = vadd.f32 %v1520_v7, %v1408_v63  ;;  %v2074_v45 = vmax.f32 %v2042_v3, 0.0  ;;  %v1680_v63 = vmul.f32 %v4855_v15, %v4855_v15 }
 0x306   :  { %v2157_v51 = vpop.permute.xlu0 %2156 }
 0x308   :  { %3247 = vmatmul.msk.f32.gmra.mxu0 %vm2186_vm8, %v2153_v37  ;;  %v1633_v37 = vpop.f32.mrf.mxu3 }
 0x309   :  { %v4871_v40 = vadd.f32 %v1633_v37, %v1521_v46  ;;  %v1851_v37 = vsel %vm1817_vm0, %v4826_v28, 0.0 }
 0x30a   :  { %v1300_v8 = vpop.f32.mrf.mxu0 }
 0x30b   :  { %v2008_v12 = vmul.f32 %v4414_v11, %v4871_v40  ;;  %v1681_v16 = vmul.f32 %v4871_v40, %v4871_v40 }
 0x30c   :  { %1846 = vadd.xlane.f32.xlu0 %v1845_v61  ;;  %v2006_v61 = vmul.f32 %v4414_v11, %v4867_v39 }
 0x30d   :  { %v2046_v4 = vadd.f32 %v4424_v55, %v2008_v12  ;;  %v1848_v12 = vsel %vm1817_vm0, %v4794_v43, 0.0 }
 0x30f   :  { %v2078_v52 = vmax.f32 %v2046_v4, 0.0 }
 0x310   :  { %3248 = vmatmul.msk.f32.gmra.mxu0 %vm2186_vm8, %v2155_v19  ;;  %v2044_v19 = vadd.f32 %v4424_v55, %v2006_v61  ;;  %v1636_v20 = vpop.f32.mrf.mxu3 }
 0x311   :  { %2160 = vrot.lane.b32.xlu2 %v2073_v1, %s3340_s22  ;;  %v1523_v1 = vpop.f32.mrf.mxu2 }
 0x312   :  { %v2076_v62 = vmax.f32 %v2044_v19, 0.0  ;;  %v1524_v30 = vadd.f32 %v1523_v1, %v1411_v60  ;;  %v1303_v61 = vpop.f32.mrf.mxu0  ;;  %v1414_v60 = vadd.f32 %v1413_v50, %v1300_v8 }
 0x314   :  { %v4893_v59 = vadd.f32 %v1636_v20, %v1524_v30 }
 0x316   :  { %5467 = vst [vmem:[#allocation8_spill] sm:$0xff] %v4893_v59 }
 0x318   :  { %3249 = vmatmul.msk.f32.gmra.mxu0 %vm2186_vm8, %v2157_v51  ;;  %v1682_v51 = vmul.f32 %v4893_v59, %v4893_v59 }
 0x319   :  { %1761 = vrot.lane.b32.xlu2 %v1677_v56, %s3339_s5  ;;  %v2009_v56 = vmul.f32 %v4414_v11, %v4893_v59  ;;  %v1526_v3 = vpop.f32.mrf.mxu2 }
 0x31a   :  { %v1306_v8 = vpop.f32.mrf.mxu0 }
 0x31b   :  { %2164 = vrot.lane.b32.xlu1 %v2075_v24, %s3340_s22  ;;  %v2047_v46 = vadd.f32 %v4424_v55, %v2009_v56 }
 0x31d   :  { %v2079_v24 = vmax.f32 %v2047_v46, 0.0 }
 0x320   :  { %2168 = vrot.lane.b32.xlu0 %v2077_v35, %s3340_s22  ;;  %v1639_v35 = vpop.f32.mrf.mxu3 }
 0x321   :  { %2162 = vrot.lane.b32.xlu2 %v2074_v45, %s3340_s22  ;;  %v1416_v45 = vpop.f32.mrf.mxu1 }
 0x322   :  { %v1417_v19 = vadd.f32 %v1416_v45, %v1303_v61 }
 0x323   :  { %1765 = vrot.lane.b32.xlu1 %v1679_v44, %s3339_s5  ;;  %v1529_v44 = vpop.f32.mrf.mxu2 }
 0x324   :  { %v1530_v18 = vadd.f32 %v1529_v44, %v1417_v19  ;;  %v1309_v19 = vpop.f32.mrf.mxu0 }
 0x328   :  { %1769 = vrot.lane.b32.xlu0 %v1681_v16, %s3339_s5  ;;  %v1642_v4 = vpop.f32.mrf.mxu3  ;;  %v1854_v16 = vsel %vm1817_vm0, %v4799_v49, 0.0 }
 0x329   :  { %2166 = vrot.lane.b32.xlu2 %v2076_v62, %s3340_s22  ;;  %v4910_v1 = vadd.f32 %v1642_v4, %v1530_v18  ;;  %v1527_v62 = vadd.f32 %v1526_v3, %v1414_v60  ;;  %v1419_v56 = vpop.f32.mrf.mxu1 }
 0x32a   :  { %v1420_v4 = vadd.f32 %v1419_v56, %v1306_v8 }
 0x32b   :  { %v4890_v7 = vpop.xlane.xlu2 %1828  ;;  %2170 = vrot.lane.b32.xlu1 %v2078_v52, %s3340_s22  ;;  %v1684_v28 = vmul.f32 %v4910_v1, %v4910_v1  ;;  %v4917_v30 = vadd.f32 %v1639_v35, %v1527_v62  ;;  %v4921_v52 = vpop.permute.xlu1 %1753  ;;  %v2011_v35 = vmul.f32 %v4414_v11, %v4910_v1 }
 0x32c   :  { %v1532_v46 = vpop.f32.mrf.mxu2 }
 0x32d   :  { %5468 = vst [vmem:[#allocation9_spill] sm:$0xff] %v4917_v30  ;;  %v1683_v20 = vmul.f32 %v4917_v30, %v4917_v30  ;;  %v1533_v60 = vadd.f32 %v1532_v46, %v1420_v4 }
 0x330   :  { %v1645_v45 = vpop.f32.mrf.mxu3 }
 0x331   :  { %1767 = vrot.lane.b32.xlu2 %v1680_v63, %s3339_s5  ;;  %v4925_v63 = vpop.permute.xlu0 %1757  ;;  %v1422_v44 = vpop.f32.mrf.mxu1 }
 0x333   :  { %v2159_v23 = vpop.permute.xlu2 %2158  ;;  %1771 = vrot.lane.b32.xlu1 %v1682_v51, %s3339_s5  ;;  %v2010_v51 = vmul.f32 %v4414_v11, %v4917_v30 }
 0x334   :  { %3250 = vmatmul.msk.f32.gmra.mxu0 %vm2186_vm8, %v2159_v23  ;;  %v4930_v23 = vpop.xlane.xlu1 %1831  ;;  %v1535_v18 = vpop.f32.mrf.mxu2 }
 0x339   :  { %v4934_v50 = vpop.xlane.xlu0 %1837 }
 0x33b   :  { %2172 = vrot.lane.b32.xlu1 %v2079_v24, %s3340_s22  ;;  %v2048_v24 = vadd.f32 %v4424_v55, %v2010_v51 }
 0x34a   :  { %v4940_v61 = vpop.permute.xlu1 %1759 }
 0x352   :  { %1852 = vadd.xlane.f32.xlu0 %v1851_v37  ;;  %v2080_v37 = vmax.f32 %v2048_v24, 0.0  ;;  %v1648_v24 = vpop.f32.mrf.mxu3 }
 0x35a   :  { %1849 = vadd.xlane.f32.xlu2 %v1848_v12  ;;  %v2049_v12 = vadd.f32 %v4424_v55, %v2011_v35 }
 0x365   :  { %1855 = vadd.xlane.f32.xlu1 %v1854_v16  ;;  %v1423_v16 = vadd.f32 %v1422_v44, %v1309_v19  ;;  %v1857_v44 = vsel %vm1817_vm0, %v4828_v27, 0.0  ;;  %v1860_v27 = vsel %vm1817_vm0, %v4830_v41, 0.0 }
 0x366   :  { %1775 = vrot.lane.b32.xlu0 %v1684_v28, %s3339_s5  ;;  %v4944_v28 = vpop.permute.xlu0 %1763 }
 0x367   :  { %v1536_v62 = vadd.f32 %v1535_v18, %v1423_v16 }
 0x369   :  { %v4952_v35 = vadd.f32 %v1648_v24, %v1536_v62  ;;  %v1425_v62 = vpop.f32.mrf.mxu1 }
 0x36b   :  { %5469 = vst [vmem:[#allocation13_spill] sm:$0xff] %v4952_v35  ;;  %v2013_v8 = vmul.f32 %v4414_v11, %v4952_v35 }
 0x36c   :  { %v4919_v43 = vpop.xlane.xlu2 %1834 }
 0x372   :  { %1773 = vrot.lane.b32.xlu2 %v1683_v20, %s3339_s5 }
 0x374   :  { %v2161_v49 = vpop.permute.xlu2 %2160 }
 0x375   :  { %3251 = vmatmul.msk.f32.gmra.mxu0 %vm2186_vm8, %v2161_v49  ;;  %v2081_v49 = vmax.f32 %v2049_v12, 0.0  ;;  %v4946_v51 = vpop.xlane.xlu1 %1840  ;;  %v1312_v12 = vpop.f32.mrf.mxu0 }
 0x377   :  { %v4954_v30 = vpop.xlane.xlu0 %1843 }
 0x37c   :  { %v4936_v3 = vpop.permute.xlu2 %1761 }
 0x37e   :  { %2174 = vrot.lane.b32.xlu1 %v2080_v37, %s3340_s22  ;;  %v4950_v37 = vadd.f32 %v1645_v45, %v1533_v60  ;;  %v2051_v45 = vadd.f32 %v4424_v55, %v2013_v8  ;;  %v1863_v60 = vsel %vm1817_vm0, %v4836_v25, 0.0  ;;  %v1426_v8 = vadd.f32 %v1425_v62, %v1312_v12 }
 0x37f   :  { %v4965_v19 = vpop.xlane.xlu0 %1846 }
 0x380   :  { %v1685_v56 = vmul.f32 %v4950_v37, %v4950_v37  ;;  %v2083_v18 = vmax.f32 %v2051_v45, 0.0  ;;  %v1428_v45 = vpop.f32.mrf.mxu1 }
 0x384   :  { %v2163_v20 = vpop.permute.xlu2 %2162 }
 0x385   :  { %3252 = vmatmul.msk.f32.gmra.mxu0 %vm2186_vm8, %v2163_v20  ;;  %v1538_v20 = vpop.f32.mrf.mxu2 }
 0x386   :  { %2176 = vrot.lane.b32.xlu1 %v2081_v49, %s3340_s22 }
 0x38c   :  { %v2167_v4 = vpop.permute.xlu2 %2166 }
 0x38d   :  { %v2165_v46 = vpop.permute.xlu1 %2164  ;;  %v1541_v41 = vpop.f32.mrf.mxu2 }
 0x38e   :  { %1777 = vrot.lane.b32.xlu1 %v1685_v56, %s3339_s5  ;;  %3253 = vmatmul.msk.f32.gmra.mxu0 %vm2186_vm8, %v2165_v46  ;;  %v1315_v56 = vpop.f32.mrf.mxu0  ;;  %v1539_v46 = vadd.f32 %v1538_v20, %v1426_v8 }
 0x390   :  { %1858 = vadd.xlane.f32.xlu0 %v1857_v44  ;;  %v1651_v44 = vpop.f32.mrf.mxu3 }
 0x391   :  { %v4980_v25 = vadd.f32 %v1651_v44, %v1539_v46  ;;  %v1686_v44 = vmul.f32 %v4952_v35, %v4952_v35 }
 0x392   :  { %v2169_v49 = vpop.permute.xlu0 %2168 }
 0x393   :  { %5470 = vst [vmem:[#allocation11_spill] sm:$0xff] %v4980_v25  ;;  %v1687_v12 = vmul.f32 %v4980_v25, %v4980_v25 }
 0x395   :  { %v4967_v16 = vpop.permute.xlu1 %1765 }
 0x396   :  { %2180 = vrot.lane.b32.xlu1 %v2083_v18, %s3340_s22  ;;  %3254 = vmatmul.msk.f32.gmra.mxu0 %vm2186_vm8, %v2167_v4  ;;  %v4978_v4 = vpop.f32.mrf.mxu0 }
 0x398   :  { %1864 = vadd.xlane.f32.xlu0 %v1863_v60  ;;  %v1429_v60 = vadd.f32 %v1428_v45, %v1315_v56  ;;  %v1654_v62 = vpop.f32.mrf.mxu3  ;;  %v1866_v45 = vsel %vm1817_vm0, %v4921_v52, 0.0  ;;  %v1915_v52 = vsub.f32 %v4838_v31, %v4439_v2  ;;  %v5026_v31 = vld [vmem:[%s5431_s7] ss:$0 sm:$0xff]  ;;  %s3342_s7 = smov [#allocation5]  }
 0x39a   :  { %v1542_v59 = vadd.f32 %v1541_v41, %v1429_v60  ;;  %v2014_v60 = vmul.f32 %v4414_v11, %v4980_v25 }
 0x39b   :  { %1861 = vadd.xlane.f32.xlu2 %v1860_v27  ;;  %v2012_v27 = vmul.f32 %v4414_v11, %v4950_v37 }
 0x39c   :  { %v4989_v8 = vadd.f32 %v1654_v62, %v1542_v59  ;;  %v1914_v59 = vsub.f32 %v4832_v42, %v4418_v32 }
 0x39d   :  { %v2171_v24 = vpop.permute.xlu1 %2170 }
 0x39e   :  { %3255 = vmatmul.msk.f32.gmra.mxu0 %vm2186_vm8, %v2169_v49  ;;  %v2050_v49 = vadd.f32 %v4424_v55, %v2012_v27  ;;  %5471 = vst [vmem:[#allocation12_spill] sm:$0xff] %v4989_v8  ;;  %v2271_v46 = vpop.f32.mrf.mxu0  ;;  %v1688_v56 = vmul.f32 %v4989_v8, %v4989_v8  ;;  %v1946_v41 = vmul.f32 0.5, %v1914_v59  ;;  %v2052_v27 = vadd.f32 %v4424_v55, %v2014_v60 }
 0x39f   :  { %v2015_v62 = vmul.f32 %v4414_v11, %v4989_v8  ;;  %v1916_v11 = vsub.f32 %v4844_v58, %v4459_v36  ;;  %v5034_v58 = vld [vmem:[%s5432_s8] ss:$0 sm:$0xff]  ;;  %s2836_s8 = sshll.u32 %s3342_s7, 4  ;;  %s2837_s8 = int_to_ptr.vmem [resolvable:$true] %s2836_s8 }
 0x3a1   :  { %v2053_v42 = vadd.f32 %v4424_v55, %v2015_v62  ;;  %v1948_v55 = vmul.f32 0.5, %v1916_v11  ;;  %v2368_v11 = vmul.f32 %v5026_v31, %v4978_v4 }
 0x3a5   :  { %v4976_v18 = vpop.permute.xlu1 %1771 }
 0x3a6   :  { %3256 = vmatmul.msk.f32.gmra.mxu0 %vm2186_vm8, %v2171_v24  ;;  %v2082_v24 = vmax.f32 %v2050_v49, 0.0  ;;  %v1947_v49 = vmul.f32 0.5, %v1915_v52 }
 0x3ac   :  { %1781 = vrot.lane.b32.xlu0 %v1687_v12, %s3339_s5  ;;  %v2084_v12 = vmax.f32 %v2052_v27, 0.0 }
 0x3ad   :  { %v2173_v20 = vpop.permute.xlu1 %2172 }
 0x3ae   :  { %3257 = vmatmul.msk.f32.gmra.mxu0 %vm2186_vm8, %v2173_v20  ;;  %v2085_v20 = vmax.f32 %v2053_v42, 0.0 }
 0x3b3   :  { %2178 = vrot.lane.b32.xlu2 %v2082_v24, %s3340_s22  ;;  %v1869_v24 = vsel %vm1817_vm0, %v4881_v5, 0.0 }
 0x3b4   :  { %1783 = vrot.lane.b32.xlu0 %v1688_v56, %s3339_s5 }
 0x3bb   :  { %1779 = vrot.lane.b32.xlu2 %v1686_v44, %s3339_s5  ;;  %v2274_v44 = vpop.f32.mrf.mxu0 }
 0x3bc   :  { %v2370_v5 = vmul.f32 %v5026_v31, %v2274_v44 }
 0x3be   :  { %v2406_v27 = vadd.f32 %v5034_v58, %v2370_v5  ;;  %v1920_v5 = vsub.f32 %v4934_v50, %v4541_v21 }
 0x3c0   :  { %1867 = vadd.xlane.f32.xlu1 %v1866_v45  ;;  %v5028_v45 = vpop.permute.xlu2 %1767  ;;  %v2438_v42 = vmax.f32 %v2406_v27, 0.0  ;;  %v2369_v27 = vmul.f32 %v5026_v31, %v2271_v46 }
 0x3c3   :  { %2500 = vrot.lane.b32.xlu2 %v1946_v41, %s3341_s6  ;;  %v2277_v60 = vpop.f32.mrf.mxu0 }
 0x3cb   :  { %2182 = vrot.lane.b32.xlu2 %v2084_v12, %s3340_s22  ;;  %v1872_v12 = vsel %vm1817_vm0, %v4925_v63, 0.0 }
 0x3cd   :  { %v5040_v62 = vpop.xlane.xlu2 %1849 }
 0x3d3   :  { %2184 = vrot.lane.b32.xlu2 %v2085_v20, %s3340_s22  ;;  %v2634_v20 = vsel %vm2186_vm8, %v2438_v42, 0.0 }
 0x3d5   :  { %v5043_v52 = vpop.permute.xlu2 %1773 }
 0x3d8   :  { %v5017_v56 = vpop.xlane.xlu1 %1855 }
 0x3d9   :  { %2502 = vrot.lane.b32.xlu1 %v1947_v49, %s3341_s6  ;;  %v1917_v49 = vsub.f32 %v4890_v7, %v4478_v48 }
 0x3db   :  { %v1949_v44 = vmul.f32 0.5, %v1917_v49  ;;  %v2405_v49 = vadd.f32 %v5034_v58, %v2369_v27  ;;  %v1875_v27 = vsel %vm1817_vm0, %v4940_v61, 0.0 }
 0x3dd   :  { %v2437_v46 = vmax.f32 %v2405_v49, 0.0  ;;  %v2371_v49 = vmul.f32 %v5026_v31, %v2277_v60 }
 0x3de   :  { %1870 = vadd.xlane.f32.xlu0 %v1869_v24 }
 0x3df   :  { %v2407_v61 = vadd.f32 %v5034_v58, %v2371_v49 }
 0x3f0   :  { %v2175_v59 = vpop.permute.xlu1 %2174 }
 0x3f1   :  { %3258 = vmatmul.msk.f32.gmra.mxu0 %vm2186_vm8, %v2175_v59  ;;  %v2404_v59 = vadd.f32 %v5034_v58, %v2368_v11 }
 0x3f2   :  { %2504 = vrot.lane.b32.xlu0 %v1948_v55, %s3341_s6  ;;  %v2280_v55 = vpop.f32.mrf.mxu0 }
 0x3f3   :  { %v2436_v4 = vmax.f32 %v2404_v59, 0.0  ;;  %v2372_v49 = vmul.f32 %v5026_v31, %v2280_v55 }
 0x3f8   :  { %v2177_v41 = vpop.permute.xlu1 %2176 }
 0x3f9   :  { %3259 = vmatmul.msk.f32.gmra.mxu0 %vm2186_vm8, %v2177_v41  ;;  %v1919_v41 = vsub.f32 %v4919_v43, %v4526_v26  ;;  %v1923_v43 = vsub.f32 %v4965_v19, %v4616_v53  ;;  %v5078_v19 = vpop.permute.xlu0 %1769 }
 0x3fa   :  { %v2283_v50 = vpop.f32.mrf.mxu0 }
 0x3fb   :  { %v1951_v42 = vmul.f32 0.5, %v1919_v41  ;;  %v1955_v59 = vmul.f32 0.5, %v1923_v43 }
 0x3fc   :  { %1873 = vadd.xlane.f32.xlu2 %v1872_v12  ;;  %v1952_v12 = vmul.f32 0.5, %v1920_v5  ;;  %v2631_v5 = vsel %vm2186_vm8, %v2437_v46, 0.0 }
 0x400   :  { %v5051_v63 = vpop.permute.xlu1 %1777 }
 0x403   :  { %2635 = vadd.xlane.f32.xlu1 %v2634_v20  ;;  %v2628_v20 = vsel %vm2186_vm8, %v2436_v4, 0.0 }
 0x408   :  { %v2181_v11 = vpop.permute.xlu1 %2180 }
 0x40e   :  { %v5047_v24 = vpop.xlane.xlu2 %1861 }
 0x414   :  { %2506 = vrot.lane.b32.xlu2 %v1949_v44, %s3341_s6 }
 0x416   :  { %v2179_v7 = vpop.permute.xlu2 %2178 }
 0x417   :  { %3260 = vmatmul.msk.f32.gmra.mxu0 %vm2186_vm8, %v2179_v7  ;;  %v5074_v7 = vpop.f32.mrf.mxu0 }
 0x41c   :  { %2510 = vrot.lane.b32.xlu1 %v1951_v42, %s3341_s6  ;;  %2512 = vrot.lane.b32.xlu2 %v1952_v12, %s3341_s6  ;;  %v5081_v42 = vpop.xlane.xlu0 %1852 }
 0x41d   :  { %2629 = vadd.xlane.f32.xlu0 %v2628_v20 }
 0x41e   :  { %v5067_v44 = vpop.permute.xlu2 %1779 }
 0x41f   :  { %3261 = vmatmul.msk.f32.gmra.mxu0 %vm2186_vm8, %v2181_v11  ;;  %v2289_v12 = vpop.f32.mrf.mxu0  ;;  %v1918_v11 = vsub.f32 %v4930_v23, %v4498_v0 }
 0x424   :  { %2518 = vrot.lane.b32.xlu2 %v1955_v59, %s3341_s6  ;;  %v5090_v46 = vpop.permute.xlu0 %1775  ;;  %v1950_v59 = vmul.f32 0.5, %v1918_v11 }
 0x425   :  { %2632 = vadd.xlane.f32.xlu0 %v2631_v5  ;;  %v2375_v5 = vmul.f32 %v5026_v31, %v2289_v12 }
 0x426   :  { %v5072_v41 = vpop.permute.xlu2 %2500 }
 0x427   :  { %v5085_v43 = vpop.f32.mrf.mxu0 }
 0x42c   :  { %v5096_v35 = vpop.xlane.xlu0 %1858 }
 0x42d   :  { %1876 = vadd.xlane.f32.xlu0 %v1875_v27  ;;  %v2439_v27 = vmax.f32 %v2407_v61, 0.0  ;;  %v1881_v61 = vsel %vm1817_vm0, %v4944_v28, 0.0 }
 0x42e   :  { %v2183_v4 = vpop.permute.xlu2 %2182 }
 0x42f   :  { %3262 = vmatmul.msk.f32.gmra.mxu0 %vm2186_vm8, %v2183_v4  ;;  %v2411_v4 = vadd.f32 %v5034_v58, %v2375_v5  ;;  %v2637_v60 = vsel %vm2186_vm8, %v2439_v27, 0.0 }
 0x431   :  { %v2443_v25 = vmax.f32 %v2411_v4, 0.0 }
 0x433   :  { %v2649_v12 = vsel %vm2186_vm8, %v2443_v25, 0.0 }
 0x434   :  { %v1865_v5 = vpop.xlane.xlu0 %1864 }
 0x436   :  { %v2185_v20 = vpop.permute.xlu2 %2184 }
 0x437   :  { %3263 = vmatmul.msk.f32.gmra.mxu0 %vm2186_vm8, %v2185_v20  ;;  %v2295_v20 = vpop.f32.mrf.mxu0 }
 0x438   :  { %v2377_v23 = vmul.f32 %v5026_v31, %v2295_v20 }
 0x43a   :  { %v2413_v11 = vadd.f32 %v5034_v58, %v2377_v23 }
 0x43c   :  { %v2445_v27 = vmax.f32 %v2413_v11, 0.0  ;;  %v5109_v25 = vpop.permute.xlu0 %1781  ;;  %v5116_v11 = vpop.xlane.xlu1 %1867 }
 0x43e   :  { %v2655_v4 = vsel %vm2186_vm8, %v2445_v27, 0.0 }
 0x441   :  { %2508 = vrot.lane.b32.xlu0 %v1950_v59, %s3341_s6  ;;  %v2408_v59 = vadd.f32 %v5034_v58, %v2372_v49 }
 0x443   :  { %v2440_v8 = vmax.f32 %v2408_v59, 0.0 }
 0x444   :  { %v5112_v49 = vpop.permute.xlu0 %1783 }
 0x445   :  { %v2640_v55 = vsel %vm2186_vm8, %v2440_v8, 0.0  ;;  %v1926_v8 = vsub.f32 %v5017_v56, %v4673_v54  ;;  %v1922_v56 = vsub.f32 %v4954_v30, %v4593_v17  ;;  %v1905_v30 = vsel %vm1817_vm0, %v5067_v44, 0.0 }
 0x446   :  { %2638 = vadd.xlane.f32.xlu1 %v2637_v60  ;;  %v2373_v60 = vmul.f32 %v5026_v31, %v2283_v50  ;;  %v1887_v50 = vsel %vm1817_vm0, %v5028_v45, 0.0  ;;  %v1884_v45 = vsel %vm1817_vm0, %v4967_v16, 0.0 }
 0x447   :  { %v1958_v59 = vmul.f32 0.5, %v1926_v8 }
 0x448   :  { %v2409_v20 = vadd.f32 %v5034_v58, %v2373_v60 }
 0x44a   :  { %v2441_v23 = vmax.f32 %v2409_v20, 0.0 }
 0x44b   :  { %v2503_v27 = vpop.permute.xlu1 %2502 }
 0x44c   :  { %v2643_v28 = vsel %vm2186_vm8, %v2441_v23, 0.0  ;;  %v1954_v23 = vmul.f32 0.5, %v1922_v56  ;;  %v1929_v56 = vsub.f32 %v1865_v5, %v4725_v10 }
 0x44d   :  { %2650 = vadd.xlane.f32.xlu2 %v2649_v12 }
 0x44e   :  { %1882 = vadd.xlane.f32.xlu1 %v1881_v61  ;;  %v1878_v61 = vsel %vm1817_vm0, %v4936_v3, 0.0  ;;  %v1921_v3 = vsub.f32 %v4946_v51, %v4564_v34 }
 0x451   :  { %v5120_v12 = vpop.xlane.xlu0 %1870 }
 0x455   :  { %2656 = vadd.xlane.f32.xlu2 %v2655_v4 }
 0x456   :  { %2641 = vadd.xlane.f32.xlu1 %v2640_v55 }
 0x45e   :  { %2644 = vadd.xlane.f32.xlu1 %v2643_v28  ;;  %v1953_v28 = vmul.f32 0.5, %v1921_v3  ;;  %v1961_v3 = vmul.f32 0.5, %v1929_v56 }
 0x464   :  { %v2505_v60 = vpop.permute.xlu0 %2504 }
 0x465   :  { %v2598_v4 = vadd.f32 %v2505_v60, %v4459_v36  ;;  %v2596_v36 = vadd.f32 %v5072_v41, %v4418_v32  ;;  %v2374_v32 = vmul.f32 %v5026_v31, %v5074_v7  ;;  %v2376_v41 = vmul.f32 %v5026_v31, %v5085_v43 }
 0x466   :  { %1888 = vadd.xlane.f32.xlu1 %v1887_v50  ;;  %v5136_v50 = vpop.f32.mrf.mxu0 }
 0x467   :  { %v2412_v44 = vadd.f32 %v5034_v58, %v2376_v41 }
 0x46b   :  { %1879 = vadd.xlane.f32.xlu0 %v1878_v61 }
 0x46d   :  { %2524 = vrot.lane.b32.xlu2 %v1958_v59, %s3341_s6  ;;  %v2597_v59 = vadd.f32 %v2503_v27, %v4439_v2  ;;  %v1893_v2 = vsel %vm1817_vm0, %v4976_v18, 0.0  ;;  %v2410_v27 = vadd.f32 %v5034_v58, %v2374_v32 }
 0x46e   :  { %v5144_v61 = vpop.f32.mrf.mxu0 }
 0x473   :  { %1885 = vadd.xlane.f32.xlu0 %v1884_v45  ;;  %v1874_v45 = vpop.xlane.xlu2 %1873 }
 0x476   :  { %v2636_v55 = vpop.xlane.xlu1 %2635 }
 0x477   :  { %v5128_v20 = vadd.f32 %v2636_v55, %v2598_v4  ;;  %v5149_v4 = vpop.f32.mrf.mxu0 }
 0x47b   :  { %v2507_v55 = vpop.permute.xlu2 %2506 }
 0x47f   :  { %2516 = vrot.lane.b32.xlu1 %v1954_v23, %s3341_s6  ;;  %v5160_v23 = vpop.f32.mrf.mxu0 }
 0x483   :  { %v5162_v7 = vpop.permute.xlu2 %2512 }
 0x487   :  { %2514 = vrot.lane.b32.xlu0 %v1953_v28, %s3341_s6  ;;  %v2442_v28 = vmax.f32 %v2410_v27, 0.0  ;;  %v5167_v18 = vpop.f32.mrf.mxu0 }
 0x489   :  { %v2646_v43 = vsel %vm2186_vm8, %v2442_v28, 0.0 }
 0x48e   :  { %v2511_v5 = vpop.permute.xlu1 %2510 }
 0x490   :  { %v2630_v16 = vpop.xlane.xlu0 %2629 }
 0x491   :  { %v5140_v8 = vadd.f32 %v2630_v16, %v2596_v36  ;;  %v2444_v36 = vmax.f32 %v2412_v44, 0.0  ;;  %v5174_v44 = vpop.f32.mrf.mxu0 }
 0x493   :  { %v2652_v16 = vsel %vm2186_vm8, %v2444_v36, 0.0 }
 0x496   :  { %1906 = vadd.xlane.f32.xlu2 %v1905_v30  ;;  %v2599_v30 = vadd.f32 %v2507_v55, %v4478_v48  ;;  %v1924_v55 = vsub.f32 %v5040_v62, %v4642_v13 }
 0x498   :  { %v2633_v51 = vpop.xlane.xlu0 %2632 }
 0x499   :  { %v5147_v60 = vadd.f32 %v2633_v51, %v2597_v59  ;;  %v2519_v59 = vpop.permute.xlu2 %2518  ;;  %v1890_v51 = vsel %vm1817_vm0, %v5078_v19, 0.0  ;;  %v2316_v48 = vpop.f32.mrf.mxu0 }
 0x49a   :  { %v2605_v19 = vadd.f32 %v2519_v59, %v4616_v53  ;;  %v2601_v53 = vadd.f32 %v2511_v5, %v4526_v26  ;;  %v2378_v26 = vmul.f32 %v5026_v31, %v5136_v50  ;;  %v1899_v5 = vsel %vm1817_vm0, %v5090_v46, 0.0 }
 0x4a0   :  { %v5176_v56 = vpop.xlane.xlu0 %1876 }
 0x4a9   :  { %1894 = vadd.xlane.f32.xlu1 %v1893_v2 }
 0x4ae   :  { %2530 = vrot.lane.b32.xlu2 %v1961_v3, %s3341_s6  ;;  %v1925_v3 = vsub.f32 %v5081_v42, %v4654_v14  ;;  %v1956_v42 = vmul.f32 0.5, %v1924_v55 }
 0x4b0   :  { %v1957_v36 = vmul.f32 0.5, %v1925_v3 }
 0x4b1   :  { %2647 = vadd.xlane.f32.xlu0 %v2646_v43  ;;  %2653 = vadd.xlane.f32.xlu1 %v2652_v16 }
 0x4b3   :  { %v2509_v28 = vpop.permute.xlu0 %2508 }
 0x4b4   :  { %v2600_v43 = vadd.f32 %v2509_v28, %v4498_v0 }
 0x4b9   :  { %1891 = vadd.xlane.f32.xlu0 %v1890_v51  ;;  %v2639_v32 = vpop.xlane.xlu1 %2638 }
 0x4ba   :  { %v5172_v41 = vadd.f32 %v2639_v32, %v2599_v30  ;;  %v2384_v32 = vmul.f32 %v5026_v31, %v2316_v48  ;;  %v1932_v48 = vsub.f32 %v1874_v45, %v4790_v9  ;;  %v1896_v45 = vsel %vm1817_vm0, %v5043_v52, 0.0 }
 0x4bb   :  { %v1928_v52 = vsub.f32 %v5047_v24, %v4710_v22 }
 0x4bc   :  { %v2420_v62 = vadd.f32 %v5034_v58, %v2384_v32  ;;  %v5211_v32 = vpop.f32.mrf.mxu0 }
 0x4be   :  { %v2452_v0 = vmax.f32 %v2420_v62, 0.0 }
 0x4c0   :  { %v2651_v2 = vpop.xlane.xlu2 %2650  ;;  %v2676_v28 = vsel %vm2186_vm8, %v2452_v0, 0.0  ;;  %v1902_v0 = vsel %vm1817_vm0, %v5051_v63, 0.0 }
 0x4c1   :  { %v5178_v27 = vpop.xlane.xlu1 %1882 }
 0x4c8   :  { %v2657_v16 = vpop.xlane.xlu2 %2656 }
 0x4c9   :  { %v5186_v30 = vadd.f32 %v2657_v16, %v2605_v19  ;;  %v2642_v51 = vpop.xlane.xlu1 %2641 }
 0x4ca   :  { %v5189_v10 = vadd.f32 %v2642_v51, %v2600_v43  ;;  %2522 = vrot.lane.b32.xlu1 %v1957_v36, %s3341_s6  ;;  %v1964_v43 = vmul.f32 0.5, %v1932_v48  ;;  %v2414_v51 = vadd.f32 %v5034_v58, %v2378_v26 }
 0x4cd   :  { %2520 = vrot.lane.b32.xlu0 %v1956_v42, %s3341_s6 }
 0x4d1   :  { %v2645_v59 = vpop.xlane.xlu1 %2644 }
 0x4d2   :  { %v5195_v3 = vadd.f32 %v2645_v59, %v2601_v53  ;;  %v2446_v53 = vmax.f32 %v2414_v51, 0.0  ;;  %v5217_v59 = vpop.f32.mrf.mxu0  ;;  %v2602_v51 = vadd.f32 %v5162_v7, %v4541_v21  ;;  %v2379_v21 = vmul.f32 %v5026_v31, %v5144_v61 }
 0x4d4   :  { %v2658_v46 = vsel %vm2186_vm8, %v2446_v53, 0.0  ;;  %v2415_v7 = vadd.f32 %v5034_v58, %v2379_v21 }
 0x4d7   :  { %2677 = vadd.xlane.f32.xlu2 %v2676_v28 }
 0x4d9   :  { %v1889_v48 = vpop.xlane.xlu1 %1888 }
 0x4da   :  { %v5223_v28 = vpop.f32.mrf.mxu0 }
 0x4de   :  { %v1880_v19 = vpop.xlane.xlu0 %1879 }
 0x4df   :  { %v1934_v55 = vsub.f32 %v1880_v19, %v4752_v33  ;;  %v1960_v19 = vmul.f32 0.5, %v1928_v52  ;;  %v1937_v52 = vsub.f32 %v1889_v48, %v4855_v15  ;;  %v1908_v48 = vsel %vm1817_vm0, %v5109_v25, 0.0 }
 0x4e1   :  { %v1966_v16 = vmul.f32 0.5, %v1934_v55  ;;  %v1927_v55 = vsub.f32 %v5096_v35, %v4693_v57 }
 0x4e3   :  { %v1959_v63 = vmul.f32 0.5, %v1927_v55  ;;  %v2447_v55 = vmax.f32 %v2415_v7, 0.0 }
 0x4e6   :  { %v5201_v36 = vpop.xlane.xlu0 %1885 }
 0x4ef   :  { %2536 = vrot.lane.b32.xlu2 %v1964_v43, %s3341_s6 }
 0x4f1   :  { %v2517_v43 = vpop.permute.xlu1 %2516 }
 0x4f4   :  { %1900 = vadd.xlane.f32.xlu1 %v1899_v5 }
 0x4f7   :  { %1897 = vadd.xlane.f32.xlu0 %v1896_v45  ;;  %2540 = vrot.lane.b32.xlu2 %v1966_v16, %s3341_s6  ;;  %v2604_v45 = vadd.f32 %v2517_v43, %v4593_v17  ;;  %v2382_v17 = vmul.f32 %v5026_v31, %v5167_v18  ;;  %v2381_v43 = vmul.f32 %v5026_v31, %v5160_v23  ;;  %v1911_v23 = vsel %vm1817_vm0, %v5112_v49, 0.0 }
 0x4f9   :  { %v2515_v42 = vpop.permute.xlu0 %2514  ;;  %v2417_v61 = vadd.f32 %v5034_v58, %v2381_v43 }
 0x4fa   :  { %v2603_v62 = vadd.f32 %v2515_v42, %v4564_v34  ;;  %v2328_v34 = vpop.f32.mrf.mxu0 }
 0x4fc   :  { %v5214_v50 = vadd.f32 %v2651_v2, %v2603_v62  ;;  %v2388_v2 = vmul.f32 %v5026_v31, %v2328_v34  ;;  %v1969_v34 = vmul.f32 0.5, %v1937_v52 }
 0x4fe   :  { %v2424_v26 = vadd.f32 %v5034_v58, %v2388_v2 }
 0x4ff   :  { %2659 = vadd.xlane.f32.xlu0 %v2658_v46  ;;  %v2380_v46 = vmul.f32 %v5026_v31, %v5149_v4  ;;  %v2418_v4 = vadd.f32 %v5034_v58, %v2382_v17 }
 0x500   :  { %v2456_v24 = vmax.f32 %v2424_v26, 0.0 }
 0x501   :  { %v2450_v26 = vmax.f32 %v2418_v4, 0.0 }
 0x502   :  { %v2688_v16 = vsel %vm2186_vm8, %v2456_v24, 0.0  ;;  %v2331_v24 = vpop.f32.mrf.mxu0 }
 0x503   :  { %v2670_v18 = vsel %vm2186_vm8, %v2450_v26, 0.0 }
 0x507   :  { %1903 = vadd.xlane.f32.xlu0 %v1902_v0  ;;  %v2416_v0 = vadd.f32 %v5034_v58, %v2380_v46 }
 0x50a   :  { %v2334_v25 = vpop.f32.mrf.mxu0 }
 0x50d   :  { %2528 = vrot.lane.b32.xlu1 %v1960_v19, %s3341_s6  ;;  %v2448_v19 = vmax.f32 %v2416_v0, 0.0 }
 0x50f   :  { %v2664_v2 = vsel %vm2186_vm8, %v2448_v19, 0.0 }
 0x512   :  { %v5280_v7 = vpop.f32.mrf.mxu0 }
 0x51b   :  { %2526 = vrot.lane.b32.xlu0 %v1959_v63, %s3341_s6  ;;  %v2661_v63 = vsel %vm2186_vm8, %v2447_v55, 0.0 }
 0x51c   :  { %v5231_v5 = vpop.xlane.xlu1 %1894 }
 0x520   :  { %2689 = vadd.xlane.f32.xlu2 %v2688_v16  ;;  %v2449_v16 = vmax.f32 %v2417_v61, 0.0 }
 0x524   :  { %v2648_v42 = vpop.xlane.xlu0 %2647  ;;  %v2654_v62 = vpop.xlane.xlu1 %2653 }
 0x525   :  { %v5237_v53 = vadd.f32 %v2648_v42, %v2602_v51  ;;  %v5239_v35 = vadd.f32 %v2654_v62, %v2604_v45  ;;  %v2667_v51 = vsel %vm2186_vm8, %v2449_v16, 0.0  ;;  %v2390_v45 = vmul.f32 %v5026_v31, %v2334_v25 }
 0x526   :  { %v1931_v62 = vsub.f32 %v5120_v12, %v4770_v29  ;;  %v1933_v12 = vsub.f32 %v5176_v56, %v4816_v38 }
 0x527   :  { %v2426_v42 = vadd.f32 %v5034_v58, %v2390_v45 }
 0x528   :  { %v1963_v52 = vmul.f32 0.5, %v1931_v62  ;;  %v1965_v4 = vmul.f32 0.5, %v1933_v12 }
 0x529   :  { %v2458_v0 = vmax.f32 %v2426_v42, 0.0  ;;  %v2386_v42 = vmul.f32 %v5026_v31, %v5217_v59  ;;  %v2389_v59 = vmul.f32 %v5026_v31, %v2331_v24 }
 0x52b   :  { %v2694_v19 = vsel %vm2186_vm8, %v2458_v0, 0.0  ;;  %v2422_v0 = vadd.f32 %v5034_v58, %v2386_v42 }
 0x52c   :  { %v5267_v46 = vpop.xlane.xlu0 %1891 }
 0x537   :  { %2665 = vadd.xlane.f32.xlu1 %v2664_v2  ;;  %v1930_v2 = vsub.f32 %v5116_v11, %v4760_v47  ;;  %v1935_v11 = vsub.f32 %v5178_v27, %v4818_v6 }
 0x538   :  { %2546 = vrot.lane.b32.xlu2 %v1969_v34, %s3341_s6 }
 0x539   :  { %v1962_v49 = vmul.f32 0.5, %v1930_v2 }
 0x53c   :  { %v5273_v21 = vpop.permute.xlu1 %2522 }
 0x53f   :  { %1909 = vadd.xlane.f32.xlu1 %v1908_v48  ;;  %v2521_v34 = vpop.permute.xlu0 %2520 }
 0x540   :  { %v2606_v43 = vadd.f32 %v2521_v34, %v4642_v13 }
 0x545   :  { %2662 = vadd.xlane.f32.xlu0 %v2661_v63  ;;  %v5289_v63 = vpop.f32.mrf.mxu0 }
 0x547   :  { %2671 = vadd.xlane.f32.xlu1 %v2670_v18  ;;  %v1967_v18 = vmul.f32 0.5, %v1935_v11 }
 0x54d   :  { %2668 = vadd.xlane.f32.xlu0 %v2667_v51  ;;  %v2385_v51 = vmul.f32 %v5026_v31, %v5211_v32  ;;  %v5296_v27 = vpop.f32.mrf.mxu0  ;;  %v2387_v32 = vmul.f32 %v5026_v31, %v5223_v28 }
 0x54f   :  { %v2421_v45 = vadd.f32 %v5034_v58, %v2385_v51  ;;  %v2423_v34 = vadd.f32 %v5034_v58, %v2387_v32 }
 0x551   :  { %v2455_v12 = vmax.f32 %v2423_v34, 0.0 }
 0x555   :  { %1912 = vadd.xlane.f32.xlu0 %v1911_v23  ;;  %v2453_v23 = vmax.f32 %v2421_v45, 0.0  ;;  %v5302_v62 = vpop.f32.mrf.mxu0  ;;  %v1936_v45 = vsub.f32 %v5201_v36, %v4867_v39 }
 0x557   :  { %v1968_v42 = vmul.f32 0.5, %v1936_v45  ;;  %v5474_v45 = vld [vmem:[#allocation9_spill] sm:$0xff] }
 0x560   :  { %2534 = vrot.lane.b32.xlu1 %v1963_v52, %s3341_s6  ;;  %v2679_v52 = vsel %vm2186_vm8, %v2453_v23, 0.0 }
 0x561   :  { %2695 = vadd.xlane.f32.xlu2 %v2694_v19  ;;  %v2454_v19 = vmax.f32 %v2422_v0, 0.0  ;;  %v1938_v0 = vsub.f32 %v5267_v46, %v4871_v40 }
 0x563   :  { %v2682_v2 = vsel %vm2186_vm8, %v2454_v19, 0.0  ;;  %v1970_v19 = vmul.f32 0.5, %v1938_v0 }
 0x567   :  { %v1901_v48 = vpop.xlane.xlu1 %1900 }
 0x568   :  { %v1941_v26 = vsub.f32 %v1901_v48, %v4910_v1  ;;  %v2425_v48 = vadd.f32 %v5034_v58, %v2389_v59 }
 0x569   :  { %2532 = vrot.lane.b32.xlu0 %v1962_v49, %s3341_s6  ;;  %v5310_v49 = vpop.f32.mrf.mxu0 }
 0x56a   :  { %v5276_v17 = vpop.xlane.xlu0 %1897  ;;  %v1973_v56 = vmul.f32 0.5, %v1941_v26  ;;  %v2457_v11 = vmax.f32 %v2425_v48, 0.0 }
 0x571   :  { %2538 = vrot.lane.b32.xlu0 %v1965_v4, %s3341_s6  ;;  %v2685_v4 = vsel %vm2186_vm8, %v2455_v12, 0.0 }
 0x572   :  { %v2660_v55 = vpop.xlane.xlu0 %2659 }
 0x573   :  { %v5287_v61 = vadd.f32 %v2660_v55, %v2606_v43  ;;  %v2352_v43 = vpop.f32.mrf.mxu0 }
 0x574   :  { %v2396_v55 = vmul.f32 %v5026_v31, %v2352_v43  ;;  %v5472_v43 = vld [vmem:[#allocation12_spill] sm:$0xff] }
 0x576   :  { %v2432_v28 = vadd.f32 %v5034_v58, %v2396_v55 }
 0x579   :  { %2542 = vrot.lane.b32.xlu0 %v1967_v18, %s3341_s6  ;;  %2554 = vrot.lane.b32.xlu2 %v1973_v56, %s3341_s6  ;;  %v2691_v18 = vsel %vm2186_vm8, %v2457_v11, 0.0  ;;  %v2464_v56 = vmax.f32 %v2432_v28, 0.0 }
 0x57a   :  { %v1904_v16 = vpop.xlane.xlu0 %1903 }
 0x57b   :  { %v1942_v13 = vsub.f32 %v1904_v16, %v4950_v37  ;;  %v2525_v16 = vpop.permute.xlu2 %2524  ;;  %v2712_v24 = vsel %vm2186_vm8, %v2464_v56, 0.0  ;;  %v2355_v56 = vpop.f32.mrf.mxu0 }
 0x57d   :  { %v1974_v25 = vmul.f32 0.5, %v1942_v13  ;;  %v2608_v13 = vadd.f32 %v2525_v16, %v4673_v54  ;;  %v2607_v54 = vadd.f32 %v5273_v21, %v4654_v14  ;;  %v2392_v14 = vmul.f32 %v5026_v31, %v5289_v63 }
 0x57f   :  { %v2529_v26 = vpop.permute.xlu1 %2528  ;;  %v2428_v21 = vadd.f32 %v5034_v58, %v2392_v14 }
 0x580   :  { %v2610_v34 = vadd.f32 %v2529_v26, %v4710_v22  ;;  %v2391_v22 = vmul.f32 %v5026_v31, %v5280_v7 }
 0x581   :  { %2556 = vrot.lane.b32.xlu2 %v1974_v25, %s3341_s6 }
 0x582   :  { %v2427_v28 = vadd.f32 %v5034_v58, %v2391_v22 }
 0x58a   :  { %2680 = vadd.xlane.f32.xlu1 %v2679_v52 }
 0x58d   :  { %v2527_v23 = vpop.permute.xlu0 %2526 }
 0x58e   :  { %v2609_v46 = vadd.f32 %v2527_v23, %v4693_v57  ;;  %v2460_v57 = vmax.f32 %v2428_v21, 0.0  ;;  %v1940_v23 = vsub.f32 %v5276_v17, %v5474_v45  ;;  %v2393_v17 = vmul.f32 %v5026_v31, %v5296_v27 }
 0x590   :  { %v2700_v26 = vsel %vm2186_vm8, %v2460_v57, 0.0  ;;  %v5475_v57 = vld [vmem:[#allocation11_spill] sm:$0xff] }
 0x592   :  { %2683 = vadd.xlane.f32.xlu1 %v2682_v2 }
 0x59a   :  { %2686 = vadd.xlane.f32.xlu1 %v2685_v4 }
 0x5a3   :  { %2692 = vadd.xlane.f32.xlu0 %v2691_v18  ;;  %v2459_v18 = vmax.f32 %v2427_v28, 0.0  ;;  %v1907_v28 = vpop.xlane.xlu2 %1906 }
 0x5a5   :  { %v2697_v16 = vsel %vm2186_vm8, %v2459_v18, 0.0  ;;  %v5476_v18 = vld [vmem:[#allocation13_spill] sm:$0xff] }
 0x5aa   :  { %v2666_v51 = vpop.xlane.xlu1 %2665  ;;  %2713 = vadd.xlane.f32.xlu2 %v2712_v24 }
 0x5ab   :  { %v5320_v25 = vadd.f32 %v2666_v51, %v2608_v13  ;;  %v2358_v13 = vpop.f32.mrf.mxu0  ;;  %v5473_v51 = vld [vmem:[#allocation8_spill] sm:$0xff] }
 0x5ac   :  { %v2398_v24 = vmul.f32 %v5026_v31, %v2358_v13  ;;  %v1939_v7 = vsub.f32 %v5231_v5, %v5473_v51 }
 0x5ae   :  { %v2434_v63 = vadd.f32 %v5034_v58, %v2398_v24 }
 0x5b0   :  { %v2466_v0 = vmax.f32 %v2434_v63, 0.0  ;;  %v2397_v63 = vmul.f32 %v5026_v31, %v2355_v56 }
 0x5b2   :  { %v5326_v52 = vpop.xlane.xlu1 %1909 }
 0x5b3   :  { %2544 = vrot.lane.b32.xlu1 %v1968_v42, %s3341_s6  ;;  %v2383_v42 = vmul.f32 %v5026_v31, %v5174_v44  ;;  %v2394_v44 = vmul.f32 %v5026_v31, %v5302_v62  ;;  %v2361_v24 = vpop.f32.mrf.mxu0 }
 0x5b7   :  { %2548 = vrot.lane.b32.xlu0 %v1970_v19, %s3341_s6  ;;  %v1971_v19 = vmul.f32 0.5, %v1939_v7  ;;  %v2399_v7 = vmul.f32 %v5026_v31, %v2361_v24 }
 0x5b8   :  { %v2663_v32 = vpop.xlane.xlu0 %2662 }
 0x5b9   :  { %v5333_v2 = vadd.f32 %v2663_v32, %v2607_v54  ;;  %v1972_v54 = vmul.f32 0.5, %v1940_v23  ;;  %v2419_v32 = vadd.f32 %v5034_v58, %v2383_v42  ;;  %v2433_v23 = vadd.f32 %v5034_v58, %v2397_v63 }
 0x5ba   :  { %v2672_v36 = vpop.xlane.xlu1 %2671  ;;  %v2435_v42 = vadd.f32 %v5034_v58, %v2399_v7 }
 0x5bb   :  { %v5335_v12 = vadd.f32 %v2672_v36, %v2610_v34  ;;  %v2718_v34 = vsel %vm2186_vm8, %v2466_v0, 0.0  ;;  %v2451_v36 = vmax.f32 %v2419_v32, 0.0  ;;  %v2465_v0 = vmax.f32 %v2433_v23, 0.0  ;;  %v5386_v32 = vpop.permute.xlu2 %2530 }
 0x5bd   :  { %v2673_v5 = vsel %vm2186_vm8, %v2451_v36, 0.0 }
 0x5c0   :  { %v2669_v59 = vpop.xlane.xlu0 %2668 }
 0x5c1   :  { %v5338_v4 = vadd.f32 %v2669_v59, %v2609_v46  ;;  %v2429_v46 = vadd.f32 %v5034_v58, %v2393_v17  ;;  %v2430_v59 = vadd.f32 %v5034_v58, %v2394_v44 }
 0x5c8   :  { %v1913_v48 = vpop.xlane.xlu0 %1912 }
 0x5c9   :  { %v1945_v55 = vsub.f32 %v1913_v48, %v5472_v43  ;;  %v2461_v48 = vmax.f32 %v2429_v46, 0.0 }
 0x5cb   :  { %v1977_v11 = vmul.f32 0.5, %v1945_v55  ;;  %v2395_v55 = vmul.f32 %v5026_v31, %v5310_v49  ;;  %v2703_v22 = vsel %vm2186_vm8, %v2461_v48, 0.0 }
 0x5cd   :  { %2562 = vrot.lane.b32.xlu2 %v1977_v11, %s3341_s6  ;;  %v2462_v11 = vmax.f32 %v2430_v59, 0.0  ;;  %v2431_v14 = vadd.f32 %v5034_v58, %v2395_v55 }
 0x5cf   :  { %v2706_v21 = vsel %vm2186_vm8, %v2462_v11, 0.0  ;;  %v2463_v27 = vmax.f32 %v2431_v14, 0.0 }
 0x5d1   :  { %v2709_v62 = vsel %vm2186_vm8, %v2463_v27, 0.0 }
 0x5db   :  { %v2533_v36 = vpop.permute.xlu0 %2532 }
 0x5dc   :  { %v2612_v56 = vadd.f32 %v2533_v36, %v4760_v47 }
 0x5dd   :  { %2701 = vadd.xlane.f32.xlu1 %v2700_v26  ;;  %v1944_v26 = vsub.f32 %v5326_v52, %v5475_v57  ;;  %v2715_v52 = vsel %vm2186_vm8, %v2465_v0, 0.0 }
 0x5df   :  { %v1976_v49 = vmul.f32 0.5, %v1944_v26 }
 0x5e1   :  { %2698 = vadd.xlane.f32.xlu0 %v2697_v16  ;;  %v1943_v16 = vsub.f32 %v1907_v28, %v5476_v18 }
 0x5e3   :  { %v1975_v13 = vmul.f32 0.5, %v1943_v16  ;;  %v2539_v11 = vpop.permute.xlu0 %2538 }
 0x5e4   :  { %v2615_v47 = vadd.f32 %v2539_v11, %v4816_v38 }
 0x5eb   :  { %v2543_v27 = vpop.permute.xlu0 %2542 }
 0x5f5   :  { %2550 = vrot.lane.b32.xlu0 %v1971_v19, %s3341_s6  ;;  %v2467_v19 = vmax.f32 %v2435_v42, 0.0 }
 0x5f6   :  { %2719 = vadd.xlane.f32.xlu2 %v2718_v34  ;;  %2552 = vrot.lane.b32.xlu1 %v1972_v54, %s3341_s6  ;;  %v2535_v34 = vpop.permute.xlu1 %2534 }
 0x5f7   :  { %v2721_v54 = vsel %vm2186_vm8, %v2467_v19, 0.0  ;;  %v2613_v58 = vadd.f32 %v2535_v34, %v4770_v29 }
 0x5fe   :  { %2674 = vadd.xlane.f32.xlu2 %v2673_v5  ;;  %v2678_v5 = vpop.xlane.xlu2 %2677  ;;  %v2681_v17 = vpop.xlane.xlu1 %2680 }
 0x5ff   :  { %v2740_v31 = vadd.f32 %v2678_v5, %v2612_v56  ;;  %v2741_v44 = vadd.f32 %v2681_v17, %v2613_v58 }
 0x606   :  { %v2537_v46 = vpop.permute.xlu2 %2536  ;;  %v2684_v59 = vpop.xlane.xlu1 %2683 }
 0x607   :  { %v2614_v48 = vadd.f32 %v2537_v46, %v4790_v9  ;;  %v5477_v46 = vld [vmem:[#allocation10_spill] sm:$0xff] }
 0x609   :  { %v2742_v55 = vadd.f32 %v2684_v59, %v2614_v48  ;;  %v2826_v48 = vlaneseq }
 0x60b   :  { %vm2828_vm7 = vcmp.lt.s32.totalorder %v2826_v48, 256 }
 0x60e   :  { %v2541_v14 = vpop.permute.xlu2 %2540 }
 0x616   :  { %v2690_v29 = vpop.xlane.xlu2 %2689  ;;  %v2693_v9 = vpop.xlane.xlu0 %2692 }
 0x61e   :  { %v2547_v26 = vpop.permute.xlu2 %2546 }
 0x61f   :  { %2704 = vadd.xlane.f32.xlu0 %v2703_v22  ;;  %v2687_v22 = vpop.xlane.xlu1 %2686 }
 0x620   :  { %2707 = vadd.xlane.f32.xlu1 %v2706_v21  ;;  %v2743_v21 = vadd.f32 %v2687_v22, %v2615_v47 }
 0x627   :  { %2710 = vadd.xlane.f32.xlu0 %v2709_v62  ;;  %v2616_v62 = vadd.f32 %v2541_v14, %v4752_v33 }
 0x629   :  { %v2744_v28 = vadd.f32 %v2690_v29, %v2616_v62 }
 0x639   :  { %2560 = vrot.lane.b32.xlu1 %v1976_v49, %s3341_s6  ;;  %v2545_v49 = vpop.permute.xlu1 %2544 }
 0x63a   :  { %v2618_v38 = vadd.f32 %v2545_v49, %v4867_v39 }
 0x63b   :  { %2558 = vrot.lane.b32.xlu0 %v1975_v13, %s3341_s6  ;;  %v2696_v13 = vpop.xlane.xlu2 %2695 }
 0x63c   :  { %v2746_v24 = vadd.f32 %v2696_v13, %v2618_v38 }
 0x663   :  { %2716 = vadd.xlane.f32.xlu1 %v2715_v52 }
 0x665   :  { %2722 = vadd.xlane.f32.xlu0 %v2721_v54 }
 0x68e   :  { %2788 = vxpose.xlu0.b32.start [1/16] (narrow) %v2740_v31, 8 }
 0x696   :  { %2789 = vxpose.xlu0.b32.cont [2/16] (narrow) %v2741_v44, 8 }
 0x69d   :  { %2756 = vxpose.xlu1.b32.start [1/16] (narrow) %v5140_v8, 8  ;;  %v2617_v8 = vadd.f32 %v2543_v27, %v4818_v6  ;;  %v2702_v6 = vpop.xlane.xlu1 %2701 }
 0x69e   :  { %2790 = vxpose.xlu0.b32.cont [3/16] (narrow) %v2742_v55, 8 }
 0x69f   :  { %v2745_v16 = vadd.f32 %v2693_v9, %v2617_v8 }
 0x6a5   :  { %2757 = vxpose.xlu1.b32.cont [2/16] (narrow) %v5147_v60, 8  ;;  %v2549_v60 = vpop.permute.xlu0 %2548  ;;  %v2553_v39 = vpop.permute.xlu1 %2552 }
 0x6a6   :  { %2791 = vxpose.xlu0.b32.cont [4/16] (narrow) %v2743_v21, 8 }
 0x6ad   :  { %2758 = vxpose.xlu1.b32.cont [3/16] (narrow) %v5128_v20, 8  ;;  %v2699_v33 = vpop.xlane.xlu0 %2698  ;;  %v2619_v20 = vadd.f32 %v2547_v26, %v4855_v15  ;;  %v2555_v15 = vpop.permute.xlu2 %2554 }
 0x6ae   :  { %2792 = vxpose.xlu0.b32.cont [5/16] (narrow) %v2744_v28, 8  ;;  %v2708_v19 = vpop.xlane.xlu1 %2707 }
 0x6af   :  { %v2747_v63 = vadd.f32 %v2699_v33, %v2619_v20 }
 0x6b5   :  { %2759 = vxpose.xlu1.b32.cont [4/16] (narrow) %v5172_v41, 8  ;;  %v2551_v7 = vpop.permute.xlu0 %2550  ;;  %v2620_v41 = vadd.f32 %v2549_v60, %v4871_v40  ;;  %v2557_v40 = vpop.permute.xlu2 %2556 }
 0x6b6   :  { %2793 = vxpose.xlu0.b32.cont [6/16] (narrow) %v2745_v16, 8  ;;  %v2561_v36 = vpop.permute.xlu1 %2560 }
 0x6b7   :  { %v2748_v23 = vadd.f32 %v2702_v6, %v2620_v41 }
 0x6bd   :  { %2760 = vxpose.xlu1.b32.cont [5/16] (narrow) %v5189_v10, 8  ;;  %v2705_v42 = vpop.xlane.xlu0 %2704  ;;  %v2621_v10 = vadd.f32 %v2551_v7, %v5473_v51  ;;  %v2714_v51 = vpop.xlane.xlu2 %2713 }
 0x6be   :  { %2794 = vxpose.xlu0.b32.cont [7/16] (narrow) %v2746_v24, 8 }
 0x6bf   :  { %v2749_v0 = vadd.f32 %v2705_v42, %v2621_v10 }
 0x6c5   :  { %2761 = vxpose.xlu1.b32.cont [6/16] (narrow) %v5195_v3, 8  ;;  %v2622_v3 = vadd.f32 %v2553_v39, %v5474_v45  ;;  %v2711_v54 = vpop.xlane.xlu0 %2710  ;;  %v2563_v31 = vpop.permute.xlu2 %2562 }
 0x6c6   :  { %2795 = vxpose.xlu0.b32.cont [8/16] (narrow) %v2747_v63, 8 }
 0x6c7   :  { %v2750_v52 = vadd.f32 %v2708_v19, %v2622_v3 }
 0x6cd   :  { %2762 = vxpose.xlu1.b32.cont [7/16] (narrow) %v5237_v53, 8  ;;  %v2623_v53 = vadd.f32 %v2555_v15, %v4910_v1  ;;  %v2559_v45 = vpop.permute.xlu0 %2558  ;;  %v2626_v1 = vadd.f32 %v2561_v36, %v5475_v57 }
 0x6ce   :  { %2796 = vxpose.xlu0.b32.cont [9/16] (narrow) %v2748_v23, 8 }
 0x6cf   :  { %v2751_v34 = vadd.f32 %v2711_v54, %v2623_v53 }
 0x6d5   :  { %2763 = vxpose.xlu1.b32.cont [8/16] (narrow) %v5214_v50, 8  ;;  %v2624_v50 = vadd.f32 %v2557_v40, %v4950_v37 }
 0x6d6   :  { %2797 = vxpose.xlu0.b32.cont [10/16] (narrow) %v2749_v0, 8  ;;  %v2717_v5 = vpop.xlane.xlu1 %2716 }
 0x6d7   :  { %v2752_v56 = vadd.f32 %v2714_v51, %v2624_v50 }
 0x6d8   :  { %v2723_v37 = vpop.xlane.xlu0 %2722 }
 0x6dd   :  { %2764 = vxpose.xlu1.b32.cont [9/16] (narrow) %v5239_v35, 8  ;;  %v2625_v35 = vadd.f32 %v2559_v45, %v5476_v18 }
 0x6de   :  { %2798 = vxpose.xlu0.b32.cont [11/16] (narrow) %v2750_v52, 8 }
 0x6df   :  { %v2753_v17 = vadd.f32 %v2717_v5, %v2625_v35 }
 0x6e5   :  { %2765 = vxpose.xlu1.b32.cont [10/16] (narrow) %v5186_v30, 8  ;;  %v2720_v30 = vpop.xlane.xlu2 %2719 }
 0x6e6   :  { %2799 = vxpose.xlu0.b32.cont [12/16] (narrow) %v2751_v34, 8  ;;  %v2754_v58 = vadd.f32 %v2720_v30, %v2626_v1 }
 0x6ed   :  { %2766 = vxpose.xlu1.b32.cont [11/16] (narrow) %v5287_v61, 8  ;;  %v2627_v61 = vadd.f32 %v2563_v31, %v5472_v43  ;;  %v2675_v18 = vpop.xlane.xlu2 %2674 }
 0x6ee   :  { %2800 = vxpose.xlu0.b32.cont [13/16] (narrow) %v2752_v56, 8 }
 0x6ef   :  { %v2755_v44 = vadd.f32 %v2723_v37, %v2627_v61 }
 0x6f5   :  { %2767 = vxpose.xlu1.b32.cont [12/16] (narrow) %v5333_v2, 8  ;;  %v2611_v2 = vadd.f32 %v5386_v32, %v5477_v46 }
 0x6f6   :  { %2801 = vxpose.xlu0.b32.cont [14/16] (narrow) %v2753_v17, 8 }
 0x6f7   :  { %v2739_v59 = vadd.f32 %v2675_v18, %v2611_v2 }
 0x6fd   :  { %2768 = vxpose.xlu1.b32.cont [13/16] (narrow) %v5320_v25, 8 }
 0x6fe   :  { %2802 = vxpose.xlu0.b32.cont [15/16] (narrow) %v2754_v58, 8 }
 0x705   :  { %2769 = vxpose.xlu1.b32.cont [14/16] (narrow) %v5338_v4, 8 }
 0x706   :  { %2803 = vxpose.xlu0.b32.end [16/16] (narrow) %v2755_v44, 8 }
 0x70d   :  { %2770 = vxpose.xlu1.b32.cont [15/16] (narrow) %v5335_v12, 8 }
 0x715   :  { %2771 = vxpose.xlu1.b32.end [16/16] (narrow) %v2739_v59, 8 }
 0x732   :  { %v2804_v57 = vpop.trf.xlu0 }
 0x733   :  { %v2822_v55 = vrot.slane %v2804_v57, 7 }
 0x741   :  { %v2772_v25 = vpop.trf.xlu1 }
 0x742   :  { %v2824_v12 = vsel %vm2823_vm1, %v2772_v25, %v2822_v55 }
 0x743   :  { %2830 = vst.msk [vmem:[#allocation5] sm:$0x3] %vm2828_vm7, %v2824_v12 }
 0x744   :  { %2841 = dma.vmem_to_hbm [thread:$0]  %s2837_s8, 32, %s2839_s1, [#allocation4]  }
 0x745   :  { %3331 = dma.done.wait [#allocation4], 32  }
 0x746   :  { %3332 = vsyncadd [#allocation4], 4294967264 }
 0x747   :  { %2846 = vsyncpa [#allocation3], 1 }
 0x748   :  { %2847 = vsyncpa [#allocation4], 1 }

</bundles_post_ra>
